<compile_context>
chip_gen: v7x
topology: tpu7x:2x2x1
jax: 0.10.0
libtpu: 0.0.40
codegen_flags: <defaults>
</compile_context>

<pallas_src>
import jax
import jax.numpy as jnp
from jax.experimental import pallas as pl
from jax.experimental.pallas import tpu as pltpu


def _round_up(n, m):
    return ((n + m - 1) // m) * m


def _ode_rk4_kernel(dts_ref, x0_ref, w1_ref, b1_ref, w2_ref, b2_ref, out_ref):
    """Single-program kernel: integrates all T time points in one body.

    Args (refs, padded shapes):
      dts_ref: (T-1,)      SMEM  time-point differences t[i] - t[i-1]
      x0_ref : (BP, DP)    VMEM  initial state (zero-padded)
      w1_ref : (DP, HP)    VMEM  fc1 weight (transposed vs torch, zero-padded)
      b1_ref : (1, HP)     VMEM  fc1 bias (zero-padded)
      w2_ref : (HP, DP)    VMEM  fc2 weight (transposed vs torch, zero-padded)
      b2_ref : (1, DP)     VMEM  fc2 bias (zero-padded)
      out_ref: (BP, T, DP) VMEM  trajectory, already batch-major
    """
    BP = x0_ref.shape[0]
    HP = w1_ref.shape[1]
    DP = w2_ref.shape[1]
    T = out_ref.shape[1]

    # Hoisted bias broadcasts (reused by every RK stage of every step).
    b1 = jnp.broadcast_to(b1_ref[...], (BP, HP))
    b2 = jnp.broadcast_to(b2_ref[...], (BP, DP))

    def f(x):
        # fc1 -> tanh -> fc2   (MXU matmuls, EUP tanh, VPU adds)
        h = jnp.tanh(
            jnp.dot(x, w1_ref[...], preferred_element_type=jnp.float32) + b1)
        return jnp.dot(h, w2_ref[...], preferred_element_type=jnp.float32) + b2

    x = x0_ref[...].astype(jnp.float32)
    out_ref[:, 0, :] = x.astype(out_ref.dtype)

    # T is a small static trip count -> fully unrolled, giving the scheduler
    # visibility across RK4 steps to hide MXU result latency.
    for i in range(1, T):
        dt = dts_ref[i - 1]
        k1 = f(x)
        k2 = f(x + (0.5 * dt) * k1)
        k3 = f(x + (0.5 * dt) * k2)
        k4 = f(x + dt * k3)
        x = x + (dt / 6.0) * (k1 + 2.0 * k2 + 2.0 * k3 + k4)
        out_ref[:, i, :] = x.astype(out_ref.dtype)


@jax.jit
def neural_ode_forward(x0, t, params):
    """x0: (B, L, C, F) float32, t: (T,) float32 -> (B, T, C, F) float32."""
    w1, b1, w2, b2 = params["w1"], params["b1"], params["w2"], params["b2"]
    B, L, C, F = x0.shape
    D = C * F
    H = w1.shape[1]
    T = t.shape[0]

    # Pad batch to sublane width (8) and feature dims to lane width (128) so
    # the kernel works on tile-aligned, lane-dense vregs. Zero padding is
    # exact for the real rows/columns (padded state columns stay zero).
    BP = _round_up(B, 8)
    DP = _round_up(D, 128)
    HP = _round_up(H, 128)

    # glue: flatten(start_dim=-2) then take index 0 along dim 1
    x0_flat = x0.reshape(B, L, D)[:, 0]                      # (B, D)

    x0_p = jnp.zeros((BP, DP), jnp.float32).at[:B, :D].set(x0_flat)
    w1_p = jnp.zeros((DP, HP), jnp.float32).at[:D, :H].set(w1)
    b1_p = jnp.zeros((1, HP), jnp.float32).at[0, :H].set(b1)
    w2_p = jnp.zeros((HP, DP), jnp.float32).at[:H, :D].set(w2)
    b2_p = jnp.zeros((1, DP), jnp.float32).at[0, :D].set(b2)
    dts = t[1:] - t[:-1]                                      # (T-1,)

    traj = pl.pallas_call(
        _ode_rk4_kernel,
        out_shape=jax.ShapeDtypeStruct((BP, T, DP), jnp.float32),
        in_specs=[
            pl.BlockSpec(memory_space=pltpu.MemorySpace.SMEM),   # dts
            pl.BlockSpec(memory_space=pltpu.MemorySpace.VMEM),   # x0
            pl.BlockSpec(memory_space=pltpu.MemorySpace.VMEM),   # w1
            pl.BlockSpec(memory_space=pltpu.MemorySpace.VMEM),   # b1
            pl.BlockSpec(memory_space=pltpu.MemorySpace.VMEM),   # w2
            pl.BlockSpec(memory_space=pltpu.MemorySpace.VMEM),   # b2
        ],
        out_specs=pl.BlockSpec(memory_space=pltpu.MemorySpace.VMEM),
    )(dts, x0_p, w1_p, b1_p, w2_p, b2_p)

    # Drop padding; unflatten(-1, (C, F)) is a free view on (B, T, D).
    return traj[:B, :, :D].reshape(B, T, C, F)


def _reference_forward(x0, t, params):
    """Pure-JAX reference (same fixed-step RK4) for verification."""
    w1, b1, w2, b2 = params["w1"], params["b1"], params["w2"], params["b2"]
    B, L, C, F = x0.shape
    D = C * F

    def f(x):
        return jnp.tanh(x @ w1 + b1) @ w2 + b2

    x = x0.reshape(B, L, D)[:, 0]
    states = [x]
    for i in range(1, t.shape[0]):
        dt = t[i] - t[i - 1]
        k1 = f(x)
        k2 = f(x + 0.5 * dt * k1)
        k3 = f(x + 0.5 * dt * k2)
        k4 = f(x + dt * k3)
        x = x + (dt / 6.0) * (k1 + 2 * k2 + 2 * k3 + k4)
        states.append(x)
    traj = jnp.stack(states, axis=0)                 # (T, B, D)
    return jnp.transpose(traj, (1, 0, 2)).reshape(B, t.shape[0], C, F)


if __name__ == "__main__":
    # Small shapes consistent with the module:
    # in_channels=4, feature_dim=16 -> obs_dim=64 ; nhidden=64 (default)
    B, L, C, F = 2, 3, 4, 16
    D = C * F
    H = 64
    T = 8

    key = jax.random.PRNGKey(0)
    k_x, k_w1, k_b1, k_w2, k_b2 = jax.random.split(key, 5)

    x0 = jax.random.normal(k_x, (B, L, C, F), dtype=jnp.float32)
    t = jnp.linspace(0.0, 1.0, T, dtype=jnp.float32)

    # Deterministic parameter init (shapes follow nn.Linear: fc1 D->H, fc2 H->D).
    # Stored as (in, out) so the kernel computes x @ W + b.
    params = {
        "w1": jax.random.normal(k_w1, (D, H), dtype=jnp.float32) * (1.0 / jnp.sqrt(D)),
        "b1": jax.random.normal(k_b1, (H,), dtype=jnp.float32) * 0.1,
        "w2": jax.random.normal(k_w2, (H, D), dtype=jnp.float32) * (1.0 / jnp.sqrt(H)),
        "b2": jax.random.normal(k_b2, (D,), dtype=jnp.float32) * 0.1,
    }

    out = neural_ode_forward(x0, t, params)
    out = jax.block_until_ready(out)

    ref = _reference_forward(x0, t, params)
    assert out.shape == (B, T, C, F), out.shape
    assert jnp.allclose(out, ref, atol=1e-4, rtol=1e-4), "mismatch vs reference"

    print("KERNEL_OK")
</pallas_src>

<mosaic_0001>
module attributes {stable_mosaic.version = 11 : i64} {
  func.func @_ode_rk4_kernel(%arg0: memref<7xf32, #tpu.memory_space<smem>>, %arg1: memref<8x128xf32, #tpu.memory_space<vmem>>, %arg2: memref<128x128xf32, #tpu.memory_space<vmem>>, %arg3: memref<1x128xf32, #tpu.memory_space<vmem>>, %arg4: memref<128x128xf32, #tpu.memory_space<vmem>>, %arg5: memref<1x128xf32, #tpu.memory_space<vmem>>, %arg6: memref<8x8x128xf32, #tpu.memory_space<vmem>>) attributes {dimension_semantics = [], scalar_prefetch = 0 : i64, scratch_operands = 0 : i64, tpu.core_type = #tpu.core_type<tc>} {
    %c0 = arith.constant 0 : index
    %c0_0 = arith.constant 0 : index
    %0 = vector.load %arg3[%c0, %c0_0] : memref<1x128xf32, #tpu.memory_space<vmem>>, vector<1x128xf32>
    %1 = vector.shape_cast %0 : vector<1x128xf32> to vector<1x128xf32>
    %2 = vector.broadcast %1 : vector<1x128xf32> to vector<8x128xf32>
    %c0_1 = arith.constant 0 : index
    %c0_2 = arith.constant 0 : index
    %3 = vector.load %arg5[%c0_1, %c0_2] : memref<1x128xf32, #tpu.memory_space<vmem>>, vector<1x128xf32>
    %4 = vector.shape_cast %3 : vector<1x128xf32> to vector<1x128xf32>
    %5 = vector.broadcast %4 : vector<1x128xf32> to vector<8x128xf32>
    %c0_3 = arith.constant 0 : index
    %c0_4 = arith.constant 0 : index
    %6 = vector.load %arg1[%c0_3, %c0_4] : memref<8x128xf32, #tpu.memory_space<vmem>>, vector<8x128xf32>
    %c0_5 = arith.constant 0 : index
    %c0_6 = arith.constant 0 : index
    %c0_7 = arith.constant 0 : index
    %7 = vector.load %arg6[%c0_5, %c0_6, %c0_7] : memref<8x8x128xf32, #tpu.memory_space<vmem>>, vector<8x1x128xf32>
    %8 = vector.shape_cast %7 : vector<8x1x128xf32> to vector<8x128xf32>
    %9 = vector.shape_cast %6 : vector<8x128xf32> to vector<8x1x128xf32>
    tpu.vector_store %arg6[%c0_5, %c0_6, %c0_7], %9 {strides = array<i32>} : memref<8x8x128xf32, #tpu.memory_space<vmem>>, vector<8x1x128xf32>,
    %c0_8 = arith.constant 0 : index
    %10 = memref.load %arg0[%c0_8] : memref<7xf32, #tpu.memory_space<smem>>
    %c0_9 = arith.constant 0 : index
    %c0_10 = arith.constant 0 : index
    %11 = vector.load %arg2[%c0_9, %c0_10] : memref<128x128xf32, #tpu.memory_space<vmem>>, vector<128x128xf32>
    %cst = arith.constant dense<0.000000e+00> : vector<8x128xf32>
    %12 = tpu.matmul %6, %11, %cst {dimension_numbers = #tpu.dot_dimension_numbers<[1], [0], [0], [1], [0, 0, 1, 1], [], []>} : vector<8x128xf32>, vector<128x128xf32>, vector<8x128xf32> -> vector<8x128xf32>
    %13 = arith.addf %12, %2 : vector<8x128xf32>
    %14 = math.tanh %13 : vector<8x128xf32>
    %c0_11 = arith.constant 0 : index
    %c0_12 = arith.constant 0 : index
    %15 = vector.load %arg4[%c0_11, %c0_12] : memref<128x128xf32, #tpu.memory_space<vmem>>, vector<128x128xf32>
    %cst_13 = arith.constant dense<0.000000e+00> : vector<8x128xf32>
    %16 = tpu.matmul %14, %15, %cst_13 {dimension_numbers = #tpu.dot_dimension_numbers<[1], [0], [0], [1], [0, 0, 1, 1], [], []>} : vector<8x128xf32>, vector<128x128xf32>, vector<8x128xf32> -> vector<8x128xf32>
    %17 = arith.addf %16, %5 : vector<8x128xf32>
    %cst_14 = arith.constant 5.000000e-01 : f32
    %18 = arith.mulf %cst_14, %10 : f32
    %19 = vector.broadcast %18 : f32 to vector<8x128xf32>
    %20 = arith.mulf %19, %17 : vector<8x128xf32>
    %21 = arith.addf %6, %20 : vector<8x128xf32>
    %c0_15 = arith.constant 0 : index
    %c0_16 = arith.constant 0 : index
    %22 = vector.load %arg2[%c0_15, %c0_16] : memref<128x128xf32, #tpu.memory_space<vmem>>, vector<128x128xf32>
    %cst_17 = arith.constant dense<0.000000e+00> : vector<8x128xf32>
    %23 = tpu.matmul %21, %22, %cst_17 {dimension_numbers = #tpu.dot_dimension_numbers<[1], [0], [0], [1], [0, 0, 1, 1], [], []>} : vector<8x128xf32>, vector<128x128xf32>, vector<8x128xf32> -> vector<8x128xf32>
    %24 = arith.addf %23, %2 : vector<8x128xf32>
    %25 = math.tanh %24 : vector<8x128xf32>
    %c0_18 = arith.constant 0 : index
    %c0_19 = arith.constant 0 : index
    %26 = vector.load %arg4[%c0_18, %c0_19] : memref<128x128xf32, #tpu.memory_space<vmem>>, vector<128x128xf32>
    %cst_20 = arith.constant dense<0.000000e+00> : vector<8x128xf32>
    %27 = tpu.matmul %25, %26, %cst_20 {dimension_numbers = #tpu.dot_dimension_numbers<[1], [0], [0], [1], [0, 0, 1, 1], [], []>} : vector<8x128xf32>, vector<128x128xf32>, vector<8x128xf32> -> vector<8x128xf32>
    %28 = arith.addf %27, %5 : vector<8x128xf32>
    %cst_21 = arith.constant 5.000000e-01 : f32
    %29 = arith.mulf %cst_21, %10 : f32
    %30 = vector.broadcast %29 : f32 to vector<8x128xf32>
    %31 = arith.mulf %30, %28 : vector<8x128xf32>
    %32 = arith.addf %6, %31 : vector<8x128xf32>
    %c0_22 = arith.constant 0 : index
    %c0_23 = arith.constant 0 : index
    %33 = vector.load %arg2[%c0_22, %c0_23] : memref<128x128xf32, #tpu.memory_space<vmem>>, vector<128x128xf32>
    %cst_24 = arith.constant dense<0.000000e+00> : vector<8x128xf32>
    %34 = tpu.matmul %32, %33, %cst_24 {dimension_numbers = #tpu.dot_dimension_numbers<[1], [0], [0], [1], [0, 0, 1, 1], [], []>} : vector<8x128xf32>, vector<128x128xf32>, vector<8x128xf32> -> vector<8x128xf32>
    %35 = arith.addf %34, %2 : vector<8x128xf32>
    %36 = math.tanh %35 : vector<8x128xf32>
    %c0_25 = arith.constant 0 : index
    %c0_26 = arith.constant 0 : index
    %37 = vector.load %arg4[%c0_25, %c0_26] : memref<128x128xf32, #tpu.memory_space<vmem>>, vector<128x128xf32>
    %cst_27 = arith.constant dense<0.000000e+00> : vector<8x128xf32>
    %38 = tpu.matmul %36, %37, %cst_27 {dimension_numbers = #tpu.dot_dimension_numbers<[1], [0], [0], [1], [0, 0, 1, 1], [], []>} : vector<8x128xf32>, vector<128x128xf32>, vector<8x128xf32> -> vector<8x128xf32>
    %39 = arith.addf %38, %5 : vector<8x128xf32>
    %40 = vector.broadcast %10 : f32 to vector<8x128xf32>
    %41 = arith.mulf %40, %39 : vector<8x128xf32>
    %42 = arith.addf %6, %41 : vector<8x128xf32>
    %c0_28 = arith.constant 0 : index
    %c0_29 = arith.constant 0 : index
    %43 = vector.load %arg2[%c0_28, %c0_29] : memref<128x128xf32, #tpu.memory_space<vmem>>, vector<128x128xf32>
    %cst_30 = arith.constant dense<0.000000e+00> : vector<8x128xf32>
    %44 = tpu.matmul %42, %43, %cst_30 {dimension_numbers = #tpu.dot_dimension_numbers<[1], [0], [0], [1], [0, 0, 1, 1], [], []>} : vector<8x128xf32>, vector<128x128xf32>, vector<8x128xf32> -> vector<8x128xf32>
    %45 = arith.addf %44, %2 : vector<8x128xf32>
    %46 = math.tanh %45 : vector<8x128xf32>
    %c0_31 = arith.constant 0 : index
    %c0_32 = arith.constant 0 : index
    %47 = vector.load %arg4[%c0_31, %c0_32] : memref<128x128xf32, #tpu.memory_space<vmem>>, vector<128x128xf32>
    %cst_33 = arith.constant dense<0.000000e+00> : vector<8x128xf32>
    %48 = tpu.matmul %46, %47, %cst_33 {dimension_numbers = #tpu.dot_dimension_numbers<[1], [0], [0], [1], [0, 0, 1, 1], [], []>} : vector<8x128xf32>, vector<128x128xf32>, vector<8x128xf32> -> vector<8x128xf32>
    %49 = arith.addf %48, %5 : vector<8x128xf32>
    %cst_34 = arith.constant 6.000000e+00 : f32
    %50 = arith.divf %10, %cst_34 : f32
    %cst_35 = arith.constant 2.000000e+00 : f32
    %51 = vector.broadcast %cst_35 : f32 to vector<8x128xf32>
    %52 = arith.mulf %51, %28 : vector<8x128xf32>
    %53 = arith.addf %17, %52 : vector<8x128xf32>
    %cst_36 = arith.constant 2.000000e+00 : f32
    %54 = vector.broadcast %cst_36 : f32 to vector<8x128xf32>
    %55 = arith.mulf %54, %39 : vector<8x128xf32>
    %56 = arith.addf %53, %55 : vector<8x128xf32>
    %57 = arith.addf %56, %49 : vector<8x128xf32>
    %58 = vector.broadcast %50 : f32 to vector<8x128xf32>
    %59 = arith.mulf %58, %57 : vector<8x128xf32>
    %60 = arith.addf %6, %59 : vector<8x128xf32>
    %c0_37 = arith.constant 0 : index
    %c1 = arith.constant 1 : index
    %c0_38 = arith.constant 0 : index
    %61 = vector.load %arg6[%c0_37, %c1, %c0_38] : memref<8x8x128xf32, #tpu.memory_space<vmem>>, vector<8x1x128xf32>
    %62 = vector.shape_cast %61 : vector<8x1x128xf32> to vector<8x128xf32>
    %63 = vector.shape_cast %60 : vector<8x128xf32> to vector<8x1x128xf32>
    tpu.vector_store %arg6[%c0_37, %c1, %c0_38], %63 {strides = array<i32>} : memref<8x8x128xf32, #tpu.memory_space<vmem>>, vector<8x1x128xf32>,
    %c1_39 = arith.constant 1 : index
    %64 = memref.load %arg0[%c1_39] : memref<7xf32, #tpu.memory_space<smem>>
    %c0_40 = arith.constant 0 : index
    %c0_41 = arith.constant 0 : index
    %65 = vector.load %arg2[%c0_40, %c0_41] : memref<128x128xf32, #tpu.memory_space<vmem>>, vector<128x128xf32>
    %cst_42 = arith.constant dense<0.000000e+00> : vector<8x128xf32>
    %66 = tpu.matmul %60, %65, %cst_42 {dimension_numbers = #tpu.dot_dimension_numbers<[1], [0], [0], [1], [0, 0, 1, 1], [], []>} : vector<8x128xf32>, vector<128x128xf32>, vector<8x128xf32> -> vector<8x128xf32>
    %67 = arith.addf %66, %2 : vector<8x128xf32>
    %68 = math.tanh %67 : vector<8x128xf32>
    %c0_43 = arith.constant 0 : index
    %c0_44 = arith.constant 0 : index
    %69 = vector.load %arg4[%c0_43, %c0_44] : memref<128x128xf32, #tpu.memory_space<vmem>>, vector<128x128xf32>
    %cst_45 = arith.constant dense<0.000000e+00> : vector<8x128xf32>
    %70 = tpu.matmul %68, %69, %cst_45 {dimension_numbers = #tpu.dot_dimension_numbers<[1], [0], [0], [1], [0, 0, 1, 1], [], []>} : vector<8x128xf32>, vector<128x128xf32>, vector<8x128xf32> -> vector<8x128xf32>
    %71 = arith.addf %70, %5 : vector<8x128xf32>
    %cst_46 = arith.constant 5.000000e-01 : f32
    %72 = arith.mulf %cst_46, %64 : f32
    %73 = vector.broadcast %72 : f32 to vector<8x128xf32>
    %74 = arith.mulf %73, %71 : vector<8x128xf32>
    %75 = arith.addf %60, %74 : vector<8x128xf32>
    %c0_47 = arith.constant 0 : index
    %c0_48 = arith.constant 0 : index
    %76 = vector.load %arg2[%c0_47, %c0_48] : memref<128x128xf32, #tpu.memory_space<vmem>>, vector<128x128xf32>
    %cst_49 = arith.constant dense<0.000000e+00> : vector<8x128xf32>
    %77 = tpu.matmul %75, %76, %cst_49 {dimension_numbers = #tpu.dot_dimension_numbers<[1], [0], [0], [1], [0, 0, 1, 1], [], []>} : vector<8x128xf32>, vector<128x128xf32>, vector<8x128xf32> -> vector<8x128xf32>
    %78 = arith.addf %77, %2 : vector<8x128xf32>
    %79 = math.tanh %78 : vector<8x128xf32>
    %c0_50 = arith.constant 0 : index
    %c0_51 = arith.constant 0 : index
    %80 = vector.load %arg4[%c0_50, %c0_51] : memref<128x128xf32, #tpu.memory_space<vmem>>, vector<128x128xf32>
    %cst_52 = arith.constant dense<0.000000e+00> : vector<8x128xf32>
    %81 = tpu.matmul %79, %80, %cst_52 {dimension_numbers = #tpu.dot_dimension_numbers<[1], [0], [0], [1], [0, 0, 1, 1], [], []>} : vector<8x128xf32>, vector<128x128xf32>, vector<8x128xf32> -> vector<8x128xf32>
    %82 = arith.addf %81, %5 : vector<8x128xf32>
    %cst_53 = arith.constant 5.000000e-01 : f32
    %83 = arith.mulf %cst_53, %64 : f32
    %84 = vector.broadcast %83 : f32 to vector<8x128xf32>
    %85 = arith.mulf %84, %82 : vector<8x128xf32>
    %86 = arith.addf %60, %85 : vector<8x128xf32>
    %c0_54 = arith.constant 0 : index
    %c0_55 = arith.constant 0 : index
    %87 = vector.load %arg2[%c0_54, %c0_55] : memref<128x128xf32, #tpu.memory_space<vmem>>, vector<128x128xf32>
    %cst_56 = arith.constant dense<0.000000e+00> : vector<8x128xf32>
    %88 = tpu.matmul %86, %87, %cst_56 {dimension_numbers = #tpu.dot_dimension_numbers<[1], [0], [0], [1], [0, 0, 1, 1], [], []>} : vector<8x128xf32>, vector<128x128xf32>, vector<8x128xf32> -> vector<8x128xf32>
    %89 = arith.addf %88, %2 : vector<8x128xf32>
    %90 = math.tanh %89 : vector<8x128xf32>
    %c0_57 = arith.constant 0 : index
    %c0_58 = arith.constant 0 : index
    %91 = vector.load %arg4[%c0_57, %c0_58] : memref<128x128xf32, #tpu.memory_space<vmem>>, vector<128x128xf32>
    %cst_59 = arith.constant dense<0.000000e+00> : vector<8x128xf32>
    %92 = tpu.matmul %90, %91, %cst_59 {dimension_numbers = #tpu.dot_dimension_numbers<[1], [0], [0], [1], [0, 0, 1, 1], [], []>} : vector<8x128xf32>, vector<128x128xf32>, vector<8x128xf32> -> vector<8x128xf32>
    %93 = arith.addf %92, %5 : vector<8x128xf32>
    %94 = vector.broadcast %64 : f32 to vector<8x128xf32>
    %95 = arith.mulf %94, %93 : vector<8x128xf32>
    %96 = arith.addf %60, %95 : vector<8x128xf32>
    %c0_60 = arith.constant 0 : index
    %c0_61 = arith.constant 0 : index
    %97 = vector.load %arg2[%c0_60, %c0_61] : memref<128x128xf32, #tpu.memory_space<vmem>>, vector<128x128xf32>
    %cst_62 = arith.constant dense<0.000000e+00> : vector<8x128xf32>
    %98 = tpu.matmul %96, %97, %cst_62 {dimension_numbers = #tpu.dot_dimension_numbers<[1], [0], [0], [1], [0, 0, 1, 1], [], []>} : vector<8x128xf32>, vector<128x128xf32>, vector<8x128xf32> -> vector<8x128xf32>
    %99 = arith.addf %98, %2 : vector<8x128xf32>
    %100 = math.tanh %99 : vector<8x128xf32>
    %c0_63 = arith.constant 0 : index
    %c0_64 = arith.constant 0 : index
    %101 = vector.load %arg4[%c0_63, %c0_64] : memref<128x128xf32, #tpu.memory_space<vmem>>, vector<128x128xf32>
    %cst_65 = arith.constant dense<0.000000e+00> : vector<8x128xf32>
    %102 = tpu.matmul %100, %101, %cst_65 {dimension_numbers = #tpu.dot_dimension_numbers<[1], [0], [0], [1], [0, 0, 1, 1], [], []>} : vector<8x128xf32>, vector<128x128xf32>, vector<8x128xf32> -> vector<8x128xf32>
    %103 = arith.addf %102, %5 : vector<8x128xf32>
    %cst_66 = arith.constant 6.000000e+00 : f32
    %104 = arith.divf %64, %cst_66 : f32
    %cst_67 = arith.constant 2.000000e+00 : f32
    %105 = vector.broadcast %cst_67 : f32 to vector<8x128xf32>
    %106 = arith.mulf %105, %82 : vector<8x128xf32>
    %107 = arith.addf %71, %106 : vector<8x128xf32>
    %cst_68 = arith.constant 2.000000e+00 : f32
    %108 = vector.broadcast %cst_68 : f32 to vector<8x128xf32>
    %109 = arith.mulf %108, %93 : vector<8x128xf32>
    %110 = arith.addf %107, %109 : vector<8x128xf32>
    %111 = arith.addf %110, %103 : vector<8x128xf32>
    %112 = vector.broadcast %104 : f32 to vector<8x128xf32>
    %113 = arith.mulf %112, %111 : vector<8x128xf32>
    %114 = arith.addf %60, %113 : vector<8x128xf32>
    %c0_69 = arith.constant 0 : index
    %c2 = arith.constant 2 : index
    %c0_70 = arith.constant 0 : index
    %115 = vector.load %arg6[%c0_69, %c2, %c0_70] : memref<8x8x128xf32, #tpu.memory_space<vmem>>, vector<8x1x128xf32>
    %116 = vector.shape_cast %115 : vector<8x1x128xf32> to vector<8x128xf32>
    %117 = vector.shape_cast %114 : vector<8x128xf32> to vector<8x1x128xf32>
    tpu.vector_store %arg6[%c0_69, %c2, %c0_70], %117 {strides = array<i32>} : memref<8x8x128xf32, #tpu.memory_space<vmem>>, vector<8x1x128xf32>,
    %c2_71 = arith.constant 2 : index
    %118 = memref.load %arg0[%c2_71] : memref<7xf32, #tpu.memory_space<smem>>
    %c0_72 = arith.constant 0 : index
    %c0_73 = arith.constant 0 : index
    %119 = vector.load %arg2[%c0_72, %c0_73] : memref<128x128xf32, #tpu.memory_space<vmem>>, vector<128x128xf32>
    %cst_74 = arith.constant dense<0.000000e+00> : vector<8x128xf32>
    %120 = tpu.matmul %114, %119, %cst_74 {dimension_numbers = #tpu.dot_dimension_numbers<[1], [0], [0], [1], [0, 0, 1, 1], [], []>} : vector<8x128xf32>, vector<128x128xf32>, vector<8x128xf32> -> vector<8x128xf32>
    %121 = arith.addf %120, %2 : vector<8x128xf32>
    %122 = math.tanh %121 : vector<8x128xf32>
    %c0_75 = arith.constant 0 : index
    %c0_76 = arith.constant 0 : index
    %123 = vector.load %arg4[%c0_75, %c0_76] : memref<128x128xf32, #tpu.memory_space<vmem>>, vector<128x128xf32>
    %cst_77 = arith.constant dense<0.000000e+00> : vector<8x128xf32>
    %124 = tpu.matmul %122, %123, %cst_77 {dimension_numbers = #tpu.dot_dimension_numbers<[1], [0], [0], [1], [0, 0, 1, 1], [], []>} : vector<8x128xf32>, vector<128x128xf32>, vector<8x128xf32> -> vector<8x128xf32>
    %125 = arith.addf %124, %5 : vector<8x128xf32>
    %cst_78 = arith.constant 5.000000e-01 : f32
    %126 = arith.mulf %cst_78, %118 : f32
    %127 = vector.broadcast %126 : f32 to vector<8x128xf32>
    %128 = arith.mulf %127, %125 : vector<8x128xf32>
    %129 = arith.addf %114, %128 : vector<8x128xf32>
    %c0_79 = arith.constant 0 : index
    %c0_80 = arith.constant 0 : index
    %130 = vector.load %arg2[%c0_79, %c0_80] : memref<128x128xf32, #tpu.memory_space<vmem>>, vector<128x128xf32>
    %cst_81 = arith.constant dense<0.000000e+00> : vector<8x128xf32>
    %131 = tpu.matmul %129, %130, %cst_81 {dimension_numbers = #tpu.dot_dimension_numbers<[1], [0], [0], [1], [0, 0, 1, 1], [], []>} : vector<8x128xf32>, vector<128x128xf32>, vector<8x128xf32> -> vector<8x128xf32>
    %132 = arith.addf %131, %2 : vector<8x128xf32>
    %133 = math.tanh %132 : vector<8x128xf32>
    %c0_82 = arith.constant 0 : index
    %c0_83 = arith.constant 0 : index
    %134 = vector.load %arg4[%c0_82, %c0_83] : memref<128x128xf32, #tpu.memory_space<vmem>>, vector<128x128xf32>
    %cst_84 = arith.constant dense<0.000000e+00> : vector<8x128xf32>
    %135 = tpu.matmul %133, %134, %cst_84 {dimension_numbers = #tpu.dot_dimension_numbers<[1], [0], [0], [1], [0, 0, 1, 1], [], []>} : vector<8x128xf32>, vector<128x128xf32>, vector<8x128xf32> -> vector<8x128xf32>
    %136 = arith.addf %135, %5 : vector<8x128xf32>
    %cst_85 = arith.constant 5.000000e-01 : f32
    %137 = arith.mulf %cst_85, %118 : f32
    %138 = vector.broadcast %137 : f32 to vector<8x128xf32>
    %139 = arith.mulf %138, %136 : vector<8x128xf32>
    %140 = arith.addf %114, %139 : vector<8x128xf32>
    %c0_86 = arith.constant 0 : index
    %c0_87 = arith.constant 0 : index
    %141 = vector.load %arg2[%c0_86, %c0_87] : memref<128x128xf32, #tpu.memory_space<vmem>>, vector<128x128xf32>
    %cst_88 = arith.constant dense<0.000000e+00> : vector<8x128xf32>
    %142 = tpu.matmul %140, %141, %cst_88 {dimension_numbers = #tpu.dot_dimension_numbers<[1], [0], [0], [1], [0, 0, 1, 1], [], []>} : vector<8x128xf32>, vector<128x128xf32>, vector<8x128xf32> -> vector<8x128xf32>
    %143 = arith.addf %142, %2 : vector<8x128xf32>
    %144 = math.tanh %143 : vector<8x128xf32>
    %c0_89 = arith.constant 0 : index
    %c0_90 = arith.constant 0 : index
    %145 = vector.load %arg4[%c0_89, %c0_90] : memref<128x128xf32, #tpu.memory_space<vmem>>, vector<128x128xf32>
    %cst_91 = arith.constant dense<0.000000e+00> : vector<8x128xf32>
    %146 = tpu.matmul %144, %145, %cst_91 {dimension_numbers = #tpu.dot_dimension_numbers<[1], [0], [0], [1], [0, 0, 1, 1], [], []>} : vector<8x128xf32>, vector<128x128xf32>, vector<8x128xf32> -> vector<8x128xf32>
    %147 = arith.addf %146, %5 : vector<8x128xf32>
    %148 = vector.broadcast %118 : f32 to vector<8x128xf32>
    %149 = arith.mulf %148, %147 : vector<8x128xf32>
    %150 = arith.addf %114, %149 : vector<8x128xf32>
    %c0_92 = arith.constant 0 : index
    %c0_93 = arith.constant 0 : index
    %151 = vector.load %arg2[%c0_92, %c0_93] : memref<128x128xf32, #tpu.memory_space<vmem>>, vector<128x128xf32>
    %cst_94 = arith.constant dense<0.000000e+00> : vector<8x128xf32>
    %152 = tpu.matmul %150, %151, %cst_94 {dimension_numbers = #tpu.dot_dimension_numbers<[1], [0], [0], [1], [0, 0, 1, 1], [], []>} : vector<8x128xf32>, vector<128x128xf32>, vector<8x128xf32> -> vector<8x128xf32>
    %153 = arith.addf %152, %2 : vector<8x128xf32>
    %154 = math.tanh %153 : vector<8x128xf32>
    %c0_95 = arith.constant 0 : index
    %c0_96 = arith.constant 0 : index
    %155 = vector.load %arg4[%c0_95, %c0_96] : memref<128x128xf32, #tpu.memory_space<vmem>>, vector<128x128xf32>
    %cst_97 = arith.constant dense<0.000000e+00> : vector<8x128xf32>
    %156 = tpu.matmul %154, %155, %cst_97 {dimension_numbers = #tpu.dot_dimension_numbers<[1], [0], [0], [1], [0, 0, 1, 1], [], []>} : vector<8x128xf32>, vector<128x128xf32>, vector<8x128xf32> -> vector<8x128xf32>
    %157 = arith.addf %156, %5 : vector<8x128xf32>
    %cst_98 = arith.constant 6.000000e+00 : f32
    %158 = arith.divf %118, %cst_98 : f32
    %cst_99 = arith.constant 2.000000e+00 : f32
    %159 = vector.broadcast %cst_99 : f32 to vector<8x128xf32>
    %160 = arith.mulf %159, %136 : vector<8x128xf32>
    %161 = arith.addf %125, %160 : vector<8x128xf32>
    %cst_100 = arith.constant 2.000000e+00 : f32
    %162 = vector.broadcast %cst_100 : f32 to vector<8x128xf32>
    %163 = arith.mulf %162, %147 : vector<8x128xf32>
    %164 = arith.addf %161, %163 : vector<8x128xf32>
    %165 = arith.addf %164, %157 : vector<8x128xf32>
    %166 = vector.broadcast %158 : f32 to vector<8x128xf32>
    %167 = arith.mulf %166, %165 : vector<8x128xf32>
    %168 = arith.addf %114, %167 : vector<8x128xf32>
    %c0_101 = arith.constant 0 : index
    %c3 = arith.constant 3 : index
    %c0_102 = arith.constant 0 : index
    %169 = vector.load %arg6[%c0_101, %c3, %c0_102] : memref<8x8x128xf32, #tpu.memory_space<vmem>>, vector<8x1x128xf32>
    %170 = vector.shape_cast %169 : vector<8x1x128xf32> to vector<8x128xf32>
    %171 = vector.shape_cast %168 : vector<8x128xf32> to vector<8x1x128xf32>
    tpu.vector_store %arg6[%c0_101, %c3, %c0_102], %171 {strides = array<i32>} : memref<8x8x128xf32, #tpu.memory_space<vmem>>, vector<8x1x128xf32>,
    %c3_103 = arith.constant 3 : index
    %172 = memref.load %arg0[%c3_103] : memref<7xf32, #tpu.memory_space<smem>>
    %c0_104 = arith.constant 0 : index
    %c0_105 = arith.constant 0 : index
    %173 = vector.load %arg2[%c0_104, %c0_105] : memref<128x128xf32, #tpu.memory_space<vmem>>, vector<128x128xf32>
    %cst_106 = arith.constant dense<0.000000e+00> : vector<8x128xf32>
    %174 = tpu.matmul %168, %173, %cst_106 {dimension_numbers = #tpu.dot_dimension_numbers<[1], [0], [0], [1], [0, 0, 1, 1], [], []>} : vector<8x128xf32>, vector<128x128xf32>, vector<8x128xf32> -> vector<8x128xf32>
    %175 = arith.addf %174, %2 : vector<8x128xf32>
    %176 = math.tanh %175 : vector<8x128xf32>
    %c0_107 = arith.constant 0 : index
    %c0_108 = arith.constant 0 : index
    %177 = vector.load %arg4[%c0_107, %c0_108] : memref<128x128xf32, #tpu.memory_space<vmem>>, vector<128x128xf32>
    %cst_109 = arith.constant dense<0.000000e+00> : vector<8x128xf32>
    %178 = tpu.matmul %176, %177, %cst_109 {dimension_numbers = #tpu.dot_dimension_numbers<[1], [0], [0], [1], [0, 0, 1, 1], [], []>} : vector<8x128xf32>, vector<128x128xf32>, vector<8x128xf32> -> vector<8x128xf32>
    %179 = arith.addf %178, %5 : vector<8x128xf32>
    %cst_110 = arith.constant 5.000000e-01 : f32
    %180 = arith.mulf %cst_110, %172 : f32
    %181 = vector.broadcast %180 : f32 to vector<8x128xf32>
    %182 = arith.mulf %181, %179 : vector<8x128xf32>
    %183 = arith.addf %168, %182 : vector<8x128xf32>
    %c0_111 = arith.constant 0 : index
    %c0_112 = arith.constant 0 : index
    %184 = vector.load %arg2[%c0_111, %c0_112] : memref<128x128xf32, #tpu.memory_space<vmem>>, vector<128x128xf32>
    %cst_113 = arith.constant dense<0.000000e+00> : vector<8x128xf32>
    %185 = tpu.matmul %183, %184, %cst_113 {dimension_numbers = #tpu.dot_dimension_numbers<[1], [0], [0], [1], [0, 0, 1, 1], [], []>} : vector<8x128xf32>, vector<128x128xf32>, vector<8x128xf32> -> vector<8x128xf32>
    %186 = arith.addf %185, %2 : vector<8x128xf32>
    %187 = math.tanh %186 : vector<8x128xf32>
    %c0_114 = arith.constant 0 : index
    %c0_115 = arith.constant 0 : index
    %188 = vector.load %arg4[%c0_114, %c0_115] : memref<128x128xf32, #tpu.memory_space<vmem>>, vector<128x128xf32>
    %cst_116 = arith.constant dense<0.000000e+00> : vector<8x128xf32>
    %189 = tpu.matmul %187, %188, %cst_116 {dimension_numbers = #tpu.dot_dimension_numbers<[1], [0], [0], [1], [0, 0, 1, 1], [], []>} : vector<8x128xf32>, vector<128x128xf32>, vector<8x128xf32> -> vector<8x128xf32>
    %190 = arith.addf %189, %5 : vector<8x128xf32>
    %cst_117 = arith.constant 5.000000e-01 : f32
    %191 = arith.mulf %cst_117, %172 : f32
    %192 = vector.broadcast %191 : f32 to vector<8x128xf32>
    %193 = arith.mulf %192, %190 : vector<8x128xf32>
    %194 = arith.addf %168, %193 : vector<8x128xf32>
    %c0_118 = arith.constant 0 : index
    %c0_119 = arith.constant 0 : index
    %195 = vector.load %arg2[%c0_118, %c0_119] : memref<128x128xf32, #tpu.memory_space<vmem>>, vector<128x128xf32>
    %cst_120 = arith.constant dense<0.000000e+00> : vector<8x128xf32>
    %196 = tpu.matmul %194, %195, %cst_120 {dimension_numbers = #tpu.dot_dimension_numbers<[1], [0], [0], [1], [0, 0, 1, 1], [], []>} : vector<8x128xf32>, vector<128x128xf32>, vector<8x128xf32> -> vector<8x128xf32>
    %197 = arith.addf %196, %2 : vector<8x128xf32>
    %198 = math.tanh %197 : vector<8x128xf32>
    %c0_121 = arith.constant 0 : index
    %c0_122 = arith.constant 0 : index
    %199 = vector.load %arg4[%c0_121, %c0_122] : memref<128x128xf32, #tpu.memory_space<vmem>>, vector<128x128xf32>
    %cst_123 = arith.constant dense<0.000000e+00> : vector<8x128xf32>
    %200 = tpu.matmul %198, %199, %cst_123 {dimension_numbers = #tpu.dot_dimension_numbers<[1], [0], [0], [1], [0, 0, 1, 1], [], []>} : vector<8x128xf32>, vector<128x128xf32>, vector<8x128xf32> -> vector<8x128xf32>
    %201 = arith.addf %200, %5 : vector<8x128xf32>
    %202 = vector.broadcast %172 : f32 to vector<8x128xf32>
    %203 = arith.mulf %202, %201 : vector<8x128xf32>
    %204 = arith.addf %168, %203 : vector<8x128xf32>
    %c0_124 = arith.constant 0 : index
    %c0_125 = arith.constant 0 : index
    %205 = vector.load %arg2[%c0_124, %c0_125] : memref<128x128xf32, #tpu.memory_space<vmem>>, vector<128x128xf32>
    %cst_126 = arith.constant dense<0.000000e+00> : vector<8x128xf32>
    %206 = tpu.matmul %204, %205, %cst_126 {dimension_numbers = #tpu.dot_dimension_numbers<[1], [0], [0], [1], [0, 0, 1, 1], [], []>} : vector<8x128xf32>, vector<128x128xf32>, vector<8x128xf32> -> vector<8x128xf32>
    %207 = arith.addf %206, %2 : vector<8x128xf32>
    %208 = math.tanh %207 : vector<8x128xf32>
    %c0_127 = arith.constant 0 : index
    %c0_128 = arith.constant 0 : index
    %209 = vector.load %arg4[%c0_127, %c0_128] : memref<128x128xf32, #tpu.memory_space<vmem>>, vector<128x128xf32>
    %cst_129 = arith.constant dense<0.000000e+00> : vector<8x128xf32>
    %210 = tpu.matmul %208, %209, %cst_129 {dimension_numbers = #tpu.dot_dimension_numbers<[1], [0], [0], [1], [0, 0, 1, 1], [], []>} : vector<8x128xf32>, vector<128x128xf32>, vector<8x128xf32> -> vector<8x128xf32>
    %211 = arith.addf %210, %5 : vector<8x128xf32>
    %cst_130 = arith.constant 6.000000e+00 : f32
    %212 = arith.divf %172, %cst_130 : f32
    %cst_131 = arith.constant 2.000000e+00 : f32
    %213 = vector.broadcast %cst_131 : f32 to vector<8x128xf32>
    %214 = arith.mulf %213, %190 : vector<8x128xf32>
    %215 = arith.addf %179, %214 : vector<8x128xf32>
    %cst_132 = arith.constant 2.000000e+00 : f32
    %216 = vector.broadcast %cst_132 : f32 to vector<8x128xf32>
    %217 = arith.mulf %216, %201 : vector<8x128xf32>
    %218 = arith.addf %215, %217 : vector<8x128xf32>
    %219 = arith.addf %218, %211 : vector<8x128xf32>
    %220 = vector.broadcast %212 : f32 to vector<8x128xf32>
    %221 = arith.mulf %220, %219 : vector<8x128xf32>
    %222 = arith.addf %168, %221 : vector<8x128xf32>
    %c0_133 = arith.constant 0 : index
    %c4 = arith.constant 4 : index
    %c0_134 = arith.constant 0 : index
    %223 = vector.load %arg6[%c0_133, %c4, %c0_134] : memref<8x8x128xf32, #tpu.memory_space<vmem>>, vector<8x1x128xf32>
    %224 = vector.shape_cast %223 : vector<8x1x128xf32> to vector<8x128xf32>
    %225 = vector.shape_cast %222 : vector<8x128xf32> to vector<8x1x128xf32>
    tpu.vector_store %arg6[%c0_133, %c4, %c0_134], %225 {strides = array<i32>} : memref<8x8x128xf32, #tpu.memory_space<vmem>>, vector<8x1x128xf32>,
    %c4_135 = arith.constant 4 : index
    %226 = memref.load %arg0[%c4_135] : memref<7xf32, #tpu.memory_space<smem>>
    %c0_136 = arith.constant 0 : index
    %c0_137 = arith.constant 0 : index
    %227 = vector.load %arg2[%c0_136, %c0_137] : memref<128x128xf32, #tpu.memory_space<vmem>>, vector<128x128xf32>
    %cst_138 = arith.constant dense<0.000000e+00> : vector<8x128xf32>
    %228 = tpu.matmul %222, %227, %cst_138 {dimension_numbers = #tpu.dot_dimension_numbers<[1], [0], [0], [1], [0, 0, 1, 1], [], []>} : vector<8x128xf32>, vector<128x128xf32>, vector<8x128xf32> -> vector<8x128xf32>
    %229 = arith.addf %228, %2 : vector<8x128xf32>
    %230 = math.tanh %229 : vector<8x128xf32>
    %c0_139 = arith.constant 0 : index
    %c0_140 = arith.constant 0 : index
    %231 = vector.load %arg4[%c0_139, %c0_140] : memref<128x128xf32, #tpu.memory_space<vmem>>, vector<128x128xf32>
    %cst_141 = arith.constant dense<0.000000e+00> : vector<8x128xf32>
    %232 = tpu.matmul %230, %231, %cst_141 {dimension_numbers = #tpu.dot_dimension_numbers<[1], [0], [0], [1], [0, 0, 1, 1], [], []>} : vector<8x128xf32>, vector<128x128xf32>, vector<8x128xf32> -> vector<8x128xf32>
    %233 = arith.addf %232, %5 : vector<8x128xf32>
    %cst_142 = arith.constant 5.000000e-01 : f32
    %234 = arith.mulf %cst_142, %226 : f32
    %235 = vector.broadcast %234 : f32 to vector<8x128xf32>
    %236 = arith.mulf %235, %233 : vector<8x128xf32>
    %237 = arith.addf %222, %236 : vector<8x128xf32>
    %c0_143 = arith.constant 0 : index
    %c0_144 = arith.constant 0 : index
    %238 = vector.load %arg2[%c0_143, %c0_144] : memref<128x128xf32, #tpu.memory_space<vmem>>, vector<128x128xf32>
    %cst_145 = arith.constant dense<0.000000e+00> : vector<8x128xf32>
    %239 = tpu.matmul %237, %238, %cst_145 {dimension_numbers = #tpu.dot_dimension_numbers<[1], [0], [0], [1], [0, 0, 1, 1], [], []>} : vector<8x128xf32>, vector<128x128xf32>, vector<8x128xf32> -> vector<8x128xf32>
    %240 = arith.addf %239, %2 : vector<8x128xf32>
    %241 = math.tanh %240 : vector<8x128xf32>
    %c0_146 = arith.constant 0 : index
    %c0_147 = arith.constant 0 : index
    %242 = vector.load %arg4[%c0_146, %c0_147] : memref<128x128xf32, #tpu.memory_space<vmem>>, vector<128x128xf32>
    %cst_148 = arith.constant dense<0.000000e+00> : vector<8x128xf32>
    %243 = tpu.matmul %241, %242, %cst_148 {dimension_numbers = #tpu.dot_dimension_numbers<[1], [0], [0], [1], [0, 0, 1, 1], [], []>} : vector<8x128xf32>, vector<128x128xf32>, vector<8x128xf32> -> vector<8x128xf32>
    %244 = arith.addf %243, %5 : vector<8x128xf32>
    %cst_149 = arith.constant 5.000000e-01 : f32
    %245 = arith.mulf %cst_149, %226 : f32
    %246 = vector.broadcast %245 : f32 to vector<8x128xf32>
    %247 = arith.mulf %246, %244 : vector<8x128xf32>
    %248 = arith.addf %222, %247 : vector<8x128xf32>
    %c0_150 = arith.constant 0 : index
    %c0_151 = arith.constant 0 : index
    %249 = vector.load %arg2[%c0_150, %c0_151] : memref<128x128xf32, #tpu.memory_space<vmem>>, vector<128x128xf32>
    %cst_152 = arith.constant dense<0.000000e+00> : vector<8x128xf32>
    %250 = tpu.matmul %248, %249, %cst_152 {dimension_numbers = #tpu.dot_dimension_numbers<[1], [0], [0], [1], [0, 0, 1, 1], [], []>} : vector<8x128xf32>, vector<128x128xf32>, vector<8x128xf32> -> vector<8x128xf32>
    %251 = arith.addf %250, %2 : vector<8x128xf32>
    %252 = math.tanh %251 : vector<8x128xf32>
    %c0_153 = arith.constant 0 : index
    %c0_154 = arith.constant 0 : index
    %253 = vector.load %arg4[%c0_153, %c0_154] : memref<128x128xf32, #tpu.memory_space<vmem>>, vector<128x128xf32>
    %cst_155 = arith.constant dense<0.000000e+00> : vector<8x128xf32>
    %254 = tpu.matmul %252, %253, %cst_155 {dimension_numbers = #tpu.dot_dimension_numbers<[1], [0], [0], [1], [0, 0, 1, 1], [], []>} : vector<8x128xf32>, vector<128x128xf32>, vector<8x128xf32> -> vector<8x128xf32>
    %255 = arith.addf %254, %5 : vector<8x128xf32>
    %256 = vector.broadcast %226 : f32 to vector<8x128xf32>
    %257 = arith.mulf %256, %255 : vector<8x128xf32>
    %258 = arith.addf %222, %257 : vector<8x128xf32>
    %c0_156 = arith.constant 0 : index
    %c0_157 = arith.constant 0 : index
    %259 = vector.load %arg2[%c0_156, %c0_157] : memref<128x128xf32, #tpu.memory_space<vmem>>, vector<128x128xf32>
    %cst_158 = arith.constant dense<0.000000e+00> : vector<8x128xf32>
    %260 = tpu.matmul %258, %259, %cst_158 {dimension_numbers = #tpu.dot_dimension_numbers<[1], [0], [0], [1], [0, 0, 1, 1], [], []>} : vector<8x128xf32>, vector<128x128xf32>, vector<8x128xf32> -> vector<8x128xf32>
    %261 = arith.addf %260, %2 : vector<8x128xf32>
    %262 = math.tanh %261 : vector<8x128xf32>
    %c0_159 = arith.constant 0 : index
    %c0_160 = arith.constant 0 : index
    %263 = vector.load %arg4[%c0_159, %c0_160] : memref<128x128xf32, #tpu.memory_space<vmem>>, vector<128x128xf32>
    %cst_161 = arith.constant dense<0.000000e+00> : vector<8x128xf32>
    %264 = tpu.matmul %262, %263, %cst_161 {dimension_numbers = #tpu.dot_dimension_numbers<[1], [0], [0], [1], [0, 0, 1, 1], [], []>} : vector<8x128xf32>, vector<128x128xf32>, vector<8x128xf32> -> vector<8x128xf32>
    %265 = arith.addf %264, %5 : vector<8x128xf32>
    %cst_162 = arith.constant 6.000000e+00 : f32
    %266 = arith.divf %226, %cst_162 : f32
    %cst_163 = arith.constant 2.000000e+00 : f32
    %267 = vector.broadcast %cst_163 : f32 to vector<8x128xf32>
    %268 = arith.mulf %267, %244 : vector<8x128xf32>
    %269 = arith.addf %233, %268 : vector<8x128xf32>
    %cst_164 = arith.constant 2.000000e+00 : f32
    %270 = vector.broadcast %cst_164 : f32 to vector<8x128xf32>
    %271 = arith.mulf %270, %255 : vector<8x128xf32>
    %272 = arith.addf %269, %271 : vector<8x128xf32>
    %273 = arith.addf %272, %265 : vector<8x128xf32>
    %274 = vector.broadcast %266 : f32 to vector<8x128xf32>
    %275 = arith.mulf %274, %273 : vector<8x128xf32>
    %276 = arith.addf %222, %275 : vector<8x128xf32>
    %c0_165 = arith.constant 0 : index
    %c5 = arith.constant 5 : index
    %c0_166 = arith.constant 0 : index
    %277 = vector.load %arg6[%c0_165, %c5, %c0_166] : memref<8x8x128xf32, #tpu.memory_space<vmem>>, vector<8x1x128xf32>
    %278 = vector.shape_cast %277 : vector<8x1x128xf32> to vector<8x128xf32>
    %279 = vector.shape_cast %276 : vector<8x128xf32> to vector<8x1x128xf32>
    tpu.vector_store %arg6[%c0_165, %c5, %c0_166], %279 {strides = array<i32>} : memref<8x8x128xf32, #tpu.memory_space<vmem>>, vector<8x1x128xf32>,
    %c5_167 = arith.constant 5 : index
    %280 = memref.load %arg0[%c5_167] : memref<7xf32, #tpu.memory_space<smem>>
    %c0_168 = arith.constant 0 : index
    %c0_169 = arith.constant 0 : index
    %281 = vector.load %arg2[%c0_168, %c0_169] : memref<128x128xf32, #tpu.memory_space<vmem>>, vector<128x128xf32>
    %cst_170 = arith.constant dense<0.000000e+00> : vector<8x128xf32>
    %282 = tpu.matmul %276, %281, %cst_170 {dimension_numbers = #tpu.dot_dimension_numbers<[1], [0], [0], [1], [0, 0, 1, 1], [], []>} : vector<8x128xf32>, vector<128x128xf32>, vector<8x128xf32> -> vector<8x128xf32>
    %283 = arith.addf %282, %2 : vector<8x128xf32>
    %284 = math.tanh %283 : vector<8x128xf32>
    %c0_171 = arith.constant 0 : index
    %c0_172 = arith.constant 0 : index
    %285 = vector.load %arg4[%c0_171, %c0_172] : memref<128x128xf32, #tpu.memory_space<vmem>>, vector<128x128xf32>
    %cst_173 = arith.constant dense<0.000000e+00> : vector<8x128xf32>
    %286 = tpu.matmul %284, %285, %cst_173 {dimension_numbers = #tpu.dot_dimension_numbers<[1], [0], [0], [1], [0, 0, 1, 1], [], []>} : vector<8x128xf32>, vector<128x128xf32>, vector<8x128xf32> -> vector<8x128xf32>
    %287 = arith.addf %286, %5 : vector<8x128xf32>
    %cst_174 = arith.constant 5.000000e-01 : f32
    %288 = arith.mulf %cst_174, %280 : f32
    %289 = vector.broadcast %288 : f32 to vector<8x128xf32>
    %290 = arith.mulf %289, %287 : vector<8x128xf32>
    %291 = arith.addf %276, %290 : vector<8x128xf32>
    %c0_175 = arith.constant 0 : index
    %c0_176 = arith.constant 0 : index
    %292 = vector.load %arg2[%c0_175, %c0_176] : memref<128x128xf32, #tpu.memory_space<vmem>>, vector<128x128xf32>
    %cst_177 = arith.constant dense<0.000000e+00> : vector<8x128xf32>
    %293 = tpu.matmul %291, %292, %cst_177 {dimension_numbers = #tpu.dot_dimension_numbers<[1], [0], [0], [1], [0, 0, 1, 1], [], []>} : vector<8x128xf32>, vector<128x128xf32>, vector<8x128xf32> -> vector<8x128xf32>
    %294 = arith.addf %293, %2 : vector<8x128xf32>
    %295 = math.tanh %294 : vector<8x128xf32>
    %c0_178 = arith.constant 0 : index
    %c0_179 = arith.constant 0 : index
    %296 = vector.load %arg4[%c0_178, %c0_179] : memref<128x128xf32, #tpu.memory_space<vmem>>, vector<128x128xf32>
    %cst_180 = arith.constant dense<0.000000e+00> : vector<8x128xf32>
    %297 = tpu.matmul %295, %296, %cst_180 {dimension_numbers = #tpu.dot_dimension_numbers<[1], [0], [0], [1], [0, 0, 1, 1], [], []>} : vector<8x128xf32>, vector<128x128xf32>, vector<8x128xf32> -> vector<8x128xf32>
    %298 = arith.addf %297, %5 : vector<8x128xf32>
    %cst_181 = arith.constant 5.000000e-01 : f32
    %299 = arith.mulf %cst_181, %280 : f32
    %300 = vector.broadcast %299 : f32 to vector<8x128xf32>
    %301 = arith.mulf %300, %298 : vector<8x128xf32>
    %302 = arith.addf %276, %301 : vector<8x128xf32>
    %c0_182 = arith.constant 0 : index
    %c0_183 = arith.constant 0 : index
    %303 = vector.load %arg2[%c0_182, %c0_183] : memref<128x128xf32, #tpu.memory_space<vmem>>, vector<128x128xf32>
    %cst_184 = arith.constant dense<0.000000e+00> : vector<8x128xf32>
    %304 = tpu.matmul %302, %303, %cst_184 {dimension_numbers = #tpu.dot_dimension_numbers<[1], [0], [0], [1], [0, 0, 1, 1], [], []>} : vector<8x128xf32>, vector<128x128xf32>, vector<8x128xf32> -> vector<8x128xf32>
    %305 = arith.addf %304, %2 : vector<8x128xf32>
    %306 = math.tanh %305 : vector<8x128xf32>
    %c0_185 = arith.constant 0 : index
    %c0_186 = arith.constant 0 : index
    %307 = vector.load %arg4[%c0_185, %c0_186] : memref<128x128xf32, #tpu.memory_space<vmem>>, vector<128x128xf32>
    %cst_187 = arith.constant dense<0.000000e+00> : vector<8x128xf32>
    %308 = tpu.matmul %306, %307, %cst_187 {dimension_numbers = #tpu.dot_dimension_numbers<[1], [0], [0], [1], [0, 0, 1, 1], [], []>} : vector<8x128xf32>, vector<128x128xf32>, vector<8x128xf32> -> vector<8x128xf32>
    %309 = arith.addf %308, %5 : vector<8x128xf32>
    %310 = vector.broadcast %280 : f32 to vector<8x128xf32>
    %311 = arith.mulf %310, %309 : vector<8x128xf32>
    %312 = arith.addf %276, %311 : vector<8x128xf32>
    %c0_188 = arith.constant 0 : index
    %c0_189 = arith.constant 0 : index
    %313 = vector.load %arg2[%c0_188, %c0_189] : memref<128x128xf32, #tpu.memory_space<vmem>>, vector<128x128xf32>
    %cst_190 = arith.constant dense<0.000000e+00> : vector<8x128xf32>
    %314 = tpu.matmul %312, %313, %cst_190 {dimension_numbers = #tpu.dot_dimension_numbers<[1], [0], [0], [1], [0, 0, 1, 1], [], []>} : vector<8x128xf32>, vector<128x128xf32>, vector<8x128xf32> -> vector<8x128xf32>
    %315 = arith.addf %314, %2 : vector<8x128xf32>
    %316 = math.tanh %315 : vector<8x128xf32>
    %c0_191 = arith.constant 0 : index
    %c0_192 = arith.constant 0 : index
    %317 = vector.load %arg4[%c0_191, %c0_192] : memref<128x128xf32, #tpu.memory_space<vmem>>, vector<128x128xf32>
    %cst_193 = arith.constant dense<0.000000e+00> : vector<8x128xf32>
    %318 = tpu.matmul %316, %317, %cst_193 {dimension_numbers = #tpu.dot_dimension_numbers<[1], [0], [0], [1], [0, 0, 1, 1], [], []>} : vector<8x128xf32>, vector<128x128xf32>, vector<8x128xf32> -> vector<8x128xf32>
    %319 = arith.addf %318, %5 : vector<8x128xf32>
    %cst_194 = arith.constant 6.000000e+00 : f32
    %320 = arith.divf %280, %cst_194 : f32
    %cst_195 = arith.constant 2.000000e+00 : f32
    %321 = vector.broadcast %cst_195 : f32 to vector<8x128xf32>
    %322 = arith.mulf %321, %298 : vector<8x128xf32>
    %323 = arith.addf %287, %322 : vector<8x128xf32>
    %cst_196 = arith.constant 2.000000e+00 : f32
    %324 = vector.broadcast %cst_196 : f32 to vector<8x128xf32>
    %325 = arith.mulf %324, %309 : vector<8x128xf32>
    %326 = arith.addf %323, %325 : vector<8x128xf32>
    %327 = arith.addf %326, %319 : vector<8x128xf32>
    %328 = vector.broadcast %320 : f32 to vector<8x128xf32>
    %329 = arith.mulf %328, %327 : vector<8x128xf32>
    %330 = arith.addf %276, %329 : vector<8x128xf32>
    %c0_197 = arith.constant 0 : index
    %c6 = arith.constant 6 : index
    %c0_198 = arith.constant 0 : index
    %331 = vector.load %arg6[%c0_197, %c6, %c0_198] : memref<8x8x128xf32, #tpu.memory_space<vmem>>, vector<8x1x128xf32>
    %332 = vector.shape_cast %331 : vector<8x1x128xf32> to vector<8x128xf32>
    %333 = vector.shape_cast %330 : vector<8x128xf32> to vector<8x1x128xf32>
    tpu.vector_store %arg6[%c0_197, %c6, %c0_198], %333 {strides = array<i32>} : memref<8x8x128xf32, #tpu.memory_space<vmem>>, vector<8x1x128xf32>,
    %c6_199 = arith.constant 6 : index
    %334 = memref.load %arg0[%c6_199] : memref<7xf32, #tpu.memory_space<smem>>
    %c0_200 = arith.constant 0 : index
    %c0_201 = arith.constant 0 : index
    %335 = vector.load %arg2[%c0_200, %c0_201] : memref<128x128xf32, #tpu.memory_space<vmem>>, vector<128x128xf32>
    %cst_202 = arith.constant dense<0.000000e+00> : vector<8x128xf32>
    %336 = tpu.matmul %330, %335, %cst_202 {dimension_numbers = #tpu.dot_dimension_numbers<[1], [0], [0], [1], [0, 0, 1, 1], [], []>} : vector<8x128xf32>, vector<128x128xf32>, vector<8x128xf32> -> vector<8x128xf32>
    %337 = arith.addf %336, %2 : vector<8x128xf32>
    %338 = math.tanh %337 : vector<8x128xf32>
    %c0_203 = arith.constant 0 : index
    %c0_204 = arith.constant 0 : index
    %339 = vector.load %arg4[%c0_203, %c0_204] : memref<128x128xf32, #tpu.memory_space<vmem>>, vector<128x128xf32>
    %cst_205 = arith.constant dense<0.000000e+00> : vector<8x128xf32>
    %340 = tpu.matmul %338, %339, %cst_205 {dimension_numbers = #tpu.dot_dimension_numbers<[1], [0], [0], [1], [0, 0, 1, 1], [], []>} : vector<8x128xf32>, vector<128x128xf32>, vector<8x128xf32> -> vector<8x128xf32>
    %341 = arith.addf %340, %5 : vector<8x128xf32>
    %cst_206 = arith.constant 5.000000e-01 : f32
    %342 = arith.mulf %cst_206, %334 : f32
    %343 = vector.broadcast %342 : f32 to vector<8x128xf32>
    %344 = arith.mulf %343, %341 : vector<8x128xf32>
    %345 = arith.addf %330, %344 : vector<8x128xf32>
    %c0_207 = arith.constant 0 : index
    %c0_208 = arith.constant 0 : index
    %346 = vector.load %arg2[%c0_207, %c0_208] : memref<128x128xf32, #tpu.memory_space<vmem>>, vector<128x128xf32>
    %cst_209 = arith.constant dense<0.000000e+00> : vector<8x128xf32>
    %347 = tpu.matmul %345, %346, %cst_209 {dimension_numbers = #tpu.dot_dimension_numbers<[1], [0], [0], [1], [0, 0, 1, 1], [], []>} : vector<8x128xf32>, vector<128x128xf32>, vector<8x128xf32> -> vector<8x128xf32>
    %348 = arith.addf %347, %2 : vector<8x128xf32>
    %349 = math.tanh %348 : vector<8x128xf32>
    %c0_210 = arith.constant 0 : index
    %c0_211 = arith.constant 0 : index
    %350 = vector.load %arg4[%c0_210, %c0_211] : memref<128x128xf32, #tpu.memory_space<vmem>>, vector<128x128xf32>
    %cst_212 = arith.constant dense<0.000000e+00> : vector<8x128xf32>
    %351 = tpu.matmul %349, %350, %cst_212 {dimension_numbers = #tpu.dot_dimension_numbers<[1], [0], [0], [1], [0, 0, 1, 1], [], []>} : vector<8x128xf32>, vector<128x128xf32>, vector<8x128xf32> -> vector<8x128xf32>
    %352 = arith.addf %351, %5 : vector<8x128xf32>
    %cst_213 = arith.constant 5.000000e-01 : f32
    %353 = arith.mulf %cst_213, %334 : f32
    %354 = vector.broadcast %353 : f32 to vector<8x128xf32>
    %355 = arith.mulf %354, %352 : vector<8x128xf32>
    %356 = arith.addf %330, %355 : vector<8x128xf32>
    %c0_214 = arith.constant 0 : index
    %c0_215 = arith.constant 0 : index
    %357 = vector.load %arg2[%c0_214, %c0_215] : memref<128x128xf32, #tpu.memory_space<vmem>>, vector<128x128xf32>
    %cst_216 = arith.constant dense<0.000000e+00> : vector<8x128xf32>
    %358 = tpu.matmul %356, %357, %cst_216 {dimension_numbers = #tpu.dot_dimension_numbers<[1], [0], [0], [1], [0, 0, 1, 1], [], []>} : vector<8x128xf32>, vector<128x128xf32>, vector<8x128xf32> -> vector<8x128xf32>
    %359 = arith.addf %358, %2 : vector<8x128xf32>
    %360 = math.tanh %359 : vector<8x128xf32>
    %c0_217 = arith.constant 0 : index
    %c0_218 = arith.constant 0 : index
    %361 = vector.load %arg4[%c0_217, %c0_218] : memref<128x128xf32, #tpu.memory_space<vmem>>, vector<128x128xf32>
    %cst_219 = arith.constant dense<0.000000e+00> : vector<8x128xf32>
    %362 = tpu.matmul %360, %361, %cst_219 {dimension_numbers = #tpu.dot_dimension_numbers<[1], [0], [0], [1], [0, 0, 1, 1], [], []>} : vector<8x128xf32>, vector<128x128xf32>, vector<8x128xf32> -> vector<8x128xf32>
    %363 = arith.addf %362, %5 : vector<8x128xf32>
    %364 = vector.broadcast %334 : f32 to vector<8x128xf32>
    %365 = arith.mulf %364, %363 : vector<8x128xf32>
    %366 = arith.addf %330, %365 : vector<8x128xf32>
    %c0_220 = arith.constant 0 : index
    %c0_221 = arith.constant 0 : index
    %367 = vector.load %arg2[%c0_220, %c0_221] : memref<128x128xf32, #tpu.memory_space<vmem>>, vector<128x128xf32>
    %cst_222 = arith.constant dense<0.000000e+00> : vector<8x128xf32>
    %368 = tpu.matmul %366, %367, %cst_222 {dimension_numbers = #tpu.dot_dimension_numbers<[1], [0], [0], [1], [0, 0, 1, 1], [], []>} : vector<8x128xf32>, vector<128x128xf32>, vector<8x128xf32> -> vector<8x128xf32>
    %369 = arith.addf %368, %2 : vector<8x128xf32>
    %370 = math.tanh %369 : vector<8x128xf32>
    %c0_223 = arith.constant 0 : index
    %c0_224 = arith.constant 0 : index
    %371 = vector.load %arg4[%c0_223, %c0_224] : memref<128x128xf32, #tpu.memory_space<vmem>>, vector<128x128xf32>
    %cst_225 = arith.constant dense<0.000000e+00> : vector<8x128xf32>
    %372 = tpu.matmul %370, %371, %cst_225 {dimension_numbers = #tpu.dot_dimension_numbers<[1], [0], [0], [1], [0, 0, 1, 1], [], []>} : vector<8x128xf32>, vector<128x128xf32>, vector<8x128xf32> -> vector<8x128xf32>
    %373 = arith.addf %372, %5 : vector<8x128xf32>
    %cst_226 = arith.constant 6.000000e+00 : f32
    %374 = arith.divf %334, %cst_226 : f32
    %cst_227 = arith.constant 2.000000e+00 : f32
    %375 = vector.broadcast %cst_227 : f32 to vector<8x128xf32>
    %376 = arith.mulf %375, %352 : vector<8x128xf32>
    %377 = arith.addf %341, %376 : vector<8x128xf32>
    %cst_228 = arith.constant 2.000000e+00 : f32
    %378 = vector.broadcast %cst_228 : f32 to vector<8x128xf32>
    %379 = arith.mulf %378, %363 : vector<8x128xf32>
    %380 = arith.addf %377, %379 : vector<8x128xf32>
    %381 = arith.addf %380, %373 : vector<8x128xf32>
    %382 = vector.broadcast %374 : f32 to vector<8x128xf32>
    %383 = arith.mulf %382, %381 : vector<8x128xf32>
    %384 = arith.addf %330, %383 : vector<8x128xf32>
    %c0_229 = arith.constant 0 : index
    %c7 = arith.constant 7 : index
    %c0_230 = arith.constant 0 : index
    %385 = vector.load %arg6[%c0_229, %c7, %c0_230] : memref<8x8x128xf32, #tpu.memory_space<vmem>>, vector<8x1x128xf32>
    %386 = vector.shape_cast %385 : vector<8x1x128xf32> to vector<8x128xf32>
    %387 = vector.shape_cast %384 : vector<8x128xf32> to vector<8x1x128xf32>
    tpu.vector_store %arg6[%c0_229, %c7, %c0_230], %387 {strides = array<i32>} : memref<8x8x128xf32, #tpu.memory_space<vmem>>, vector<8x1x128xf32>,
    return
  }
}

</mosaic_0001>

<bundles_post_ra>
// kernel: neural_ode_forward.1
= control target key start
LH: loop header
LB: loop body
LE: loop exit
PB: predicated region body
PF: predicated region fallthrough
CT: control target
= control target key end

     0   :  { %11 = vsyncpa [#allocation3], 0  ;;  %s11318_s0 = inlined_call_operand.vmem [shape: f32[7], index: 0, kind: input, shape index: {}]   ;;  %s11319_s1 = inlined_call_operand.vmem [shape: f32[8,128], index: 1, kind: input, shape index: {}]   ;;  %s11320_s2 = inlined_call_operand.vmem [shape: f32[128,128], index: 2, kind: input, shape index: {}]   ;;  %s11321_s3 = inlined_call_operand.vmem [shape: f32[1,128], index: 3, kind: input, shape index: {}]   ;;  %s11322_s4 = inlined_call_operand.vmem [shape: f32[128,128], index: 4, kind: input, shape index: {}]   ;;  %s11323_s5 = inlined_call_operand.vmem [shape: f32[1,128], index: 5, kind: input, shape index: {}]   ;;  %s11324_s6 = inlined_call_operand.vmem [shape: f32[8,8,128], index: 6, kind: output, shape index: {}]  }
   0x1   :  { %s18_s23 = sshll.u32 %s11318_s0, 4  ;;  %s19_s23 = int_to_ptr.vmem [resolvable:$true] %s18_s23 }
   0x2   :  { %s9266_s24 = scalar_lea.vmem %s19_s23, 16  ;;  %p9271_p1 = scmp.lt.s32.totalorder %s19_s23, %s19_s23 }
   0x3   :  { %p9267_p0 = scmp.ne.s32.totalorder %s19_s23, %s9266_s24  ;;  %p9272_p2 = scmp.lt.s32.totalorder %s9266_s24, %s9266_s24 }
   0x5   :  { %p9273_p3 = por %p9272_p2, %p9271_p1 }
   0x7   :  { %p9274_p4 = pnand %p9273_p3, %p9267_p0 }
   0x9   :  { %9277 = shalt.err (!%p9274_p4)
}
   0xa   :  { %s9280_s25 = smov [#allocation2]  }
   0xb   :  { %21 = dma.vmem_to_smem %s19_s23, 16, %s9280_s25, [#allocation3]  }
   0xc   :  { %9278 = dma.done.wait [#allocation3], 16  }
   0xd   :  { %9279 = vsyncadd [#allocation3], 4294967280 }
   0xe   :  { %35 = sfence }
   0xf   :  { %v118_v0 = vld [vmem:[%s11320_s2] sm:$0xff]  ;;  %v119_v1 = vld [vmem:[%s11320_s2 + $0x8] sm:$0xff]  ;;  %v120_v2 = vld [vmem:[%s11320_s2 + $0x10] sm:$0xff]  ;;  %v56_v3 = vlaneseq  ;;  %v9281_v4 = vmov 0.0|0.0   ;;  %vm9282_vm0 = vmmov 0   ;;  %v9283_v7 = vmov 0.0  }
  0x10   :  { %7855 = vmatprep.subr.bf16.mxu0 %v9281_v4  ;;  %v9333_v5 = vpack.c.bf16 %v119_v1, %v118_v0  ;;  %v121_v6 = vld [vmem:[%s11320_s2 + $0x18] sm:$0xff]  ;;  %5927 = vmatprep.mubr.msk.f32.mxu0 %vm9282_vm0, %v9283_v7  ;;  %v9284_v8 = vmov 1966171168   ;;  %v122_v12 = vld [vmem:[%s11320_s2 + $0x20] sm:$0xff]  ;;  %v123_v13 = vld [vmem:[%s11320_s2 + $0x28] sm:$0xff]  ;;  %s9572_s7 = sld [smem:[#allocation2]] }
  0x11   :  { %v54_v9 = vunpack.c.l.s4 %v9284_v8  ;;  %v57_v10 = vshrl.u32 %v56_v3, 7  ;;  %7879 = vmatprep.subr.bf16.mxu1 %v9281_v4  ;;  %5962 = vmatprep.mubr.msk.f32.mxu1 %vm9282_vm0, %v9283_v7  ;;  %v9344_v11 = vpack.c.bf16 %v121_v6, %v120_v2  ;;  %v9356_v15 = vld [vmem:[%s11319_s1] sm:$0xff]  ;;  %v206_v19 = vld [vmem:[%s11322_s4 + $0x8] sm:$0xff]  ;;  %v207_v20 = vld [vmem:[%s11322_s4 + $0x10] sm:$0xff]  ;;  %v9375_v22 = vpack.c.bf16 %v123_v13, %v122_v12  ;;  %s9778_s27 = sld [smem:[#allocation2 + $0x1]] }
  0x12   :  { %7857 = vmatpush3.bf16.msra.mxu0 %v9333_v5  ;;  %v205_v16 = vld [vmem:[%s11322_s4] sm:$0xff]  ;;  %v52_v17 = vcombine.high %v9356_v15, %v9356_v15  ;;  %v208_v21 = vld [vmem:[%s11322_s4 + $0x18] sm:$0xff]  ;;  %v124_v24 = vld [vmem:[%s11320_s2 + $0x30] sm:$0xff] }
  0x13   :  { %7858 = vmatprep.subr.bf16.mxu0 %v9281_v4  ;;  %v55_v14 = vunpack.c.0.s8 %v54_v9  ;;  %v9377_v23 = vpack.c.bf16 %v206_v19, %v205_v16  ;;  %v125_v25 = vld [vmem:[%s11320_s2 + $0x38] sm:$0xff]  ;;  %v9390_v28 = vpack.c.bf16 %v208_v21, %v207_v20  ;;  %v209_v33 = vld [vmem:[%s11322_s4 + $0x20] sm:$0xff]  ;;  %v210_v34 = vld [vmem:[%s11322_s4 + $0x28] sm:$0xff] }
  0x14   :  { %v9408_v35 = vpack.c.bf16 %v125_v25, %v124_v24  ;;  %v126_v36 = vld [vmem:[%s11320_s2 + $0x40] sm:$0xff]  ;;  %v127_v37 = vld [vmem:[%s11320_s2 + $0x48] sm:$0xff]  ;;  %v9426_v42 = vpack.c.bf16 %v210_v34, %v209_v33  ;;  %v211_v45 = vld [vmem:[%s11322_s4 + $0x30] sm:$0xff] }
  0x15   :  { %v9363_v18 = vsub.s32 %v55_v14, %v57_v10  ;;  %7881 = vmatpush3.bf16.msra.mxu1 %v9377_v23  ;;  %v212_v46 = vld [vmem:[%s11322_s4 + $0x38] sm:$0xff]  ;;  %v9442_v47 = vpack.c.bf16 %v127_v37, %v126_v36  ;;  %v128_v48 = vld [vmem:[%s11320_s2 + $0x50] sm:$0xff]  ;;  %v213_v51 = vld [vmem:[%s11322_s4 + $0x40] sm:$0xff] }
  0x16   :  { %7860 = vmatpush3.bf16.msra.mxu0 %v9344_v11  ;;  %7882 = vmatprep.subr.bf16.mxu1 %v9281_v4  ;;  %v129_v49 = vld [vmem:[%s11320_s2 + $0x58] sm:$0xff]  ;;  %v9458_v50 = vpack.c.bf16 %v212_v46, %v211_v45  ;;  %v214_v52 = vld [vmem:[%s11322_s4 + $0x48] sm:$0xff]  ;;  %v130_v54 = vld [vmem:[%s11320_s2 + $0x60] sm:$0xff]  ;;  %s291_s8 = smul.f32 0.5, %s9572_s7 }
  0x17   :  { %7861 = vmatprep.subr.bf16.mxu0 %v9281_v4  ;;  %v59_v26 = vrot.slane %v9356_v15, %v9363_v18  ;;  %v66_v27 = vrot.slane %v52_v17, %v9363_v18  ;;  %v9468_v53 = vpack.c.bf16 %v129_v49, %v128_v48  ;;  %v131_v55 = vld [vmem:[%s11320_s2 + $0x68] sm:$0xff]  ;;  %v9478_v56 = vpack.c.bf16 %v214_v52, %v213_v51  ;;  %v132_v58 = vld [vmem:[%s11320_s2 + $0x70] sm:$0xff]  ;;  %v133_v59 = vld [vmem:[%s11320_s2 + $0x78] sm:$0xff]  ;;  %s725_s11 = smul.f32 0.16666667, %s9572_s7 }
  0x18   :  { %v9482_v57 = vpack.c.bf16 %v131_v55, %v130_v54  ;;  %v9494_v60 = vpack.c.bf16 %v133_v59, %v132_v58  ;;  %v215_v61 = vld [vmem:[%s11322_s4 + $0x50] sm:$0xff]  ;;  %v216_v62 = vld [vmem:[%s11322_s4 + $0x58] sm:$0xff]  ;;  %v217_v0 = vld [vmem:[%s11322_s4 + $0x60] sm:$0xff]  ;;  %v292_v19 = vstv %s291_s8  ;;  %s974_s28 = smul.f32 0.5, %s9778_s27  ;;  %s10110_s8 = sld [smem:[#allocation2 + $0x2]] }
  0x19   :  { %v67_v29 = vcombine.high %v59_v26, %v59_v26  ;;  %v68_v30 = vcombine.high %v66_v27, %v66_v27  ;;  %v75_v31 = vrot.slane %v59_v26, %v9363_v18  ;;  %v82_v32 = vrot.slane %v66_v27, %v9363_v18  ;;  %4905 = vst.sshfl [vmem:[%s11324_s6] sm:$0x1 pattern:$0x73625140] %v59_v26  ;;  %v218_v1 = vld [vmem:[%s11322_s4 + $0x68] sm:$0xff]  ;;  %v219_v3 = vld [vmem:[%s11322_s4 + $0x70] sm:$0xff]  ;;  %v220_v6 = vld [vmem:[%s11322_s4 + $0x78] sm:$0xff] }
  0x1a   :  { %4907 = vst.sshfl [vmem:[%s11324_s6 + $0x20] sm:$0x1 pattern:$0x73625140] %v66_v27  ;;  %7863 = vmatpush3.bf16.msra.mxu0 %v9375_v22  ;;  %7884 = vmatpush3.bf16.msra.mxu1 %v9390_v28  ;;  %v9524_v63 = vpack.c.bf16 %v216_v62, %v215_v61  ;;  %v9534_v2 = vpack.c.bf16 %v218_v1, %v217_v0  ;;  %v9551_v9 = vld [vmem:[%s11321_s3] ss:$0 sm:$0xff] }
  0x1b   :  { %7864 = vmatprep.subr.bf16.mxu0 %v9281_v4  ;;  %v89_v38 = vrot.slane %v67_v29, %v9363_v18  ;;  %v96_v39 = vrot.slane %v68_v30, %v9363_v18  ;;  %v97_v40 = vcombine.high %v75_v31, %v75_v31  ;;  %v98_v41 = vcombine.high %v82_v32, %v82_v32  ;;  %v9578_v16 = vld [vmem:[%s11323_s5] ss:$0 sm:$0xff]  ;;  %s1408_s30 = smul.f32 0.16666667, %s9778_s27 }
  0x1c   :  { %4906 = vst.sshfl [vmem:[%s11324_s6 + $0x8] sm:$0x1 pattern:$0x73625140] %v67_v29  ;;  %7885 = vmatprep.subr.bf16.mxu1 %v9281_v4  ;;  %v9543_v8 = vpack.c.bf16 %v220_v6, %v219_v3  ;;  %v731_v3 = vstv %s725_s11  ;;  %s10653_s11 = sld [smem:[#allocation2 + $0x4]] }
  0x1d   :  { %4908 = vst.sshfl [vmem:[%s11324_s6 + $0x28] sm:$0x1 pattern:$0x73625140] %v68_v30  ;;  %v99_v43 = vcombine.high %v89_v38, %v89_v38  ;;  %v100_v44 = vcombine.high %v96_v39, %v96_v39  ;;  %111 = vst [vmem:[%s11324_s6 + $0x10] sm:$0x1] %v97_v40 }
  0x1e   :  { %115 = vst [vmem:[%s11324_s6 + $0x30] sm:$0x1] %v98_v41  ;;  %7866 = vmatpush3.bf16.msra.mxu0 %v9408_v35  ;;  %7887 = vmatpush3.bf16.msra.mxu1 %v9426_v42  ;;  %s1657_s9 = smul.f32 0.5, %s10110_s8 }
  0x1f   :  { %7867 = vmatprep.subr.bf16.mxu0 %v9281_v4  ;;  %112 = vst [vmem:[%s11324_s6 + $0x18] sm:$0x1] %v99_v43  ;;  %116 = vst [vmem:[%s11324_s6 + $0x38] sm:$0x1] %v100_v44  ;;  %7888 = vmatprep.subr.bf16.mxu1 %v9281_v4  ;;  %v579_v44 = vstv %s9572_s7  ;;  %s2091_s14 = smul.f32 0.16666667, %s10110_s8 }
  0x22   :  { %7869 = vmatpush3.bf16.msra.mxu0 %v9442_v47  ;;  %7890 = vmatpush3.bf16.msra.mxu1 %v9458_v50  ;;  %s3023_s12 = smul.f32 0.5, %s10653_s11 }
  0x23   :  { %7870 = vmatprep.subr.bf16.mxu0 %v9281_v4  ;;  %7891 = vmatprep.subr.bf16.mxu1 %v9281_v4 }
  0x26   :  { %7872 = vmatpush3.bf16.msra.mxu0 %v9468_v53  ;;  %7893 = vmatpush3.bf16.msra.mxu1 %v9478_v56 }
  0x27   :  { %7873 = vmatprep.subr.bf16.mxu0 %v9281_v4  ;;  %7894 = vmatprep.subr.bf16.mxu1 %v9281_v4 }
  0x2a   :  { %7875 = vmatpush3.bf16.msra.mxu0 %v9482_v57  ;;  %7896 = vmatpush3.bf16.msra.mxu1 %v9524_v63 }
  0x2b   :  { %7876 = vmatprep.subr.bf16.mxu0 %v9281_v4  ;;  %7897 = vmatprep.subr.bf16.mxu1 %v9281_v4 }
  0x2e   :  { %7878 = vmatpush3.bf16.msra.mxu0 %v9494_v60  ;;  %7899 = vmatpush3.bf16.msra.mxu1 %v9534_v2 }
  0x2f   :  { %7903 = vmatprep.subr.bf16.mxu0 %v9281_v4  ;;  %7900 = vmatprep.subr.bf16.mxu1 %v9281_v4 }
  0x31   :  { %5928 = vmatmul.mubr.f32.vlgmr.msra.gmra.mrb[0].mxu0 %v9356_v15 }
  0x32   :  { %7905 = vmatpush3.bf16.msra.mxu0 %v9333_v5  ;;  %5997 = vmatprep.mubr.msk.f32.mxu0 %vm9282_vm0, %v9283_v7 }
  0x33   :  { %7906 = vmatprep.subr.bf16.mxu0 %v9281_v4  ;;  %7902 = vmatpush3.bf16.msra.mxu1 %v9543_v8 }
  0x34   :  { %7927 = vmatprep.subr.bf16.mxu1 %v9281_v4 }
  0x36   :  { %7908 = vmatpush3.bf16.msra.mxu0 %v9344_v11 }
  0x37   :  { %7909 = vmatprep.subr.bf16.mxu0 %v9281_v4 }
  0x3a   :  { %7911 = vmatpush3.bf16.msra.mxu0 %v9375_v22 }
  0x3b   :  { %7912 = vmatprep.subr.bf16.mxu0 %v9281_v4 }
  0x3e   :  { %7914 = vmatpush3.bf16.msra.mxu0 %v9408_v35 }
  0x3f   :  { %7915 = vmatprep.subr.bf16.mxu0 %v9281_v4 }
  0x42   :  { %7917 = vmatpush3.bf16.msra.mxu0 %v9442_v47 }
  0x43   :  { %7918 = vmatprep.subr.bf16.mxu0 %v9281_v4 }
  0x46   :  { %7920 = vmatpush3.bf16.msra.mxu0 %v9468_v53 }
  0x47   :  { %7921 = vmatprep.subr.bf16.mxu0 %v9281_v4 }
  0x4a   :  { %7923 = vmatpush3.bf16.msra.mxu0 %v9482_v57 }
  0x4b   :  { %7924 = vmatprep.subr.bf16.mxu0 %v9281_v4 }
  0x4e   :  { %7926 = vmatpush3.bf16.msra.mxu0 %v9494_v60 }
  0x4f   :  { %7951 = vmatprep.subr.bf16.mxu0 %v9281_v4 }
 0x104   :  { %v200_v10 = vpop.f32.mrb[0].mxu0 }
 0x105   :  { %v201_v12 = vadd.f32 %v9551_v9, %v200_v10  ;;  %v5929_v13 = vpop.f32.mrb[1].mxu0 }
 0x107   :  { %9205 = vtanh.f32 %v201_v12 }
 0x111   :  { %v9206_v14 = vpop.eup %9205 }
 0x112   :  { %5963 = vmatmul.mubr.f32.vlgmr.msra.gmra.mrb[0].mxu1 %v9206_v14 }
 0x113   :  { %7929 = vmatpush3.bf16.msra.mxu1 %v9377_v23  ;;  %6032 = vmatprep.mubr.msk.f32.mxu1 %vm9282_vm0, %v9283_v7 }
 0x114   :  { %7930 = vmatprep.subr.bf16.mxu1 %v9281_v4 }
 0x117   :  { %7932 = vmatpush3.bf16.msra.mxu1 %v9390_v28 }
 0x118   :  { %7933 = vmatprep.subr.bf16.mxu1 %v9281_v4 }
 0x11b   :  { %7935 = vmatpush3.bf16.msra.mxu1 %v9426_v42 }
 0x11c   :  { %7936 = vmatprep.subr.bf16.mxu1 %v9281_v4 }
 0x11f   :  { %7938 = vmatpush3.bf16.msra.mxu1 %v9458_v50 }
 0x120   :  { %7939 = vmatprep.subr.bf16.mxu1 %v9281_v4 }
 0x123   :  { %7941 = vmatpush3.bf16.msra.mxu1 %v9478_v56 }
 0x124   :  { %7942 = vmatprep.subr.bf16.mxu1 %v9281_v4 }
 0x127   :  { %7944 = vmatpush3.bf16.msra.mxu1 %v9524_v63 }
 0x128   :  { %7945 = vmatprep.subr.bf16.mxu1 %v9281_v4 }
 0x12b   :  { %7947 = vmatpush3.bf16.msra.mxu1 %v9534_v2 }
 0x12c   :  { %7948 = vmatprep.subr.bf16.mxu1 %v9281_v4 }
 0x12f   :  { %7950 = vmatpush3.bf16.msra.mxu1 %v9543_v8 }
 0x130   :  { %7975 = vmatprep.subr.bf16.mxu1 %v9281_v4 }
 0x1e5   :  { %v287_v17 = vpop.f32.mrb[0].mxu1 }
 0x1e6   :  { %v9581_v20 = vadd.f32 %v9578_v16, %v287_v17  ;;  %v5964_v21 = vpop.f32.mrb[1].mxu1 }
 0x1e8   :  { %v293_v24 = vmul.f32 %v292_v19, %v9581_v20 }
 0x1ea   :  { %v294_v25 = vadd.f32 %v293_v24, %v9356_v15 }
 0x1ec   :  { %5998 = vmatmul.mubr.f32.vlgmr.msra.gmra.mrb[2].mxu0 %v294_v25 }
 0x1ed   :  { %7953 = vmatpush3.bf16.msra.mxu0 %v9333_v5  ;;  %6067 = vmatprep.mubr.msk.f32.mxu0 %vm9282_vm0, %v9283_v7 }
 0x1ee   :  { %7954 = vmatprep.subr.bf16.mxu0 %v9281_v4 }
 0x1f1   :  { %7956 = vmatpush3.bf16.msra.mxu0 %v9344_v11 }
 0x1f2   :  { %7957 = vmatprep.subr.bf16.mxu0 %v9281_v4 }
 0x1f5   :  { %7959 = vmatpush3.bf16.msra.mxu0 %v9375_v22 }
 0x1f6   :  { %7960 = vmatprep.subr.bf16.mxu0 %v9281_v4 }
 0x1f9   :  { %7962 = vmatpush3.bf16.msra.mxu0 %v9408_v35 }
 0x1fa   :  { %7963 = vmatprep.subr.bf16.mxu0 %v9281_v4 }
 0x1fd   :  { %7965 = vmatpush3.bf16.msra.mxu0 %v9442_v47 }
 0x1fe   :  { %7966 = vmatprep.subr.bf16.mxu0 %v9281_v4 }
 0x201   :  { %7968 = vmatpush3.bf16.msra.mxu0 %v9468_v53 }
 0x202   :  { %7969 = vmatprep.subr.bf16.mxu0 %v9281_v4 }
 0x205   :  { %7971 = vmatpush3.bf16.msra.mxu0 %v9482_v57 }
 0x206   :  { %7972 = vmatprep.subr.bf16.mxu0 %v9281_v4 }
 0x209   :  { %7974 = vmatpush3.bf16.msra.mxu0 %v9494_v60 }
 0x20a   :  { %7999 = vmatprep.subr.bf16.mxu0 %v9281_v4 }
 0x2bf   :  { %v361_v26 = vpop.f32.mrb[2].mxu0 }
 0x2c0   :  { %v362_v27 = vadd.f32 %v9551_v9, %v361_v26  ;;  %v5999_v29 = vpop.f32.mrb[3].mxu0 }
 0x2c2   :  { %9207 = vtanh.f32 %v362_v27 }
 0x2cc   :  { %v9208_v30 = vpop.eup %9207 }
 0x2cd   :  { %6033 = vmatmul.mubr.f32.vlgmr.msra.gmra.mrb[2].mxu1 %v9208_v30 }
 0x2ce   :  { %7977 = vmatpush3.bf16.msra.mxu1 %v9377_v23  ;;  %6102 = vmatprep.mubr.msk.f32.mxu1 %vm9282_vm0, %v9283_v7 }
 0x2cf   :  { %7978 = vmatprep.subr.bf16.mxu1 %v9281_v4 }
 0x2d2   :  { %7980 = vmatpush3.bf16.msra.mxu1 %v9390_v28 }
 0x2d3   :  { %7981 = vmatprep.subr.bf16.mxu1 %v9281_v4 }
 0x2d6   :  { %7983 = vmatpush3.bf16.msra.mxu1 %v9426_v42 }
 0x2d7   :  { %7984 = vmatprep.subr.bf16.mxu1 %v9281_v4 }
 0x2da   :  { %7986 = vmatpush3.bf16.msra.mxu1 %v9458_v50 }
 0x2db   :  { %7987 = vmatprep.subr.bf16.mxu1 %v9281_v4 }
 0x2de   :  { %7989 = vmatpush3.bf16.msra.mxu1 %v9478_v56 }
 0x2df   :  { %7990 = vmatprep.subr.bf16.mxu1 %v9281_v4 }
 0x2e2   :  { %7992 = vmatpush3.bf16.msra.mxu1 %v9524_v63 }
 0x2e3   :  { %7993 = vmatprep.subr.bf16.mxu1 %v9281_v4 }
 0x2e6   :  { %7995 = vmatpush3.bf16.msra.mxu1 %v9534_v2 }
 0x2e7   :  { %7996 = vmatprep.subr.bf16.mxu1 %v9281_v4 }
 0x2ea   :  { %7998 = vmatpush3.bf16.msra.mxu1 %v9543_v8 }
 0x2eb   :  { %8023 = vmatprep.subr.bf16.mxu1 %v9281_v4 }
 0x3a0   :  { %v432_v31 = vpop.f32.mrb[2].mxu1 }
 0x3a1   :  { %v433_v32 = vadd.f32 %v9578_v16, %v432_v31  ;;  %v6034_v33 = vpop.f32.mrb[3].mxu1 }
 0x3a3   :  { %v436_v34 = vmul.f32 %v433_v32, %v292_v19  ;;  %v726_v41 = vmul.f32 2.0, %v433_v32 }
 0x3a5   :  { %v437_v36 = vadd.f32 %v436_v34, %v9356_v15  ;;  %v727_v48 = vadd.f32 %v726_v41, %v9581_v20 }
 0x3a7   :  { %6068 = vmatmul.mubr.f32.vlgmr.msra.gmra.mrb[4].mxu0 %v437_v36 }
 0x3a8   :  { %8001 = vmatpush3.bf16.msra.mxu0 %v9333_v5  ;;  %6137 = vmatprep.mubr.msk.f32.mxu0 %vm9282_vm0, %v9283_v7 }
 0x3a9   :  { %8002 = vmatprep.subr.bf16.mxu0 %v9281_v4 }
 0x3ac   :  { %8004 = vmatpush3.bf16.msra.mxu0 %v9344_v11 }
 0x3ad   :  { %8005 = vmatprep.subr.bf16.mxu0 %v9281_v4 }
 0x3b0   :  { %8007 = vmatpush3.bf16.msra.mxu0 %v9375_v22 }
 0x3b1   :  { %8008 = vmatprep.subr.bf16.mxu0 %v9281_v4 }
 0x3b4   :  { %8010 = vmatpush3.bf16.msra.mxu0 %v9408_v35 }
 0x3b5   :  { %8011 = vmatprep.subr.bf16.mxu0 %v9281_v4 }
 0x3b8   :  { %8013 = vmatpush3.bf16.msra.mxu0 %v9442_v47 }
 0x3b9   :  { %8014 = vmatprep.subr.bf16.mxu0 %v9281_v4 }
 0x3bc   :  { %8016 = vmatpush3.bf16.msra.mxu0 %v9468_v53 }
 0x3bd   :  { %8017 = vmatprep.subr.bf16.mxu0 %v9281_v4 }
 0x3c0   :  { %8019 = vmatpush3.bf16.msra.mxu0 %v9482_v57 }
 0x3c1   :  { %8020 = vmatprep.subr.bf16.mxu0 %v9281_v4 }
 0x3c4   :  { %8022 = vmatpush3.bf16.msra.mxu0 %v9494_v60 }
 0x3c5   :  { %8047 = vmatprep.subr.bf16.mxu0 %v9281_v4 }
 0x47a   :  { %v504_v37 = vpop.f32.mrb[4].mxu0 }
 0x47b   :  { %v505_v38 = vadd.f32 %v9551_v9, %v504_v37  ;;  %v6069_v39 = vpop.f32.mrb[5].mxu0  ;;  %v975_v37 = vstv %s974_s28 }
 0x47d   :  { %9209 = vtanh.f32 %v505_v38 }
 0x487   :  { %v9210_v40 = vpop.eup %9209 }
 0x488   :  { %6103 = vmatmul.mubr.f32.vlgmr.msra.gmra.mrb[4].mxu1 %v9210_v40 }
 0x489   :  { %8025 = vmatpush3.bf16.msra.mxu1 %v9377_v23  ;;  %6172 = vmatprep.mubr.msk.f32.mxu1 %vm9282_vm0, %v9283_v7 }
 0x48a   :  { %8026 = vmatprep.subr.bf16.mxu1 %v9281_v4 }
 0x48d   :  { %8028 = vmatpush3.bf16.msra.mxu1 %v9390_v28 }
 0x48e   :  { %8029 = vmatprep.subr.bf16.mxu1 %v9281_v4 }
 0x491   :  { %8031 = vmatpush3.bf16.msra.mxu1 %v9426_v42 }
 0x492   :  { %8032 = vmatprep.subr.bf16.mxu1 %v9281_v4 }
 0x495   :  { %8034 = vmatpush3.bf16.msra.mxu1 %v9458_v50 }
 0x496   :  { %8035 = vmatprep.subr.bf16.mxu1 %v9281_v4 }
 0x499   :  { %8037 = vmatpush3.bf16.msra.mxu1 %v9478_v56 }
 0x49a   :  { %8038 = vmatprep.subr.bf16.mxu1 %v9281_v4 }
 0x49d   :  { %8040 = vmatpush3.bf16.msra.mxu1 %v9524_v63 }
 0x49e   :  { %8041 = vmatprep.subr.bf16.mxu1 %v9281_v4 }
 0x4a1   :  { %8043 = vmatpush3.bf16.msra.mxu1 %v9534_v2 }
 0x4a2   :  { %8044 = vmatprep.subr.bf16.mxu1 %v9281_v4 }
 0x4a5   :  { %8046 = vmatpush3.bf16.msra.mxu1 %v9543_v8 }
 0x4a6   :  { %8071 = vmatprep.subr.bf16.mxu1 %v9281_v4 }
 0x55b   :  { %v575_v43 = vpop.f32.mrb[4].mxu1 }
 0x55c   :  { %v576_v45 = vadd.f32 %v9578_v16, %v575_v43  ;;  %v6104_v46 = vpop.f32.mrb[5].mxu1 }
 0x55e   :  { %v580_v49 = vmul.f32 %v579_v44, %v576_v45  ;;  %v728_v51 = vmul.f32 2.0, %v576_v45 }
 0x560   :  { %v581_v52 = vadd.f32 %v580_v49, %v9356_v15  ;;  %v729_v54 = vadd.f32 %v728_v51, %v727_v48 }
 0x562   :  { %6138 = vmatmul.mubr.f32.vlgmr.msra.gmra.mrb[6].mxu0 %v581_v52 }
 0x563   :  { %8049 = vmatpush3.bf16.msra.mxu0 %v9333_v5  ;;  %6207 = vmatprep.mubr.msk.f32.mxu0 %vm9282_vm0, %v9283_v7 }
 0x564   :  { %8050 = vmatprep.subr.bf16.mxu0 %v9281_v4 }
 0x567   :  { %8052 = vmatpush3.bf16.msra.mxu0 %v9344_v11 }
 0x568   :  { %8053 = vmatprep.subr.bf16.mxu0 %v9281_v4 }
 0x56b   :  { %8055 = vmatpush3.bf16.msra.mxu0 %v9375_v22 }
 0x56c   :  { %8056 = vmatprep.subr.bf16.mxu0 %v9281_v4 }
 0x56f   :  { %8058 = vmatpush3.bf16.msra.mxu0 %v9408_v35 }
 0x570   :  { %8059 = vmatprep.subr.bf16.mxu0 %v9281_v4 }
 0x573   :  { %8061 = vmatpush3.bf16.msra.mxu0 %v9442_v47 }
 0x574   :  { %8062 = vmatprep.subr.bf16.mxu0 %v9281_v4 }
 0x577   :  { %8064 = vmatpush3.bf16.msra.mxu0 %v9468_v53 }
 0x578   :  { %8065 = vmatprep.subr.bf16.mxu0 %v9281_v4 }
 0x57b   :  { %8067 = vmatpush3.bf16.msra.mxu0 %v9482_v57 }
 0x57c   :  { %8068 = vmatprep.subr.bf16.mxu0 %v9281_v4 }
 0x57f   :  { %8070 = vmatpush3.bf16.msra.mxu0 %v9494_v60 }
 0x580   :  { %8095 = vmatprep.subr.bf16.mxu0 %v9281_v4 }
 0x635   :  { %v648_v55 = vpop.f32.mrb[6].mxu0 }
 0x636   :  { %v649_v58 = vadd.f32 %v9551_v9, %v648_v55  ;;  %v6139_v59 = vpop.f32.mrb[7].mxu0  ;;  %v1486_v55 = vld [vmem:[%s11320_s2 + $0x10] sm:$0xff] }
 0x637   :  { %v1487_v59 = vld [vmem:[%s11320_s2 + $0x18] sm:$0xff] }
 0x638   :  { %9211 = vtanh.f32 %v649_v58 }
 0x642   :  { %v9212_v61 = vpop.eup %9211 }
 0x643   :  { %6173 = vmatmul.mubr.f32.vlgmr.msra.gmra.mrb[6].mxu1 %v9212_v61  ;;  %v9885_v61 = vpack.c.bf16 %v1487_v59, %v1486_v55 }
 0x644   :  { %8073 = vmatpush3.bf16.msra.mxu1 %v9377_v23  ;;  %6242 = vmatprep.mubr.msk.f32.mxu1 %vm9282_vm0, %v9283_v7 }
 0x645   :  { %8074 = vmatprep.subr.bf16.mxu1 %v9281_v4 }
 0x648   :  { %8076 = vmatpush3.bf16.msra.mxu1 %v9390_v28 }
 0x649   :  { %8077 = vmatprep.subr.bf16.mxu1 %v9281_v4 }
 0x64c   :  { %8079 = vmatpush3.bf16.msra.mxu1 %v9426_v42 }
 0x64d   :  { %8080 = vmatprep.subr.bf16.mxu1 %v9281_v4 }
 0x650   :  { %8082 = vmatpush3.bf16.msra.mxu1 %v9458_v50 }
 0x651   :  { %8083 = vmatprep.subr.bf16.mxu1 %v9281_v4 }
 0x654   :  { %8085 = vmatpush3.bf16.msra.mxu1 %v9478_v56 }
 0x655   :  { %8086 = vmatprep.subr.bf16.mxu1 %v9281_v4 }
 0x658   :  { %8088 = vmatpush3.bf16.msra.mxu1 %v9524_v63 }
 0x659   :  { %8089 = vmatprep.subr.bf16.mxu1 %v9281_v4 }
 0x65c   :  { %8091 = vmatpush3.bf16.msra.mxu1 %v9534_v2 }
 0x65d   :  { %8092 = vmatprep.subr.bf16.mxu1 %v9281_v4 }
 0x660   :  { %8094 = vmatpush3.bf16.msra.mxu1 %v9543_v8 }
 0x661   :  { %8119 = vmatprep.subr.bf16.mxu1 %v9281_v4 }
 0x716   :  { %v719_v62 = vpop.f32.mrb[6].mxu1 }
 0x717   :  { %v720_v0 = vadd.f32 %v9578_v16, %v719_v62  ;;  %v6174_v1 = vpop.f32.mrb[7].mxu1  ;;  %v1488_v62 = vld [vmem:[%s11320_s2 + $0x20] sm:$0xff] }
 0x719   :  { %v730_v6 = vadd.f32 %v729_v54, %v720_v0  ;;  %v1489_v0 = vld [vmem:[%s11320_s2 + $0x28] sm:$0xff] }
 0x71a   :  { %v9895_v1 = vpack.c.bf16 %v1489_v0, %v1488_v62  ;;  %v1581_v62 = vld [vmem:[%s11322_s4 + $0x50] sm:$0xff]  ;;  %v1582_v0 = vld [vmem:[%s11322_s4 + $0x58] sm:$0xff] }
 0x71b   :  { %v732_v10 = vmul.f32 %v731_v3, %v730_v6  ;;  %v1490_v3 = vld [vmem:[%s11320_s2 + $0x30] sm:$0xff]  ;;  %v1491_v6 = vld [vmem:[%s11320_s2 + $0x38] sm:$0xff] }
 0x71d   :  { %v9705_v12 = vadd.f32 %v732_v10, %v9356_v15  ;;  %v9905_v10 = vpack.c.bf16 %v1491_v6, %v1490_v3  ;;  %v10067_v3 = vpack.c.bf16 %v1582_v0, %v1581_v62  ;;  %v1583_v6 = vld [vmem:[%s11322_s4 + $0x60] sm:$0xff] }
 0x71f   :  { %v735_v13 = vcombine.high %v9705_v12, %v9705_v12  ;;  %v742_v14 = vrot.slane %v9705_v12, %v9363_v18  ;;  %6208 = vmatmul.mubr.f32.vlgmr.msra.gmra.mrb[8].mxu0 %v9705_v12 }
 0x720   :  { %8097 = vmatpush3.bf16.msra.mxu0 %v9333_v5  ;;  %6277 = vmatprep.mubr.msk.f32.mxu0 %vm9282_vm0, %v9283_v7 }
 0x721   :  { %v749_v17 = vrot.slane %v735_v13, %v9363_v18  ;;  %v750_v19 = vcombine.high %v742_v14, %v742_v14  ;;  %v758_v20 = vrot.slane %v742_v14, %v9363_v18  ;;  %4909 = vst.sshfl [vmem:[%s11324_s6 + $0x1] sm:$0x1 pattern:$0x73625140] %v742_v14  ;;  %8098 = vmatprep.subr.bf16.mxu0 %v9281_v4  ;;  %v1492_v13 = vld [vmem:[%s11320_s2 + $0x40] sm:$0xff]  ;;  %v1493_v14 = vld [vmem:[%s11320_s2 + $0x48] sm:$0xff] }
 0x723   :  { %v751_v15 = vcombine.high %v749_v17, %v749_v17  ;;  %v765_v21 = vrot.slane %v749_v17, %v9363_v18  ;;  %v772_v24 = vrot.slane %v750_v19, %v9363_v18  ;;  %v780_v25 = vcombine.high %v758_v20, %v758_v20  ;;  %4910 = vst.sshfl [vmem:[%s11324_s6 + $0x9] sm:$0x1 pattern:$0x73625140] %v750_v19  ;;  %v1494_v19 = vld [vmem:[%s11320_s2 + $0x50] sm:$0xff]  ;;  %v1495_v20 = vld [vmem:[%s11320_s2 + $0x58] sm:$0xff] }
 0x724   :  { %4911 = vst.sshfl [vmem:[%s11324_s6 + $0x21] sm:$0x1 pattern:$0x73625140] %v749_v17  ;;  %8100 = vmatpush3.bf16.msra.mxu0 %v9344_v11  ;;  %v9915_v17 = vpack.c.bf16 %v1493_v14, %v1492_v13  ;;  %v1584_v13 = vld [vmem:[%s11322_s4 + $0x68] sm:$0xff] }
 0x725   :  { %v779_v26 = vrot.slane %v751_v15, %v9363_v18  ;;  %v781_v27 = vcombine.high %v765_v21, %v765_v21  ;;  %v782_v29 = vcombine.high %v772_v24, %v772_v24  ;;  %794 = vst [vmem:[%s11324_s6 + $0x11] sm:$0x1] %v780_v25  ;;  %4912 = vst.sshfl [vmem:[%s11324_s6 + $0x29] sm:$0x1 pattern:$0x73625140] %v751_v15  ;;  %8101 = vmatprep.subr.bf16.mxu0 %v9281_v4 }
 0x726   :  { %v9925_v15 = vpack.c.bf16 %v1495_v20, %v1494_v19  ;;  %v10077_v14 = vpack.c.bf16 %v1584_v13, %v1583_v6  ;;  %v1585_v19 = vld [vmem:[%s11322_s4 + $0x70] sm:$0xff]  ;;  %v1586_v20 = vld [vmem:[%s11322_s4 + $0x78] sm:$0xff] }
 0x727   :  { %v783_v30 = vcombine.high %v779_v26, %v779_v26  ;;  %795 = vst [vmem:[%s11324_s6 + $0x19] sm:$0x1] %v782_v29  ;;  %798 = vst [vmem:[%s11324_s6 + $0x31] sm:$0x1] %v781_v27  ;;  %v1496_v27 = vld [vmem:[%s11320_s2 + $0x60] sm:$0xff]  ;;  %v1497_v29 = vld [vmem:[%s11320_s2 + $0x68] sm:$0xff] }
 0x728   :  { %8103 = vmatpush3.bf16.msra.mxu0 %v9375_v22 }
 0x729   :  { %799 = vst [vmem:[%s11324_s6 + $0x39] sm:$0x1] %v783_v30  ;;  %8104 = vmatprep.subr.bf16.mxu0 %v9281_v4  ;;  %v9939_v30 = vpack.c.bf16 %v1497_v29, %v1496_v27  ;;  %v1658_v29 = vstv %s1657_s9 }
 0x72c   :  { %8106 = vmatpush3.bf16.msra.mxu0 %v9408_v35 }
 0x72d   :  { %8107 = vmatprep.subr.bf16.mxu0 %v9281_v4 }
 0x730   :  { %8109 = vmatpush3.bf16.msra.mxu0 %v9442_v47 }
 0x731   :  { %8110 = vmatprep.subr.bf16.mxu0 %v9281_v4 }
 0x734   :  { %8112 = vmatpush3.bf16.msra.mxu0 %v9468_v53 }
 0x735   :  { %8113 = vmatprep.subr.bf16.mxu0 %v9281_v4 }
 0x738   :  { %8115 = vmatpush3.bf16.msra.mxu0 %v9482_v57 }
 0x739   :  { %8116 = vmatprep.subr.bf16.mxu0 %v9281_v4 }
 0x73c   :  { %8118 = vmatpush3.bf16.msra.mxu0 %v9494_v60 }
 0x73d   :  { %8143 = vmatprep.subr.bf16.mxu0 %v9281_v4 }
 0x7f2   :  { %v883_v31 = vpop.f32.mrb[8].mxu0 }
 0x7f3   :  { %v884_v32 = vadd.f32 %v9551_v9, %v883_v31  ;;  %v6209_v33 = vpop.f32.mrb[9].mxu0  ;;  %v1498_v31 = vld [vmem:[%s11320_s2 + $0x70] sm:$0xff] }
 0x7f5   :  { %9213 = vtanh.f32 %v884_v32  ;;  %v1499_v32 = vld [vmem:[%s11320_s2 + $0x78] sm:$0xff] }
 0x7f6   :  { %v9949_v33 = vpack.c.bf16 %v1499_v32, %v1498_v31 }
 0x7ff   :  { %v9214_v34 = vpop.eup %9213 }
 0x800   :  { %6243 = vmatmul.mubr.f32.vlgmr.msra.gmra.mrb[8].mxu1 %v9214_v34  ;;  %v1571_v34 = vld [vmem:[%s11322_s4] sm:$0xff] }
 0x801   :  { %8121 = vmatpush3.bf16.msra.mxu1 %v9377_v23  ;;  %6312 = vmatprep.mubr.msk.f32.mxu1 %vm9282_vm0, %v9283_v7 }
 0x802   :  { %8122 = vmatprep.subr.bf16.mxu1 %v9281_v4 }
 0x805   :  { %8124 = vmatpush3.bf16.msra.mxu1 %v9390_v28 }
 0x806   :  { %8125 = vmatprep.subr.bf16.mxu1 %v9281_v4 }
 0x809   :  { %8127 = vmatpush3.bf16.msra.mxu1 %v9426_v42 }
 0x80a   :  { %8128 = vmatprep.subr.bf16.mxu1 %v9281_v4 }
 0x80d   :  { %8130 = vmatpush3.bf16.msra.mxu1 %v9458_v50 }
 0x80e   :  { %8131 = vmatprep.subr.bf16.mxu1 %v9281_v4 }
 0x811   :  { %8133 = vmatpush3.bf16.msra.mxu1 %v9478_v56 }
 0x812   :  { %8134 = vmatprep.subr.bf16.mxu1 %v9281_v4 }
 0x815   :  { %8136 = vmatpush3.bf16.msra.mxu1 %v9524_v63 }
 0x816   :  { %8137 = vmatprep.subr.bf16.mxu1 %v9281_v4 }
 0x819   :  { %8139 = vmatpush3.bf16.msra.mxu1 %v9534_v2 }
 0x81a   :  { %8140 = vmatprep.subr.bf16.mxu1 %v9281_v4 }
 0x81d   :  { %8142 = vmatpush3.bf16.msra.mxu1 %v9543_v8 }
 0x81e   :  { %8167 = vmatprep.subr.bf16.mxu1 %v9281_v4 }
 0x8d3   :  { %v970_v36 = vpop.f32.mrb[8].mxu1 }
 0x8d4   :  { %v9782_v38 = vadd.f32 %v9578_v16, %v970_v36  ;;  %v6244_v39 = vpop.f32.mrb[9].mxu1  ;;  %v1572_v36 = vld [vmem:[%s11322_s4 + $0x8] sm:$0xff] }
 0x8d5   :  { %v1574_v39 = vld [vmem:[%s11322_s4 + $0x18] sm:$0xff] }
 0x8d6   :  { %v976_v40 = vmul.f32 %v975_v37, %v9782_v38 }
 0x8d8   :  { %v977_v41 = vadd.f32 %v976_v40, %v9705_v12 }
 0x8da   :  { %6278 = vmatmul.mubr.f32.vlgmr.msra.gmra.mrb[10].mxu0 %v977_v41  ;;  %v1575_v41 = vld [vmem:[%s11322_s4 + $0x20] sm:$0xff] }
 0x8db   :  { %8145 = vmatpush3.bf16.msra.mxu0 %v9333_v5  ;;  %6347 = vmatprep.mubr.msk.f32.mxu0 %vm9282_vm0, %v9283_v7 }
 0x8dc   :  { %8146 = vmatprep.subr.bf16.mxu0 %v9281_v4 }
 0x8df   :  { %8148 = vmatpush3.bf16.msra.mxu0 %v9344_v11 }
 0x8e0   :  { %8149 = vmatprep.subr.bf16.mxu0 %v9281_v4 }
 0x8e3   :  { %8151 = vmatpush3.bf16.msra.mxu0 %v9375_v22 }
 0x8e4   :  { %8152 = vmatprep.subr.bf16.mxu0 %v9281_v4 }
 0x8e7   :  { %8154 = vmatpush3.bf16.msra.mxu0 %v9408_v35 }
 0x8e8   :  { %8155 = vmatprep.subr.bf16.mxu0 %v9281_v4 }
 0x8eb   :  { %8157 = vmatpush3.bf16.msra.mxu0 %v9442_v47 }
 0x8ec   :  { %8158 = vmatprep.subr.bf16.mxu0 %v9281_v4 }
 0x8ef   :  { %8160 = vmatpush3.bf16.msra.mxu0 %v9468_v53 }
 0x8f0   :  { %8161 = vmatprep.subr.bf16.mxu0 %v9281_v4 }
 0x8f3   :  { %8163 = vmatpush3.bf16.msra.mxu0 %v9482_v57 }
 0x8f4   :  { %8164 = vmatprep.subr.bf16.mxu0 %v9281_v4 }
 0x8f7   :  { %8166 = vmatpush3.bf16.msra.mxu0 %v9494_v60 }
 0x8f8   :  { %8191 = vmatprep.subr.bf16.mxu0 %v9281_v4 }
 0x9ad   :  { %v1044_v43 = vpop.f32.mrb[10].mxu0 }
 0x9ae   :  { %v1045_v44 = vadd.f32 %v9551_v9, %v1044_v43  ;;  %v6279_v45 = vpop.f32.mrb[11].mxu0  ;;  %v1576_v43 = vld [vmem:[%s11322_s4 + $0x28] sm:$0xff] }
 0x9af   :  { %v1577_v45 = vld [vmem:[%s11322_s4 + $0x30] sm:$0xff] }
 0x9b0   :  { %9215 = vtanh.f32 %v1045_v44  ;;  %v9978_v44 = vpack.c.bf16 %v1576_v43, %v1575_v41 }
 0x9ba   :  { %v9216_v46 = vpop.eup %9215 }
 0x9bb   :  { %6313 = vmatmul.mubr.f32.vlgmr.msra.gmra.mrb[10].mxu1 %v9216_v46  ;;  %v1578_v46 = vld [vmem:[%s11322_s4 + $0x38] sm:$0xff] }
 0x9bc   :  { %8169 = vmatpush3.bf16.msra.mxu1 %v9377_v23  ;;  %6382 = vmatprep.mubr.msk.f32.mxu1 %vm9282_vm0, %v9283_v7 }
 0x9bd   :  { %8170 = vmatprep.subr.bf16.mxu1 %v9281_v4 }
 0x9c0   :  { %8172 = vmatpush3.bf16.msra.mxu1 %v9390_v28 }
 0x9c1   :  { %8173 = vmatprep.subr.bf16.mxu1 %v9281_v4 }
 0x9c4   :  { %8175 = vmatpush3.bf16.msra.mxu1 %v9426_v42 }
 0x9c5   :  { %8176 = vmatprep.subr.bf16.mxu1 %v9281_v4 }
 0x9c8   :  { %8178 = vmatpush3.bf16.msra.mxu1 %v9458_v50 }
 0x9c9   :  { %8179 = vmatprep.subr.bf16.mxu1 %v9281_v4 }
 0x9cc   :  { %8181 = vmatpush3.bf16.msra.mxu1 %v9478_v56 }
 0x9cd   :  { %8182 = vmatprep.subr.bf16.mxu1 %v9281_v4 }
 0x9d0   :  { %8184 = vmatpush3.bf16.msra.mxu1 %v9524_v63 }
 0x9d1   :  { %8185 = vmatprep.subr.bf16.mxu1 %v9281_v4 }
 0x9d4   :  { %8187 = vmatpush3.bf16.msra.mxu1 %v9534_v2 }
 0x9d5   :  { %8188 = vmatprep.subr.bf16.mxu1 %v9281_v4 }
 0x9d8   :  { %8190 = vmatpush3.bf16.msra.mxu1 %v9543_v8 }
 0x9d9   :  { %8215 = vmatprep.subr.bf16.mxu1 %v9281_v4 }
 0xa8e   :  { %v1115_v48 = vpop.f32.mrb[10].mxu1 }
 0xa8f   :  { %v1116_v49 = vadd.f32 %v9578_v16, %v1115_v48  ;;  %v6314_v51 = vpop.f32.mrb[11].mxu1  ;;  %v9988_v48 = vpack.c.bf16 %v1578_v46, %v1577_v45  ;;  %v10163_v46 = vld [vmem:[%s11323_s5] ss:$0 sm:$0xff] }
 0xa90   :  { %v1580_v51 = vld [vmem:[%s11322_s4 + $0x48] sm:$0xff] }
 0xa91   :  { %v1119_v52 = vmul.f32 %v1116_v49, %v975_v37  ;;  %v1573_v37 = vld [vmem:[%s11322_s4 + $0x10] sm:$0xff] }
 0xa92   :  { %v9968_v40 = vpack.c.bf16 %v1574_v39, %v1573_v37  ;;  %v10139_v37 = vld [vmem:[%s11321_s3] ss:$0 sm:$0xff] }
 0xa93   :  { %v1120_v54 = vadd.f32 %v1119_v52, %v9705_v12 }
 0xa95   :  { %6348 = vmatmul.mubr.f32.vlgmr.msra.gmra.mrb[12].mxu0 %v1120_v54 }
 0xa96   :  { %8193 = vmatpush3.bf16.msra.mxu0 %v9333_v5  ;;  %6417 = vmatprep.mubr.msk.f32.mxu0 %vm9282_vm0, %v9283_v7 }
 0xa97   :  { %8194 = vmatprep.subr.bf16.mxu0 %v9281_v4 }
 0xa9a   :  { %8196 = vmatpush3.bf16.msra.mxu0 %v9344_v11 }
 0xa9b   :  { %8197 = vmatprep.subr.bf16.mxu0 %v9281_v4 }
 0xa9e   :  { %8199 = vmatpush3.bf16.msra.mxu0 %v9375_v22 }
 0xa9f   :  { %8200 = vmatprep.subr.bf16.mxu0 %v9281_v4 }
 0xaa2   :  { %8202 = vmatpush3.bf16.msra.mxu0 %v9408_v35 }
 0xaa3   :  { %8203 = vmatprep.subr.bf16.mxu0 %v9281_v4 }
 0xaa6   :  { %8205 = vmatpush3.bf16.msra.mxu0 %v9442_v47 }
 0xaa7   :  { %8206 = vmatprep.subr.bf16.mxu0 %v9281_v4 }
 0xaaa   :  { %8208 = vmatpush3.bf16.msra.mxu0 %v9468_v53 }
 0xaab   :  { %8209 = vmatprep.subr.bf16.mxu0 %v9281_v4 }
 0xaae   :  { %8211 = vmatpush3.bf16.msra.mxu0 %v9482_v57 }
 0xaaf   :  { %8212 = vmatprep.subr.bf16.mxu0 %v9281_v4 }
 0xab2   :  { %8214 = vmatpush3.bf16.msra.mxu0 %v9494_v60 }
 0xab3   :  { %8239 = vmatprep.subr.bf16.mxu0 %v9281_v4 }
 0xb68   :  { %v1187_v5 = vpop.f32.mrb[12].mxu0 }
 0xb69   :  { %v1188_v11 = vadd.f32 %v9551_v9, %v1187_v5  ;;  %v6349_v22 = vpop.f32.mrb[13].mxu0 }
 0xb6a   :  { %v1414_v22 = vstv %s1408_s30  ;;  %s10321_s30 = sld [smem:[#allocation2 + $0x3]] }
 0xb6b   :  { %9217 = vtanh.f32 %v1188_v11 }
 0xb70   :  { %s2774_s9 = smul.f32 0.16666667, %s10321_s30 }
 0xb75   :  { %v9218_v35 = vpop.eup %9217 }
 0xb76   :  { %6383 = vmatmul.mubr.f32.vlgmr.msra.gmra.mrb[12].mxu1 %v9218_v35 }
 0xb77   :  { %8217 = vmatpush3.bf16.msra.mxu1 %v9377_v23  ;;  %6452 = vmatprep.mubr.msk.f32.mxu1 %vm9282_vm0, %v9283_v7  ;;  %v1409_v23 = vmul.f32 2.0, %v1116_v49  ;;  %v1579_v49 = vld [vmem:[%s11322_s4 + $0x40] sm:$0xff] }
 0xb78   :  { %8218 = vmatprep.subr.bf16.mxu1 %v9281_v4  ;;  %v9998_v52 = vpack.c.bf16 %v1580_v51, %v1579_v49 }
 0xb79   :  { %v1410_v53 = vadd.f32 %v1409_v23, %v9782_v38  ;;  %v9962_v38 = vpack.c.bf16 %v1572_v36, %v1571_v34 }
 0xb7b   :  { %8220 = vmatpush3.bf16.msra.mxu1 %v9390_v28 }
 0xb7c   :  { %8221 = vmatprep.subr.bf16.mxu1 %v9281_v4 }
 0xb7f   :  { %8223 = vmatpush3.bf16.msra.mxu1 %v9426_v42  ;;  %v1262_v42 = vstv %s9778_s27  ;;  %s2340_s27 = smul.f32 0.5, %s10321_s30 }
 0xb80   :  { %8224 = vmatprep.subr.bf16.mxu1 %v9281_v4 }
 0xb83   :  { %8226 = vmatpush3.bf16.msra.mxu1 %v9458_v50 }
 0xb84   :  { %8227 = vmatprep.subr.bf16.mxu1 %v9281_v4 }
 0xb87   :  { %8229 = vmatpush3.bf16.msra.mxu1 %v9478_v56 }
 0xb88   :  { %8230 = vmatprep.subr.bf16.mxu1 %v9281_v4 }
 0xb8b   :  { %8232 = vmatpush3.bf16.msra.mxu1 %v9524_v63 }
 0xb8c   :  { %8233 = vmatprep.subr.bf16.mxu1 %v9281_v4 }
 0xb8f   :  { %8235 = vmatpush3.bf16.msra.mxu1 %v9534_v2  ;;  %v1484_v2 = vld [vmem:[%s11320_s2] sm:$0xff] }
 0xb90   :  { %8236 = vmatprep.subr.bf16.mxu1 %v9281_v4 }
 0xb93   :  { %8238 = vmatpush3.bf16.msra.mxu1 %v9543_v8  ;;  %v1485_v8 = vld [vmem:[%s11320_s2 + $0x8] sm:$0xff] }
 0xb94   :  { %8263 = vmatprep.subr.bf16.mxu1 %v9281_v4  ;;  %v9879_v58 = vpack.c.bf16 %v1485_v8, %v1484_v2 }
 0xc49   :  { %v1258_v28 = vpop.f32.mrb[12].mxu1 }
 0xc4a   :  { %v1259_v47 = vadd.f32 %v9578_v16, %v1258_v28  ;;  %v6384_v50 = vpop.f32.mrb[13].mxu1 }
 0xc4c   :  { %v1263_v56 = vmul.f32 %v1262_v42, %v1259_v47  ;;  %v1411_v57 = vmul.f32 2.0, %v1259_v47 }
 0xc4e   :  { %v1264_v60 = vadd.f32 %v1263_v56, %v9705_v12  ;;  %v9866_v63 = vadd.f32 %v1411_v57, %v1410_v53 }
 0xc50   :  { %6418 = vmatmul.mubr.f32.vlgmr.msra.gmra.mrb[14].mxu0 %v1264_v60 }
 0xc51   :  { %6487 = vmatprep.mubr.msk.f32.mxu0 %vm9282_vm0, %v9283_v7  ;;  %8241 = vmatpush3.bf16.msra.mxu0 %v9879_v58 }
 0xc52   :  { %8242 = vmatprep.subr.bf16.mxu0 %v9281_v4 }
 0xc55   :  { %8244 = vmatpush3.bf16.msra.mxu0 %v9885_v61 }
 0xc56   :  { %8245 = vmatprep.subr.bf16.mxu0 %v9281_v4 }
 0xc59   :  { %8247 = vmatpush3.bf16.msra.mxu0 %v9895_v1 }
 0xc5a   :  { %8248 = vmatprep.subr.bf16.mxu0 %v9281_v4 }
 0xc5d   :  { %8250 = vmatpush3.bf16.msra.mxu0 %v9905_v10 }
 0xc5e   :  { %8251 = vmatprep.subr.bf16.mxu0 %v9281_v4 }
 0xc61   :  { %8253 = vmatpush3.bf16.msra.mxu0 %v9915_v17 }
 0xc62   :  { %8254 = vmatprep.subr.bf16.mxu0 %v9281_v4 }
 0xc65   :  { %8256 = vmatpush3.bf16.msra.mxu0 %v9925_v15 }
 0xc66   :  { %8257 = vmatprep.subr.bf16.mxu0 %v9281_v4 }
 0xc69   :  { %8259 = vmatpush3.bf16.msra.mxu0 %v9939_v30 }
 0xc6a   :  { %8260 = vmatprep.subr.bf16.mxu0 %v9281_v4 }
 0xc6d   :  { %8262 = vmatpush3.bf16.msra.mxu0 %v9949_v33 }
 0xc6e   :  { %8287 = vmatprep.subr.bf16.mxu0 %v9281_v4 }
 0xd23   :  { %v1331_v21 = vpop.f32.mrb[14].mxu0 }
 0xd24   :  { %v1332_v24 = vadd.f32 %v9551_v9, %v1331_v21  ;;  %v6419_v25 = vpop.f32.mrb[15].mxu0  ;;  %v10086_v21 = vpack.c.bf16 %v1586_v20, %v1585_v19  ;;  %v2097_v19 = vstv %s2091_s14 }
 0xd26   :  { %9219 = vtanh.f32 %v1332_v24 }
 0xd30   :  { %v9220_v26 = vpop.eup %9219 }
 0xd31   :  { %6453 = vmatmul.mubr.f32.vlgmr.msra.gmra.mrb[14].mxu1 %v9220_v26 }
 0xd32   :  { %6522 = vmatprep.mubr.msk.f32.mxu1 %vm9282_vm0, %v9283_v7  ;;  %8265 = vmatpush3.bf16.msra.mxu1 %v9962_v38 }
 0xd33   :  { %8266 = vmatprep.subr.bf16.mxu1 %v9281_v4 }
 0xd36   :  { %8268 = vmatpush3.bf16.msra.mxu1 %v9968_v40 }
 0xd37   :  { %8269 = vmatprep.subr.bf16.mxu1 %v9281_v4 }
 0xd3a   :  { %8271 = vmatpush3.bf16.msra.mxu1 %v9978_v44 }
 0xd3b   :  { %8272 = vmatprep.subr.bf16.mxu1 %v9281_v4 }
 0xd3e   :  { %8274 = vmatpush3.bf16.msra.mxu1 %v9988_v48 }
 0xd3f   :  { %8275 = vmatprep.subr.bf16.mxu1 %v9281_v4 }
 0xd42   :  { %8277 = vmatpush3.bf16.msra.mxu1 %v9998_v52 }
 0xd43   :  { %8278 = vmatprep.subr.bf16.mxu1 %v9281_v4 }
 0xd46   :  { %8280 = vmatpush3.bf16.msra.mxu1 %v10067_v3 }
 0xd47   :  { %8281 = vmatprep.subr.bf16.mxu1 %v9281_v4 }
 0xd4a   :  { %8283 = vmatpush3.bf16.msra.mxu1 %v10077_v14 }
 0xd4b   :  { %8284 = vmatprep.subr.bf16.mxu1 %v9281_v4 }
 0xd4e   :  { %8286 = vmatpush3.bf16.msra.mxu1 %v10086_v21 }
 0xd4f   :  { %8311 = vmatprep.subr.bf16.mxu1 %v9281_v4 }
 0xe04   :  { %v1402_v54 = vpop.f32.mrb[14].mxu1 }
 0xe05   :  { %v1403_v5 = vadd.f32 %v9578_v16, %v1402_v54  ;;  %v6454_v11 = vpop.f32.mrb[15].mxu1 }
 0xe07   :  { %v1413_v35 = vadd.f32 %v9866_v63, %v1403_v5 }
 0xe09   :  { %v1415_v23 = vmul.f32 %v1414_v22, %v1413_v35 }
 0xe0b   :  { %v10007_v28 = vadd.f32 %v1415_v23, %v9705_v12 }
 0xe0d   :  { %v1418_v42 = vcombine.high %v10007_v28, %v10007_v28  ;;  %v1425_v47 = vrot.slane %v10007_v28, %v9363_v18  ;;  %6488 = vmatmul.mubr.f32.vlgmr.msra.gmra.mrb[16].mxu0 %v10007_v28 }
 0xe0e   :  { %8289 = vmatpush3.bf16.msra.mxu0 %v9879_v58  ;;  %6557 = vmatprep.mubr.msk.f32.mxu0 %vm9282_vm0, %v9283_v7 }
 0xe0f   :  { %v1432_v50 = vrot.slane %v1418_v42, %v9363_v18  ;;  %v1433_v53 = vcombine.high %v1425_v47, %v1425_v47  ;;  %v1441_v56 = vrot.slane %v1425_v47, %v9363_v18  ;;  %4914 = vst.sshfl [vmem:[%s11324_s6 + $0x2] sm:$0x1 pattern:$0x73625140] %v1425_v47  ;;  %8290 = vmatprep.subr.bf16.mxu0 %v9281_v4 }
 0xe11   :  { %v1434_v12 = vcombine.high %v1432_v50, %v1432_v50  ;;  %v1448_v57 = vrot.slane %v1432_v50, %v9363_v18  ;;  %v1455_v60 = vrot.slane %v1433_v53, %v9363_v18  ;;  %v1463_v63 = vcombine.high %v1441_v56, %v1441_v56  ;;  %4915 = vst.sshfl [vmem:[%s11324_s6 + $0xa] sm:$0x1 pattern:$0x73625140] %v1433_v53 }
 0xe12   :  { %4916 = vst.sshfl [vmem:[%s11324_s6 + $0x22] sm:$0x1 pattern:$0x73625140] %v1432_v50  ;;  %8292 = vmatpush3.bf16.msra.mxu0 %v9885_v61  ;;  %v1945_v50 = vstv %s10110_s8  ;;  %s10864_s8 = sld [smem:[#allocation2 + $0x5]] }
 0xe13   :  { %v1462_v2 = vrot.slane %v1434_v12, %v9363_v18  ;;  %v1464_v8 = vcombine.high %v1448_v57, %v1448_v57  ;;  %v1465_v55 = vcombine.high %v1455_v60, %v1455_v60  ;;  %1477 = vst [vmem:[%s11324_s6 + $0x12] sm:$0x1] %v1463_v63  ;;  %4917 = vst.sshfl [vmem:[%s11324_s6 + $0x2a] sm:$0x1 pattern:$0x73625140] %v1434_v12  ;;  %8293 = vmatprep.subr.bf16.mxu0 %v9281_v4 }
 0xe15   :  { %v1466_v59 = vcombine.high %v1462_v2, %v1462_v2  ;;  %1478 = vst [vmem:[%s11324_s6 + $0x1a] sm:$0x1] %v1465_v55  ;;  %1481 = vst [vmem:[%s11324_s6 + $0x32] sm:$0x1] %v1464_v8 }
 0xe16   :  { %8295 = vmatpush3.bf16.msra.mxu0 %v9895_v1 }
 0xe17   :  { %1482 = vst [vmem:[%s11324_s6 + $0x3a] sm:$0x1] %v1466_v59  ;;  %8296 = vmatprep.subr.bf16.mxu0 %v9281_v4 }
 0xe1a   :  { %8298 = vmatpush3.bf16.msra.mxu0 %v9905_v10 }
 0xe1b   :  { %8299 = vmatprep.subr.bf16.mxu0 %v9281_v4 }
 0xe1e   :  { %8301 = vmatpush3.bf16.msra.mxu0 %v9915_v17 }
 0xe1f   :  { %8302 = vmatprep.subr.bf16.mxu0 %v9281_v4 }
 0xe22   :  { %8304 = vmatpush3.bf16.msra.mxu0 %v9925_v15 }
 0xe23   :  { %8305 = vmatprep.subr.bf16.mxu0 %v9281_v4 }
 0xe26   :  { %8307 = vmatpush3.bf16.msra.mxu0 %v9939_v30 }
 0xe27   :  { %8308 = vmatprep.subr.bf16.mxu0 %v9281_v4 }
 0xe2a   :  { %8310 = vmatpush3.bf16.msra.mxu0 %v9949_v33 }
 0xe2b   :  { %8335 = vmatprep.subr.bf16.mxu0 %v9281_v4 }
 0xee0   :  { %v1566_v24 = vpop.f32.mrb[16].mxu0 }
 0xee1   :  { %v1567_v25 = vadd.f32 %v9551_v9, %v1566_v24  ;;  %v6489_v26 = vpop.f32.mrb[17].mxu0 }
 0xee3   :  { %9221 = vtanh.f32 %v1567_v25 }
 0xeed   :  { %v9222_v27 = vpop.eup %9221 }
 0xeee   :  { %6523 = vmatmul.mubr.f32.vlgmr.msra.gmra.mrb[16].mxu1 %v9222_v27 }
 0xeef   :  { %8313 = vmatpush3.bf16.msra.mxu1 %v9962_v38  ;;  %6592 = vmatprep.mubr.msk.f32.mxu1 %vm9282_vm0, %v9283_v7 }
 0xef0   :  { %8314 = vmatprep.subr.bf16.mxu1 %v9281_v4 }
 0xef3   :  { %8316 = vmatpush3.bf16.msra.mxu1 %v9968_v40 }
 0xef4   :  { %8317 = vmatprep.subr.bf16.mxu1 %v9281_v4 }
 0xef7   :  { %8319 = vmatpush3.bf16.msra.mxu1 %v9978_v44 }
 0xef8   :  { %8320 = vmatprep.subr.bf16.mxu1 %v9281_v4 }
 0xefb   :  { %8322 = vmatpush3.bf16.msra.mxu1 %v9988_v48 }
 0xefc   :  { %8323 = vmatprep.subr.bf16.mxu1 %v9281_v4 }
 0xeff   :  { %8325 = vmatpush3.bf16.msra.mxu1 %v9998_v52 }
 0xf00   :  { %8326 = vmatprep.subr.bf16.mxu1 %v9281_v4 }
 0xf03   :  { %8328 = vmatpush3.bf16.msra.mxu1 %v10067_v3 }
 0xf04   :  { %8329 = vmatprep.subr.bf16.mxu1 %v9281_v4 }
 0xf07   :  { %8331 = vmatpush3.bf16.msra.mxu1 %v10077_v14 }
 0xf08   :  { %8332 = vmatprep.subr.bf16.mxu1 %v9281_v4 }
 0xf0b   :  { %8334 = vmatpush3.bf16.msra.mxu1 %v10086_v21 }
 0xf0c   :  { %8359 = vmatprep.subr.bf16.mxu1 %v9281_v4 }
 0xfc1   :  { %v1653_v9 = vpop.f32.mrb[16].mxu1 }
 0xfc2   :  { %v10114_v31 = vadd.f32 %v9578_v16, %v1653_v9  ;;  %v6524_v32 = vpop.f32.mrb[17].mxu1 }
 0xfc4   :  { %v1659_v34 = vmul.f32 %v1658_v29, %v10114_v31 }
 0xfc6   :  { %v1660_v36 = vadd.f32 %v1659_v34, %v10007_v28 }
 0xfc8   :  { %6558 = vmatmul.mubr.f32.vlgmr.msra.gmra.mrb[18].mxu0 %v1660_v36 }
 0xfc9   :  { %8337 = vmatpush3.bf16.msra.mxu0 %v9879_v58  ;;  %6627 = vmatprep.mubr.msk.f32.mxu0 %vm9282_vm0, %v9283_v7 }
 0xfca   :  { %8338 = vmatprep.subr.bf16.mxu0 %v9281_v4 }
 0xfcd   :  { %8340 = vmatpush3.bf16.msra.mxu0 %v9885_v61 }
 0xfce   :  { %8341 = vmatprep.subr.bf16.mxu0 %v9281_v4 }
 0xfd1   :  { %8343 = vmatpush3.bf16.msra.mxu0 %v9895_v1 }
 0xfd2   :  { %8344 = vmatprep.subr.bf16.mxu0 %v9281_v4 }
 0xfd5   :  { %8346 = vmatpush3.bf16.msra.mxu0 %v9905_v10 }
 0xfd6   :  { %8347 = vmatprep.subr.bf16.mxu0 %v9281_v4 }
 0xfd9   :  { %8349 = vmatpush3.bf16.msra.mxu0 %v9915_v17 }
 0xfda   :  { %8350 = vmatprep.subr.bf16.mxu0 %v9281_v4 }
 0xfdd   :  { %8352 = vmatpush3.bf16.msra.mxu0 %v9925_v15 }
 0xfde   :  { %8353 = vmatprep.subr.bf16.mxu0 %v9281_v4 }
 0xfe1   :  { %8355 = vmatpush3.bf16.msra.mxu0 %v9939_v30 }
 0xfe2   :  { %8356 = vmatprep.subr.bf16.mxu0 %v9281_v4 }
 0xfe5   :  { %8358 = vmatpush3.bf16.msra.mxu0 %v9949_v33 }
 0xfe6   :  { %8383 = vmatprep.subr.bf16.mxu0 %v9281_v4 }
0x109b   :  { %v1727_v16 = vpop.f32.mrb[18].mxu0 }
0x109c   :  { %v1728_v39 = vadd.f32 %v10139_v37, %v1727_v16  ;;  %v6559_v41 = vpop.f32.mrb[19].mxu0 }
0x109e   :  { %9223 = vtanh.f32 %v1728_v39 }
0x10a8   :  { %v9224_v43 = vpop.eup %9223 }
0x10a9   :  { %6593 = vmatmul.mubr.f32.vlgmr.msra.gmra.mrb[18].mxu1 %v9224_v43 }
0x10aa   :  { %8361 = vmatpush3.bf16.msra.mxu1 %v9962_v38  ;;  %6662 = vmatprep.mubr.msk.f32.mxu1 %vm9282_vm0, %v9283_v7 }
0x10ab   :  { %8362 = vmatprep.subr.bf16.mxu1 %v9281_v4 }
0x10ae   :  { %8364 = vmatpush3.bf16.msra.mxu1 %v9968_v40 }
0x10af   :  { %8365 = vmatprep.subr.bf16.mxu1 %v9281_v4 }
0x10b2   :  { %8367 = vmatpush3.bf16.msra.mxu1 %v9978_v44 }
0x10b3   :  { %8368 = vmatprep.subr.bf16.mxu1 %v9281_v4 }
0x10b6   :  { %8370 = vmatpush3.bf16.msra.mxu1 %v9988_v48 }
0x10b7   :  { %8371 = vmatprep.subr.bf16.mxu1 %v9281_v4 }
0x10ba   :  { %8373 = vmatpush3.bf16.msra.mxu1 %v9998_v52 }
0x10bb   :  { %8374 = vmatprep.subr.bf16.mxu1 %v9281_v4 }
0x10be   :  { %8376 = vmatpush3.bf16.msra.mxu1 %v10067_v3 }
0x10bf   :  { %8377 = vmatprep.subr.bf16.mxu1 %v9281_v4 }
0x10c2   :  { %8379 = vmatpush3.bf16.msra.mxu1 %v10077_v14 }
0x10c3   :  { %8380 = vmatprep.subr.bf16.mxu1 %v9281_v4 }
0x10c6   :  { %8382 = vmatpush3.bf16.msra.mxu1 %v10086_v21 }
0x10c7   :  { %8407 = vmatprep.subr.bf16.mxu1 %v9281_v4 }
0x117c   :  { %v1798_v45 = vpop.f32.mrb[18].mxu1 }
0x117d   :  { %v1799_v49 = vadd.f32 %v10163_v46, %v1798_v45  ;;  %v6594_v51 = vpop.f32.mrb[19].mxu1 }
0x117f   :  { %v1802_v54 = vmul.f32 %v1799_v49, %v1658_v29  ;;  %v2092_v42 = vmul.f32 2.0, %v1799_v49 }
0x1181   :  { %v1803_v5 = vadd.f32 %v1802_v54, %v10007_v28  ;;  %v2093_v12 = vadd.f32 %v2092_v42, %v10114_v31 }
0x1183   :  { %6628 = vmatmul.mubr.f32.vlgmr.msra.gmra.mrb[20].mxu0 %v1803_v5 }
0x1184   :  { %8385 = vmatpush3.bf16.msra.mxu0 %v9879_v58  ;;  %6697 = vmatprep.mubr.msk.f32.mxu0 %vm9282_vm0, %v9283_v7 }
0x1185   :  { %8386 = vmatprep.subr.bf16.mxu0 %v9281_v4 }
0x1188   :  { %8388 = vmatpush3.bf16.msra.mxu0 %v9885_v61 }
0x1189   :  { %8389 = vmatprep.subr.bf16.mxu0 %v9281_v4 }
0x118c   :  { %8391 = vmatpush3.bf16.msra.mxu0 %v9895_v1 }
0x118d   :  { %8392 = vmatprep.subr.bf16.mxu0 %v9281_v4 }
0x1190   :  { %8394 = vmatpush3.bf16.msra.mxu0 %v9905_v10 }
0x1191   :  { %8395 = vmatprep.subr.bf16.mxu0 %v9281_v4 }
0x1194   :  { %8397 = vmatpush3.bf16.msra.mxu0 %v9915_v17 }
0x1195   :  { %8398 = vmatprep.subr.bf16.mxu0 %v9281_v4 }
0x1198   :  { %8400 = vmatpush3.bf16.msra.mxu0 %v9925_v15 }
0x1199   :  { %8401 = vmatprep.subr.bf16.mxu0 %v9281_v4 }
0x119c   :  { %8403 = vmatpush3.bf16.msra.mxu0 %v9939_v30 }
0x119d   :  { %8404 = vmatprep.subr.bf16.mxu0 %v9281_v4 }
0x11a0   :  { %8406 = vmatpush3.bf16.msra.mxu0 %v9949_v33 }
0x11a1   :  { %8431 = vmatprep.subr.bf16.mxu0 %v9281_v4 }
0x1256   :  { %v1870_v11 = vpop.f32.mrb[20].mxu0 }
0x1257   :  { %v1871_v22 = vadd.f32 %v10139_v37, %v1870_v11  ;;  %v6629_v35 = vpop.f32.mrb[21].mxu0  ;;  %v2341_v11 = vstv %s2340_s27 }
0x1259   :  { %9225 = vtanh.f32 %v1871_v22 }
0x1263   :  { %v9226_v23 = vpop.eup %9225 }
0x1264   :  { %6663 = vmatmul.mubr.f32.vlgmr.msra.gmra.mrb[20].mxu1 %v9226_v23 }
0x1265   :  { %8409 = vmatpush3.bf16.msra.mxu1 %v9962_v38  ;;  %6732 = vmatprep.mubr.msk.f32.mxu1 %vm9282_vm0, %v9283_v7 }
0x1266   :  { %8410 = vmatprep.subr.bf16.mxu1 %v9281_v4 }
0x1269   :  { %8412 = vmatpush3.bf16.msra.mxu1 %v9968_v40 }
0x126a   :  { %8413 = vmatprep.subr.bf16.mxu1 %v9281_v4 }
0x126d   :  { %8415 = vmatpush3.bf16.msra.mxu1 %v9978_v44 }
0x126e   :  { %8416 = vmatprep.subr.bf16.mxu1 %v9281_v4 }
0x1271   :  { %8418 = vmatpush3.bf16.msra.mxu1 %v9988_v48 }
0x1272   :  { %8419 = vmatprep.subr.bf16.mxu1 %v9281_v4 }
0x1275   :  { %8421 = vmatpush3.bf16.msra.mxu1 %v9998_v52 }
0x1276   :  { %8422 = vmatprep.subr.bf16.mxu1 %v9281_v4 }
0x1279   :  { %8424 = vmatpush3.bf16.msra.mxu1 %v10067_v3 }
0x127a   :  { %8425 = vmatprep.subr.bf16.mxu1 %v9281_v4 }
0x127d   :  { %8427 = vmatpush3.bf16.msra.mxu1 %v10077_v14 }
0x127e   :  { %8428 = vmatprep.subr.bf16.mxu1 %v9281_v4 }
0x1281   :  { %8430 = vmatpush3.bf16.msra.mxu1 %v10086_v21 }
0x1282   :  { %8455 = vmatprep.subr.bf16.mxu1 %v9281_v4 }
0x1337   :  { %v1941_v47 = vpop.f32.mrb[20].mxu1 }
0x1338   :  { %v1942_v53 = vadd.f32 %v10163_v46, %v1941_v47  ;;  %v6664_v56 = vpop.f32.mrb[21].mxu1 }
0x133a   :  { %v1946_v57 = vmul.f32 %v1945_v50, %v1942_v53  ;;  %v2094_v60 = vmul.f32 2.0, %v1942_v53 }
0x133c   :  { %v1947_v63 = vadd.f32 %v1946_v57, %v10007_v28  ;;  %v2095_v2 = vadd.f32 %v2094_v60, %v2093_v12 }
0x133e   :  { %6698 = vmatmul.mubr.f32.vlgmr.msra.gmra.mrb[22].mxu0 %v1947_v63 }
0x133f   :  { %8433 = vmatpush3.bf16.msra.mxu0 %v9879_v58  ;;  %6767 = vmatprep.mubr.msk.f32.mxu0 %vm9282_vm0, %v9283_v7 }
0x1340   :  { %8434 = vmatprep.subr.bf16.mxu0 %v9281_v4 }
0x1343   :  { %8436 = vmatpush3.bf16.msra.mxu0 %v9885_v61 }
0x1344   :  { %8437 = vmatprep.subr.bf16.mxu0 %v9281_v4 }
0x1347   :  { %8439 = vmatpush3.bf16.msra.mxu0 %v9895_v1 }
0x1348   :  { %8440 = vmatprep.subr.bf16.mxu0 %v9281_v4 }
0x134b   :  { %8442 = vmatpush3.bf16.msra.mxu0 %v9905_v10 }
0x134c   :  { %8443 = vmatprep.subr.bf16.mxu0 %v9281_v4 }
0x134f   :  { %8445 = vmatpush3.bf16.msra.mxu0 %v9915_v17 }
0x1350   :  { %8446 = vmatprep.subr.bf16.mxu0 %v9281_v4 }
0x1353   :  { %8448 = vmatpush3.bf16.msra.mxu0 %v9925_v15 }
0x1354   :  { %8449 = vmatprep.subr.bf16.mxu0 %v9281_v4 }
0x1357   :  { %8451 = vmatpush3.bf16.msra.mxu0 %v9939_v30 }
0x1358   :  { %8452 = vmatprep.subr.bf16.mxu0 %v9281_v4 }
0x135b   :  { %8454 = vmatpush3.bf16.msra.mxu0 %v9949_v33 }
0x135c   :  { %8479 = vmatprep.subr.bf16.mxu0 %v9281_v4 }
0x1411   :  { %v2014_v8 = vpop.f32.mrb[22].mxu0 }
0x1412   :  { %v2015_v55 = vadd.f32 %v10139_v37, %v2014_v8  ;;  %v6699_v59 = vpop.f32.mrb[23].mxu0  ;;  %v2852_v8 = vld [vmem:[%s11320_s2 + $0x10] sm:$0xff] }
0x1413   :  { %v2853_v59 = vld [vmem:[%s11320_s2 + $0x18] sm:$0xff] }
0x1414   :  { %9227 = vtanh.f32 %v2015_v55 }
0x141e   :  { %v9228_v62 = vpop.eup %9227 }
0x141f   :  { %6733 = vmatmul.mubr.f32.vlgmr.msra.gmra.mrb[22].mxu1 %v9228_v62  ;;  %v10428_v62 = vpack.c.bf16 %v2853_v59, %v2852_v8 }
0x1420   :  { %8457 = vmatpush3.bf16.msra.mxu1 %v9962_v38  ;;  %6802 = vmatprep.mubr.msk.f32.mxu1 %vm9282_vm0, %v9283_v7 }
0x1421   :  { %8458 = vmatprep.subr.bf16.mxu1 %v9281_v4 }
0x1424   :  { %8460 = vmatpush3.bf16.msra.mxu1 %v9968_v40 }
0x1425   :  { %8461 = vmatprep.subr.bf16.mxu1 %v9281_v4 }
0x1428   :  { %8463 = vmatpush3.bf16.msra.mxu1 %v9978_v44 }
0x1429   :  { %8464 = vmatprep.subr.bf16.mxu1 %v9281_v4 }
0x142c   :  { %8466 = vmatpush3.bf16.msra.mxu1 %v9988_v48 }
0x142d   :  { %8467 = vmatprep.subr.bf16.mxu1 %v9281_v4 }
0x1430   :  { %8469 = vmatpush3.bf16.msra.mxu1 %v9998_v52 }
0x1431   :  { %8470 = vmatprep.subr.bf16.mxu1 %v9281_v4 }
0x1434   :  { %8472 = vmatpush3.bf16.msra.mxu1 %v10067_v3 }
0x1435   :  { %8473 = vmatprep.subr.bf16.mxu1 %v9281_v4 }
0x1438   :  { %8475 = vmatpush3.bf16.msra.mxu1 %v10077_v14 }
0x1439   :  { %8476 = vmatprep.subr.bf16.mxu1 %v9281_v4 }
0x143c   :  { %8478 = vmatpush3.bf16.msra.mxu1 %v10086_v21 }
0x143d   :  { %8503 = vmatprep.subr.bf16.mxu1 %v9281_v4 }
0x14f2   :  { %v2085_v0 = vpop.f32.mrb[22].mxu1 }
0x14f3   :  { %v2086_v6 = vadd.f32 %v10163_v46, %v2085_v0  ;;  %v6734_v13 = vpop.f32.mrb[23].mxu1  ;;  %v2854_v0 = vld [vmem:[%s11320_s2 + $0x20] sm:$0xff] }
0x14f5   :  { %v2096_v20 = vadd.f32 %v2095_v2, %v2086_v6  ;;  %v2855_v6 = vld [vmem:[%s11320_s2 + $0x28] sm:$0xff] }
0x14f6   :  { %v10438_v13 = vpack.c.bf16 %v2855_v6, %v2854_v0  ;;  %v2947_v0 = vld [vmem:[%s11322_s4 + $0x50] sm:$0xff]  ;;  %v2948_v6 = vld [vmem:[%s11322_s4 + $0x58] sm:$0xff] }
0x14f7   :  { %v2098_v24 = vmul.f32 %v2097_v19, %v2096_v20  ;;  %v2856_v19 = vld [vmem:[%s11320_s2 + $0x30] sm:$0xff]  ;;  %v2857_v20 = vld [vmem:[%s11320_s2 + $0x38] sm:$0xff] }
0x14f9   :  { %v10248_v25 = vadd.f32 %v2098_v24, %v10007_v28  ;;  %v10448_v24 = vpack.c.bf16 %v2857_v20, %v2856_v19  ;;  %v10610_v19 = vpack.c.bf16 %v2948_v6, %v2947_v0  ;;  %v2949_v20 = vld [vmem:[%s11322_s4 + $0x60] sm:$0xff] }
0x14fb   :  { %v2101_v26 = vcombine.high %v10248_v25, %v10248_v25  ;;  %v2108_v27 = vrot.slane %v10248_v25, %v9363_v18  ;;  %6768 = vmatmul.mubr.f32.vlgmr.msra.gmra.mrb[24].mxu0 %v10248_v25 }
0x14fc   :  { %8481 = vmatpush3.bf16.msra.mxu0 %v9879_v58  ;;  %6837 = vmatprep.mubr.msk.f32.mxu0 %vm9282_vm0, %v9283_v7 }
0x14fd   :  { %v2115_v9 = vrot.slane %v2101_v26, %v9363_v18  ;;  %v2116_v29 = vcombine.high %v2108_v27, %v2108_v27  ;;  %v2124_v31 = vrot.slane %v2108_v27, %v9363_v18  ;;  %4919 = vst.sshfl [vmem:[%s11324_s6 + $0x3] sm:$0x1 pattern:$0x73625140] %v2108_v27  ;;  %8482 = vmatprep.subr.bf16.mxu0 %v9281_v4  ;;  %v2858_v26 = vld [vmem:[%s11320_s2 + $0x40] sm:$0xff]  ;;  %v2859_v27 = vld [vmem:[%s11320_s2 + $0x48] sm:$0xff] }
0x14ff   :  { %v2117_v28 = vcombine.high %v2115_v9, %v2115_v9  ;;  %v2131_v32 = vrot.slane %v2115_v9, %v9363_v18  ;;  %v2138_v34 = vrot.slane %v2116_v29, %v9363_v18  ;;  %v2146_v36 = vcombine.high %v2124_v31, %v2124_v31  ;;  %4920 = vst.sshfl [vmem:[%s11324_s6 + $0xb] sm:$0x1 pattern:$0x73625140] %v2116_v29  ;;  %v2860_v29 = vld [vmem:[%s11320_s2 + $0x50] sm:$0xff]  ;;  %v2861_v31 = vld [vmem:[%s11320_s2 + $0x58] sm:$0xff] }
0x1500   :  { %4921 = vst.sshfl [vmem:[%s11324_s6 + $0x23] sm:$0x1 pattern:$0x73625140] %v2115_v9  ;;  %8484 = vmatpush3.bf16.msra.mxu0 %v9885_v61  ;;  %v10458_v9 = vpack.c.bf16 %v2859_v27, %v2858_v26  ;;  %v2950_v26 = vld [vmem:[%s11322_s4 + $0x68] sm:$0xff] }
0x1501   :  { %v2145_v16 = vrot.slane %v2117_v28, %v9363_v18  ;;  %v2147_v39 = vcombine.high %v2131_v32, %v2131_v32  ;;  %v2148_v41 = vcombine.high %v2138_v34, %v2138_v34  ;;  %2160 = vst [vmem:[%s11324_s6 + $0x13] sm:$0x1] %v2146_v36  ;;  %4922 = vst.sshfl [vmem:[%s11324_s6 + $0x2b] sm:$0x1 pattern:$0x73625140] %v2117_v28  ;;  %8485 = vmatprep.subr.bf16.mxu0 %v9281_v4 }
0x1502   :  { %v10468_v28 = vpack.c.bf16 %v2861_v31, %v2860_v29  ;;  %v10620_v27 = vpack.c.bf16 %v2950_v26, %v2949_v20  ;;  %v2951_v29 = vld [vmem:[%s11322_s4 + $0x70] sm:$0xff]  ;;  %v2952_v31 = vld [vmem:[%s11322_s4 + $0x78] sm:$0xff] }
0x1503   :  { %v2149_v43 = vcombine.high %v2145_v16, %v2145_v16  ;;  %2161 = vst [vmem:[%s11324_s6 + $0x1b] sm:$0x1] %v2148_v41  ;;  %2164 = vst [vmem:[%s11324_s6 + $0x33] sm:$0x1] %v2147_v39  ;;  %v2862_v39 = vld [vmem:[%s11320_s2 + $0x60] sm:$0xff]  ;;  %v2863_v41 = vld [vmem:[%s11320_s2 + $0x68] sm:$0xff] }
0x1504   :  { %8487 = vmatpush3.bf16.msra.mxu0 %v9895_v1 }
0x1505   :  { %2165 = vst [vmem:[%s11324_s6 + $0x3b] sm:$0x1] %v2149_v43  ;;  %8488 = vmatprep.subr.bf16.mxu0 %v9281_v4  ;;  %v10482_v43 = vpack.c.bf16 %v2863_v41, %v2862_v39 }
0x1508   :  { %8490 = vmatpush3.bf16.msra.mxu0 %v9905_v10 }
0x1509   :  { %8491 = vmatprep.subr.bf16.mxu0 %v9281_v4 }
0x150c   :  { %8493 = vmatpush3.bf16.msra.mxu0 %v9915_v17 }
0x150d   :  { %8494 = vmatprep.subr.bf16.mxu0 %v9281_v4 }
0x1510   :  { %8496 = vmatpush3.bf16.msra.mxu0 %v9925_v15 }
0x1511   :  { %8497 = vmatprep.subr.bf16.mxu0 %v9281_v4 }
0x1514   :  { %8499 = vmatpush3.bf16.msra.mxu0 %v9939_v30 }
0x1515   :  { %8500 = vmatprep.subr.bf16.mxu0 %v9281_v4 }
0x1518   :  { %8502 = vmatpush3.bf16.msra.mxu0 %v9949_v33 }
0x1519   :  { %8527 = vmatprep.subr.bf16.mxu0 %v9281_v4 }
0x15ce   :  { %v2249_v45 = vpop.f32.mrb[24].mxu0 }
0x15cf   :  { %v2250_v49 = vadd.f32 %v10139_v37, %v2249_v45  ;;  %v6769_v51 = vpop.f32.mrb[25].mxu0  ;;  %v2864_v45 = vld [vmem:[%s11320_s2 + $0x70] sm:$0xff] }
0x15d1   :  { %9229 = vtanh.f32 %v2250_v49  ;;  %v2865_v49 = vld [vmem:[%s11320_s2 + $0x78] sm:$0xff] }
0x15d2   :  { %v10492_v51 = vpack.c.bf16 %v2865_v49, %v2864_v45  ;;  %v3024_v45 = vstv %s3023_s12 }
0x15db   :  { %v9230_v54 = vpop.eup %9229 }
0x15dc   :  { %6803 = vmatmul.mubr.f32.vlgmr.msra.gmra.mrb[24].mxu1 %v9230_v54  ;;  %v2937_v54 = vld [vmem:[%s11322_s4] sm:$0xff] }
0x15dd   :  { %8505 = vmatpush3.bf16.msra.mxu1 %v9962_v38  ;;  %6872 = vmatprep.mubr.msk.f32.mxu1 %vm9282_vm0, %v9283_v7 }
0x15de   :  { %8506 = vmatprep.subr.bf16.mxu1 %v9281_v4 }
0x15e1   :  { %8508 = vmatpush3.bf16.msra.mxu1 %v9968_v40 }
0x15e2   :  { %8509 = vmatprep.subr.bf16.mxu1 %v9281_v4 }
0x15e5   :  { %8511 = vmatpush3.bf16.msra.mxu1 %v9978_v44 }
0x15e6   :  { %8512 = vmatprep.subr.bf16.mxu1 %v9281_v4 }
0x15e9   :  { %8514 = vmatpush3.bf16.msra.mxu1 %v9988_v48 }
0x15ea   :  { %8515 = vmatprep.subr.bf16.mxu1 %v9281_v4 }
0x15ed   :  { %8517 = vmatpush3.bf16.msra.mxu1 %v9998_v52 }
0x15ee   :  { %8518 = vmatprep.subr.bf16.mxu1 %v9281_v4 }
0x15f1   :  { %8520 = vmatpush3.bf16.msra.mxu1 %v10067_v3 }
0x15f2   :  { %8521 = vmatprep.subr.bf16.mxu1 %v9281_v4 }
0x15f5   :  { %8523 = vmatpush3.bf16.msra.mxu1 %v10077_v14 }
0x15f6   :  { %8524 = vmatprep.subr.bf16.mxu1 %v9281_v4 }
0x15f9   :  { %8526 = vmatpush3.bf16.msra.mxu1 %v10086_v21 }
0x15fa   :  { %8551 = vmatprep.subr.bf16.mxu1 %v9281_v4 }
0x16af   :  { %v2336_v5 = vpop.f32.mrb[24].mxu1 }
0x16b0   :  { %v10325_v22 = vadd.f32 %v10163_v46, %v2336_v5  ;;  %v6804_v35 = vpop.f32.mrb[25].mxu1  ;;  %v2938_v5 = vld [vmem:[%s11322_s4 + $0x8] sm:$0xff] }
0x16b1   :  { %v2940_v35 = vld [vmem:[%s11322_s4 + $0x18] sm:$0xff] }
0x16b2   :  { %v2342_v23 = vmul.f32 %v2341_v11, %v10325_v22 }
0x16b4   :  { %v2343_v42 = vadd.f32 %v2342_v23, %v10248_v25 }
0x16b6   :  { %6838 = vmatmul.mubr.f32.vlgmr.msra.gmra.mrb[26].mxu0 %v2343_v42  ;;  %v2941_v42 = vld [vmem:[%s11322_s4 + $0x20] sm:$0xff] }
0x16b7   :  { %8529 = vmatpush3.bf16.msra.mxu0 %v9879_v58  ;;  %6907 = vmatprep.mubr.msk.f32.mxu0 %vm9282_vm0, %v9283_v7 }
0x16b8   :  { %8530 = vmatprep.subr.bf16.mxu0 %v9281_v4 }
0x16bb   :  { %8532 = vmatpush3.bf16.msra.mxu0 %v9885_v61 }
0x16bc   :  { %8533 = vmatprep.subr.bf16.mxu0 %v9281_v4 }
0x16bf   :  { %8535 = vmatpush3.bf16.msra.mxu0 %v9895_v1 }
0x16c0   :  { %8536 = vmatprep.subr.bf16.mxu0 %v9281_v4 }
0x16c3   :  { %8538 = vmatpush3.bf16.msra.mxu0 %v9905_v10 }
0x16c4   :  { %8539 = vmatprep.subr.bf16.mxu0 %v9281_v4 }
0x16c7   :  { %8541 = vmatpush3.bf16.msra.mxu0 %v9915_v17 }
0x16c8   :  { %8542 = vmatprep.subr.bf16.mxu0 %v9281_v4 }
0x16cb   :  { %8544 = vmatpush3.bf16.msra.mxu0 %v9925_v15 }
0x16cc   :  { %8545 = vmatprep.subr.bf16.mxu0 %v9281_v4 }
0x16cf   :  { %8547 = vmatpush3.bf16.msra.mxu0 %v9939_v30 }
0x16d0   :  { %8548 = vmatprep.subr.bf16.mxu0 %v9281_v4 }
0x16d3   :  { %8550 = vmatpush3.bf16.msra.mxu0 %v9949_v33 }
0x16d4   :  { %8575 = vmatprep.subr.bf16.mxu0 %v9281_v4 }
0x1789   :  { %v2410_v47 = vpop.f32.mrb[26].mxu0 }
0x178a   :  { %v2411_v50 = vadd.f32 %v10139_v37, %v2410_v47  ;;  %v6839_v53 = vpop.f32.mrb[27].mxu0  ;;  %v2942_v47 = vld [vmem:[%s11322_s4 + $0x28] sm:$0xff] }
0x178b   :  { %v2943_v53 = vld [vmem:[%s11322_s4 + $0x30] sm:$0xff] }
0x178c   :  { %9231 = vtanh.f32 %v2411_v50  ;;  %v10521_v50 = vpack.c.bf16 %v2942_v47, %v2941_v42 }
0x1796   :  { %v9232_v56 = vpop.eup %9231 }
0x1797   :  { %6873 = vmatmul.mubr.f32.vlgmr.msra.gmra.mrb[26].mxu1 %v9232_v56  ;;  %v2944_v56 = vld [vmem:[%s11322_s4 + $0x38] sm:$0xff] }
0x1798   :  { %8553 = vmatpush3.bf16.msra.mxu1 %v9962_v38  ;;  %6942 = vmatprep.mubr.msk.f32.mxu1 %vm9282_vm0, %v9283_v7 }
0x1799   :  { %8554 = vmatprep.subr.bf16.mxu1 %v9281_v4 }
0x179c   :  { %8556 = vmatpush3.bf16.msra.mxu1 %v9968_v40 }
0x179d   :  { %8557 = vmatprep.subr.bf16.mxu1 %v9281_v4 }
0x17a0   :  { %8559 = vmatpush3.bf16.msra.mxu1 %v9978_v44 }
0x17a1   :  { %8560 = vmatprep.subr.bf16.mxu1 %v9281_v4 }
0x17a4   :  { %8562 = vmatpush3.bf16.msra.mxu1 %v9988_v48 }
0x17a5   :  { %8563 = vmatprep.subr.bf16.mxu1 %v9281_v4 }
0x17a8   :  { %8565 = vmatpush3.bf16.msra.mxu1 %v9998_v52 }
0x17a9   :  { %8566 = vmatprep.subr.bf16.mxu1 %v9281_v4 }
0x17ac   :  { %8568 = vmatpush3.bf16.msra.mxu1 %v10067_v3 }
0x17ad   :  { %8569 = vmatprep.subr.bf16.mxu1 %v9281_v4 }
0x17b0   :  { %8571 = vmatpush3.bf16.msra.mxu1 %v10077_v14 }
0x17b1   :  { %8572 = vmatprep.subr.bf16.mxu1 %v9281_v4 }
0x17b4   :  { %8574 = vmatpush3.bf16.msra.mxu1 %v10086_v21 }
0x17b5   :  { %8599 = vmatprep.subr.bf16.mxu1 %v9281_v4 }
0x186a   :  { %v2481_v12 = vpop.f32.mrb[26].mxu1 }
0x186b   :  { %v2482_v57 = vadd.f32 %v10163_v46, %v2481_v12  ;;  %v6874_v60 = vpop.f32.mrb[27].mxu1  ;;  %v10531_v12 = vpack.c.bf16 %v2944_v56, %v2943_v53 }
0x186c   :  { %v2946_v60 = vld [vmem:[%s11322_s4 + $0x48] sm:$0xff] }
0x186d   :  { %v2485_v63 = vmul.f32 %v2482_v57, %v2341_v11  ;;  %v2939_v11 = vld [vmem:[%s11322_s4 + $0x10] sm:$0xff] }
0x186e   :  { %v10511_v23 = vpack.c.bf16 %v2940_v35, %v2939_v11 }
0x186f   :  { %v2486_v2 = vadd.f32 %v2485_v63, %v10248_v25 }
0x1871   :  { %6908 = vmatmul.mubr.f32.vlgmr.msra.gmra.mrb[28].mxu0 %v2486_v2 }
0x1872   :  { %8577 = vmatpush3.bf16.msra.mxu0 %v9879_v58  ;;  %6977 = vmatprep.mubr.msk.f32.mxu0 %vm9282_vm0, %v9283_v7 }
0x1873   :  { %8578 = vmatprep.subr.bf16.mxu0 %v9281_v4 }
0x1876   :  { %8580 = vmatpush3.bf16.msra.mxu0 %v9885_v61 }
0x1877   :  { %8581 = vmatprep.subr.bf16.mxu0 %v9281_v4 }
0x187a   :  { %8583 = vmatpush3.bf16.msra.mxu0 %v9895_v1 }
0x187b   :  { %8584 = vmatprep.subr.bf16.mxu0 %v9281_v4 }
0x187e   :  { %8586 = vmatpush3.bf16.msra.mxu0 %v9905_v10 }
0x187f   :  { %8587 = vmatprep.subr.bf16.mxu0 %v9281_v4 }
0x1882   :  { %8589 = vmatpush3.bf16.msra.mxu0 %v9915_v17  ;;  %v2775_v17 = vmul.f32 2.0, %v2482_v57  ;;  %v2945_v57 = vld [vmem:[%s11322_s4 + $0x40] sm:$0xff] }
0x1883   :  { %8590 = vmatprep.subr.bf16.mxu0 %v9281_v4  ;;  %v10541_v63 = vpack.c.bf16 %v2946_v60, %v2945_v57 }
0x1886   :  { %8592 = vmatpush3.bf16.msra.mxu0 %v9925_v15 }
0x1887   :  { %8593 = vmatprep.subr.bf16.mxu0 %v9281_v4 }
0x188a   :  { %8595 = vmatpush3.bf16.msra.mxu0 %v9939_v30  ;;  %v2628_v30 = vstv %s10321_s30 }
0x188b   :  { %8596 = vmatprep.subr.bf16.mxu0 %v9281_v4 }
0x188e   :  { %8598 = vmatpush3.bf16.msra.mxu0 %v9949_v33 }
0x188f   :  { %8623 = vmatprep.subr.bf16.mxu0 %v9281_v4 }
0x1944   :  { %v2553_v58 = vpop.f32.mrb[28].mxu0 }
0x1945   :  { %v2554_v61 = vadd.f32 %v10139_v37, %v2553_v58  ;;  %v6909_v1 = vpop.f32.mrb[29].mxu0 }
0x1946   :  { %v2780_v1 = vstv %s2774_s9  ;;  %s3706_s9 = smul.f32 0.5, %s10864_s8 }
0x1947   :  { %9233 = vtanh.f32 %v2554_v61 }
0x1951   :  { %v9234_v10 = vpop.eup %9233 }
0x1952   :  { %6943 = vmatmul.mubr.f32.vlgmr.msra.gmra.mrb[28].mxu1 %v9234_v10 }
0x1953   :  { %8601 = vmatpush3.bf16.msra.mxu1 %v9962_v38  ;;  %7012 = vmatprep.mubr.msk.f32.mxu1 %vm9282_vm0, %v9283_v7 }
0x1954   :  { %8602 = vmatprep.subr.bf16.mxu1 %v9281_v4 }
0x1957   :  { %8604 = vmatpush3.bf16.msra.mxu1 %v9968_v40  ;;  %v2776_v40 = vadd.f32 %v2775_v17, %v10325_v22  ;;  %v10505_v22 = vpack.c.bf16 %v2938_v5, %v2937_v54 }
0x1958   :  { %8605 = vmatprep.subr.bf16.mxu1 %v9281_v4 }
0x195b   :  { %8607 = vmatpush3.bf16.msra.mxu1 %v9978_v44 }
0x195c   :  { %8608 = vmatprep.subr.bf16.mxu1 %v9281_v4 }
0x195f   :  { %8610 = vmatpush3.bf16.msra.mxu1 %v9988_v48 }
0x1960   :  { %8611 = vmatprep.subr.bf16.mxu1 %v9281_v4 }
0x1963   :  { %8613 = vmatpush3.bf16.msra.mxu1 %v9998_v52 }
0x1964   :  { %8614 = vmatprep.subr.bf16.mxu1 %v9281_v4 }
0x1967   :  { %8616 = vmatpush3.bf16.msra.mxu1 %v10067_v3 }
0x1968   :  { %8617 = vmatprep.subr.bf16.mxu1 %v9281_v4 }
0x196b   :  { %8619 = vmatpush3.bf16.msra.mxu1 %v10077_v14  ;;  %v2850_v14 = vld [vmem:[%s11320_s2] sm:$0xff] }
0x196c   :  { %8620 = vmatprep.subr.bf16.mxu1 %v9281_v4 }
0x196f   :  { %8622 = vmatpush3.bf16.msra.mxu1 %v10086_v21  ;;  %v2851_v21 = vld [vmem:[%s11320_s2 + $0x8] sm:$0xff] }
0x1970   :  { %8647 = vmatprep.subr.bf16.mxu1 %v9281_v4  ;;  %v10422_v55 = vpack.c.bf16 %v2851_v21, %v2850_v14 }
0x1a25   :  { %v2624_v15 = vpop.f32.mrb[28].mxu1 }
0x1a26   :  { %v2625_v33 = vadd.f32 %v10163_v46, %v2624_v15  ;;  %v6944_v38 = vpop.f32.mrb[29].mxu1 }
0x1a28   :  { %v2629_v44 = vmul.f32 %v2628_v30, %v2625_v33  ;;  %v2777_v48 = vmul.f32 2.0, %v2625_v33 }
0x1a2a   :  { %v2630_v52 = vadd.f32 %v2629_v44, %v10248_v25  ;;  %v10409_v3 = vadd.f32 %v2777_v48, %v2776_v40 }
0x1a2c   :  { %6978 = vmatmul.mubr.f32.vlgmr.msra.gmra.mrb[30].mxu0 %v2630_v52 }
0x1a2d   :  { %7047 = vmatprep.mubr.msk.f32.mxu0 %vm9282_vm0, %v9283_v7  ;;  %8625 = vmatpush3.bf16.msra.mxu0 %v10422_v55 }
0x1a2e   :  { %8626 = vmatprep.subr.bf16.mxu0 %v9281_v4 }
0x1a31   :  { %8628 = vmatpush3.bf16.msra.mxu0 %v10428_v62 }
0x1a32   :  { %8629 = vmatprep.subr.bf16.mxu0 %v9281_v4 }
0x1a35   :  { %8631 = vmatpush3.bf16.msra.mxu0 %v10438_v13 }
0x1a36   :  { %8632 = vmatprep.subr.bf16.mxu0 %v9281_v4 }
0x1a39   :  { %8634 = vmatpush3.bf16.msra.mxu0 %v10448_v24 }
0x1a3a   :  { %8635 = vmatprep.subr.bf16.mxu0 %v9281_v4 }
0x1a3d   :  { %8637 = vmatpush3.bf16.msra.mxu0 %v10458_v9 }
0x1a3e   :  { %8638 = vmatprep.subr.bf16.mxu0 %v9281_v4 }
0x1a41   :  { %8640 = vmatpush3.bf16.msra.mxu0 %v10468_v28 }
0x1a42   :  { %8641 = vmatprep.subr.bf16.mxu0 %v9281_v4 }
0x1a45   :  { %8643 = vmatpush3.bf16.msra.mxu0 %v10482_v43 }
0x1a46   :  { %8644 = vmatprep.subr.bf16.mxu0 %v9281_v4 }
0x1a49   :  { %8646 = vmatpush3.bf16.msra.mxu0 %v10492_v51 }
0x1a4a   :  { %8671 = vmatprep.subr.bf16.mxu0 %v9281_v4 }
0x1aff   :  { %v2697_v32 = vpop.f32.mrb[30].mxu0 }
0x1b00   :  { %v2698_v34 = vadd.f32 %v10139_v37, %v2697_v32  ;;  %v6979_v36 = vpop.f32.mrb[31].mxu0  ;;  %v10629_v32 = vpack.c.bf16 %v2952_v31, %v2951_v29 }
0x1b02   :  { %9235 = vtanh.f32 %v2698_v34 }
0x1b0c   :  { %v9236_v16 = vpop.eup %9235 }
0x1b0d   :  { %7013 = vmatmul.mubr.f32.vlgmr.msra.gmra.mrb[30].mxu1 %v9236_v16 }
0x1b0e   :  { %7082 = vmatprep.mubr.msk.f32.mxu1 %vm9282_vm0, %v9283_v7  ;;  %8649 = vmatpush3.bf16.msra.mxu1 %v10505_v22 }
0x1b0f   :  { %8650 = vmatprep.subr.bf16.mxu1 %v9281_v4 }
0x1b12   :  { %8652 = vmatpush3.bf16.msra.mxu1 %v10511_v23 }
0x1b13   :  { %8653 = vmatprep.subr.bf16.mxu1 %v9281_v4 }
0x1b16   :  { %8655 = vmatpush3.bf16.msra.mxu1 %v10521_v50 }
0x1b17   :  { %8656 = vmatprep.subr.bf16.mxu1 %v9281_v4 }
0x1b1a   :  { %8658 = vmatpush3.bf16.msra.mxu1 %v10531_v12 }
0x1b1b   :  { %8659 = vmatprep.subr.bf16.mxu1 %v9281_v4 }
0x1b1e   :  { %8661 = vmatpush3.bf16.msra.mxu1 %v10541_v63 }
0x1b1f   :  { %8662 = vmatprep.subr.bf16.mxu1 %v9281_v4 }
0x1b22   :  { %8664 = vmatpush3.bf16.msra.mxu1 %v10610_v19 }
0x1b23   :  { %8665 = vmatprep.subr.bf16.mxu1 %v9281_v4 }
0x1b26   :  { %8667 = vmatpush3.bf16.msra.mxu1 %v10620_v27 }
0x1b27   :  { %8668 = vmatprep.subr.bf16.mxu1 %v9281_v4 }
0x1b2a   :  { %8670 = vmatpush3.bf16.msra.mxu1 %v10629_v32 }
0x1b2b   :  { %8695 = vmatprep.subr.bf16.mxu1 %v9281_v4 }
0x1be0   :  { %v2768_v2 = vpop.f32.mrb[30].mxu1 }
0x1be1   :  { %v2769_v58 = vadd.f32 %v10163_v46, %v2768_v2  ;;  %v7014_v61 = vpop.f32.mrb[31].mxu1 }
0x1be3   :  { %v2779_v10 = vadd.f32 %v10409_v3, %v2769_v58  ;;  %v10721_v58 = vld [vmem:[%s11321_s3] ss:$0 sm:$0xff] }
0x1be5   :  { %v2781_v17 = vmul.f32 %v2780_v1, %v2779_v10 }
0x1be7   :  { %v10550_v15 = vadd.f32 %v2781_v17, %v10248_v25 }
0x1be9   :  { %v2784_v30 = vcombine.high %v10550_v15, %v10550_v15  ;;  %v2791_v33 = vrot.slane %v10550_v15, %v9363_v18  ;;  %7048 = vmatmul.mubr.f32.vlgmr.msra.gmra.mrb[32].mxu0 %v10550_v15 }
0x1bea   :  { %8673 = vmatpush3.bf16.msra.mxu0 %v10422_v55  ;;  %7117 = vmatprep.mubr.msk.f32.mxu0 %vm9282_vm0, %v9283_v7 }
0x1beb   :  { %v2798_v38 = vrot.slane %v2784_v30, %v9363_v18  ;;  %v2799_v40 = vcombine.high %v2791_v33, %v2791_v33  ;;  %v2807_v44 = vrot.slane %v2791_v33, %v9363_v18  ;;  %4924 = vst.sshfl [vmem:[%s11324_s6 + $0x4] sm:$0x1 pattern:$0x73625140] %v2791_v33  ;;  %8674 = vmatprep.subr.bf16.mxu0 %v9281_v4  ;;  %v3311_v33 = vstv %s10653_s11 }
0x1bed   :  { %v2800_v25 = vcombine.high %v2798_v38, %v2798_v38  ;;  %v2814_v48 = vrot.slane %v2798_v38, %v9363_v18  ;;  %v2821_v52 = vrot.slane %v2799_v40, %v9363_v18  ;;  %v2829_v3 = vcombine.high %v2807_v44, %v2807_v44  ;;  %4925 = vst.sshfl [vmem:[%s11324_s6 + $0xc] sm:$0x1 pattern:$0x73625140] %v2799_v40 }
0x1bee   :  { %4926 = vst.sshfl [vmem:[%s11324_s6 + $0x24] sm:$0x1 pattern:$0x73625140] %v2798_v38  ;;  %8676 = vmatpush3.bf16.msra.mxu0 %v10428_v62  ;;  %v10746_v38 = vld [vmem:[%s11323_s5] ss:$0 sm:$0xff] }
0x1bef   :  { %v2828_v14 = vrot.slane %v2800_v25, %v9363_v18  ;;  %v2830_v21 = vcombine.high %v2814_v48, %v2814_v48  ;;  %v2831_v8 = vcombine.high %v2821_v52, %v2821_v52  ;;  %2843 = vst [vmem:[%s11324_s6 + $0x14] sm:$0x1] %v2829_v3  ;;  %4927 = vst.sshfl [vmem:[%s11324_s6 + $0x2c] sm:$0x1 pattern:$0x73625140] %v2800_v25  ;;  %8677 = vmatprep.subr.bf16.mxu0 %v9281_v4 }
0x1bf0   :  { %s3457_s5 = smul.f32 0.16666667, %s10653_s11 }
0x1bf1   :  { %v2832_v59 = vcombine.high %v2828_v14, %v2828_v14  ;;  %2844 = vst [vmem:[%s11324_s6 + $0x1c] sm:$0x1] %v2831_v8  ;;  %2847 = vst [vmem:[%s11324_s6 + $0x34] sm:$0x1] %v2830_v21 }
0x1bf2   :  { %8679 = vmatpush3.bf16.msra.mxu0 %v10438_v13  ;;  %v3463_v29 = vstv %s3457_s5 }
0x1bf3   :  { %2848 = vst [vmem:[%s11324_s6 + $0x3c] sm:$0x1] %v2832_v59  ;;  %8680 = vmatprep.subr.bf16.mxu0 %v9281_v4 }
0x1bf6   :  { %8682 = vmatpush3.bf16.msra.mxu0 %v10448_v24 }
0x1bf7   :  { %8683 = vmatprep.subr.bf16.mxu0 %v9281_v4 }
0x1bfa   :  { %8685 = vmatpush3.bf16.msra.mxu0 %v10458_v9 }
0x1bfb   :  { %8686 = vmatprep.subr.bf16.mxu0 %v9281_v4 }
0x1bfe   :  { %8688 = vmatpush3.bf16.msra.mxu0 %v10468_v28 }
0x1bff   :  { %8689 = vmatprep.subr.bf16.mxu0 %v9281_v4 }
0x1c02   :  { %8691 = vmatpush3.bf16.msra.mxu0 %v10482_v43 }
0x1c03   :  { %8692 = vmatprep.subr.bf16.mxu0 %v9281_v4 }
0x1c06   :  { %8694 = vmatpush3.bf16.msra.mxu0 %v10492_v51 }
0x1c07   :  { %8719 = vmatprep.subr.bf16.mxu0 %v9281_v4 }
0x1cbc   :  { %v2932_v34 = vpop.f32.mrb[32].mxu0 }
0x1cbd   :  { %v2933_v36 = vadd.f32 %v10139_v37, %v2932_v34  ;;  %v7049_v16 = vpop.f32.mrb[33].mxu0 }
0x1cbf   :  { %9237 = vtanh.f32 %v2933_v36 }
0x1cc9   :  { %v9238_v39 = vpop.eup %9237 }
0x1cca   :  { %7083 = vmatmul.mubr.f32.vlgmr.msra.gmra.mrb[32].mxu1 %v9238_v39 }
0x1ccb   :  { %8697 = vmatpush3.bf16.msra.mxu1 %v10505_v22  ;;  %7152 = vmatprep.mubr.msk.f32.mxu1 %vm9282_vm0, %v9283_v7 }
0x1ccc   :  { %8698 = vmatprep.subr.bf16.mxu1 %v9281_v4 }
0x1ccf   :  { %8700 = vmatpush3.bf16.msra.mxu1 %v10511_v23 }
0x1cd0   :  { %8701 = vmatprep.subr.bf16.mxu1 %v9281_v4 }
0x1cd3   :  { %8703 = vmatpush3.bf16.msra.mxu1 %v10521_v50 }
0x1cd4   :  { %8704 = vmatprep.subr.bf16.mxu1 %v9281_v4 }
0x1cd7   :  { %8706 = vmatpush3.bf16.msra.mxu1 %v10531_v12 }
0x1cd8   :  { %8707 = vmatprep.subr.bf16.mxu1 %v9281_v4 }
0x1cdb   :  { %8709 = vmatpush3.bf16.msra.mxu1 %v10541_v63 }
0x1cdc   :  { %8710 = vmatprep.subr.bf16.mxu1 %v9281_v4 }
0x1cdf   :  { %8712 = vmatpush3.bf16.msra.mxu1 %v10610_v19 }
0x1ce0   :  { %8713 = vmatprep.subr.bf16.mxu1 %v9281_v4 }
0x1ce3   :  { %8715 = vmatpush3.bf16.msra.mxu1 %v10620_v27 }
0x1ce4   :  { %8716 = vmatprep.subr.bf16.mxu1 %v9281_v4 }
0x1ce7   :  { %8718 = vmatpush3.bf16.msra.mxu1 %v10629_v32 }
0x1ce8   :  { %8743 = vmatprep.subr.bf16.mxu1 %v9281_v4 }
0x1d9d   :  { %v3019_v41 = vpop.f32.mrb[32].mxu1 }
0x1d9e   :  { %v10657_v49 = vadd.f32 %v10163_v46, %v3019_v41  ;;  %v7084_v54 = vpop.f32.mrb[33].mxu1 }
0x1da0   :  { %v3025_v5 = vmul.f32 %v3024_v45, %v10657_v49 }
0x1da2   :  { %v3026_v11 = vadd.f32 %v3025_v5, %v10550_v15 }
0x1da4   :  { %7118 = vmatmul.mubr.f32.vlgmr.msra.gmra.mrb[34].mxu0 %v3026_v11 }
0x1da5   :  { %8721 = vmatpush3.bf16.msra.mxu0 %v10422_v55  ;;  %7187 = vmatprep.mubr.msk.f32.mxu0 %vm9282_vm0, %v9283_v7 }
0x1da6   :  { %8722 = vmatprep.subr.bf16.mxu0 %v9281_v4 }
0x1da9   :  { %8724 = vmatpush3.bf16.msra.mxu0 %v10428_v62 }
0x1daa   :  { %8725 = vmatprep.subr.bf16.mxu0 %v9281_v4 }
0x1dad   :  { %8727 = vmatpush3.bf16.msra.mxu0 %v10438_v13 }
0x1dae   :  { %8728 = vmatprep.subr.bf16.mxu0 %v9281_v4 }
0x1db1   :  { %8730 = vmatpush3.bf16.msra.mxu0 %v10448_v24 }
0x1db2   :  { %8731 = vmatprep.subr.bf16.mxu0 %v9281_v4 }
0x1db5   :  { %8733 = vmatpush3.bf16.msra.mxu0 %v10458_v9 }
0x1db6   :  { %8734 = vmatprep.subr.bf16.mxu0 %v9281_v4 }
0x1db9   :  { %8736 = vmatpush3.bf16.msra.mxu0 %v10468_v28 }
0x1dba   :  { %8737 = vmatprep.subr.bf16.mxu0 %v9281_v4 }
0x1dbd   :  { %8739 = vmatpush3.bf16.msra.mxu0 %v10482_v43 }
0x1dbe   :  { %8740 = vmatprep.subr.bf16.mxu0 %v9281_v4 }
0x1dc1   :  { %8742 = vmatpush3.bf16.msra.mxu0 %v10492_v51 }
0x1dc2   :  { %8767 = vmatprep.subr.bf16.mxu0 %v9281_v4 }
0x1e77   :  { %v3093_v35 = vpop.f32.mrb[34].mxu0 }
0x1e78   :  { %v3094_v42 = vadd.f32 %v10139_v37, %v3093_v35  ;;  %v7119_v47 = vpop.f32.mrb[35].mxu0 }
0x1e7a   :  { %9239 = vtanh.f32 %v3094_v42 }
0x1e84   :  { %v9240_v53 = vpop.eup %9239 }
0x1e85   :  { %7153 = vmatmul.mubr.f32.vlgmr.msra.gmra.mrb[34].mxu1 %v9240_v53 }
0x1e86   :  { %8745 = vmatpush3.bf16.msra.mxu1 %v10505_v22  ;;  %7222 = vmatprep.mubr.msk.f32.mxu1 %vm9282_vm0, %v9283_v7 }
0x1e87   :  { %8746 = vmatprep.subr.bf16.mxu1 %v9281_v4 }
0x1e8a   :  { %8748 = vmatpush3.bf16.msra.mxu1 %v10511_v23 }
0x1e8b   :  { %8749 = vmatprep.subr.bf16.mxu1 %v9281_v4 }
0x1e8e   :  { %8751 = vmatpush3.bf16.msra.mxu1 %v10521_v50 }
0x1e8f   :  { %8752 = vmatprep.subr.bf16.mxu1 %v9281_v4 }
0x1e92   :  { %8754 = vmatpush3.bf16.msra.mxu1 %v10531_v12 }
0x1e93   :  { %8755 = vmatprep.subr.bf16.mxu1 %v9281_v4 }
0x1e96   :  { %8757 = vmatpush3.bf16.msra.mxu1 %v10541_v63 }
0x1e97   :  { %8758 = vmatprep.subr.bf16.mxu1 %v9281_v4 }
0x1e9a   :  { %8760 = vmatpush3.bf16.msra.mxu1 %v10610_v19 }
0x1e9b   :  { %8761 = vmatprep.subr.bf16.mxu1 %v9281_v4 }
0x1e9e   :  { %8763 = vmatpush3.bf16.msra.mxu1 %v10620_v27 }
0x1e9f   :  { %8764 = vmatprep.subr.bf16.mxu1 %v9281_v4 }
0x1ea2   :  { %8766 = vmatpush3.bf16.msra.mxu1 %v10629_v32 }
0x1ea3   :  { %8791 = vmatprep.subr.bf16.mxu1 %v9281_v4 }
0x1f58   :  { %v3164_v37 = vpop.f32.mrb[34].mxu1 }
0x1f59   :  { %v3165_v56 = vadd.f32 %v10163_v46, %v3164_v37  ;;  %v7154_v57 = vpop.f32.mrb[35].mxu1 }
0x1f5b   :  { %v3168_v60 = vmul.f32 %v3165_v56, %v3024_v45  ;;  %v3458_v17 = vmul.f32 2.0, %v3165_v56 }
0x1f5d   :  { %v3169_v2 = vadd.f32 %v3168_v60, %v10550_v15  ;;  %v3459_v25 = vadd.f32 %v3458_v17, %v10657_v49 }
0x1f5f   :  { %7188 = vmatmul.mubr.f32.vlgmr.msra.gmra.mrb[36].mxu0 %v3169_v2 }
0x1f60   :  { %8769 = vmatpush3.bf16.msra.mxu0 %v10422_v55  ;;  %7257 = vmatprep.mubr.msk.f32.mxu0 %vm9282_vm0, %v9283_v7 }
0x1f61   :  { %8770 = vmatprep.subr.bf16.mxu0 %v9281_v4 }
0x1f64   :  { %8772 = vmatpush3.bf16.msra.mxu0 %v10428_v62 }
0x1f65   :  { %8773 = vmatprep.subr.bf16.mxu0 %v9281_v4 }
0x1f68   :  { %8775 = vmatpush3.bf16.msra.mxu0 %v10438_v13 }
0x1f69   :  { %8776 = vmatprep.subr.bf16.mxu0 %v9281_v4 }
0x1f6c   :  { %8778 = vmatpush3.bf16.msra.mxu0 %v10448_v24 }
0x1f6d   :  { %8779 = vmatprep.subr.bf16.mxu0 %v9281_v4 }
0x1f70   :  { %8781 = vmatpush3.bf16.msra.mxu0 %v10458_v9 }
0x1f71   :  { %8782 = vmatprep.subr.bf16.mxu0 %v9281_v4 }
0x1f74   :  { %8784 = vmatpush3.bf16.msra.mxu0 %v10468_v28 }
0x1f75   :  { %8785 = vmatprep.subr.bf16.mxu0 %v9281_v4 }
0x1f78   :  { %8787 = vmatpush3.bf16.msra.mxu0 %v10482_v43 }
0x1f79   :  { %8788 = vmatprep.subr.bf16.mxu0 %v9281_v4 }
0x1f7c   :  { %8790 = vmatpush3.bf16.msra.mxu0 %v10492_v51 }
0x1f7d   :  { %8815 = vmatprep.subr.bf16.mxu0 %v9281_v4 }
0x2032   :  { %v3236_v46 = vpop.f32.mrb[36].mxu0 }
0x2033   :  { %v3237_v61 = vadd.f32 %v10721_v58, %v3236_v46  ;;  %v7189_v1 = vpop.f32.mrb[37].mxu0  ;;  %v3707_v46 = vstv %s3706_s9  ;;  %s4140_s9 = smul.f32 0.16666667, %s10864_s8 }
0x2035   :  { %9241 = vtanh.f32 %v3237_v61 }
0x203f   :  { %v9242_v10 = vpop.eup %9241 }
0x2040   :  { %7223 = vmatmul.mubr.f32.vlgmr.msra.gmra.mrb[36].mxu1 %v9242_v10 }
0x2041   :  { %8793 = vmatpush3.bf16.msra.mxu1 %v10505_v22  ;;  %7292 = vmatprep.mubr.msk.f32.mxu1 %vm9282_vm0, %v9283_v7 }
0x2042   :  { %8794 = vmatprep.subr.bf16.mxu1 %v9281_v4 }
0x2045   :  { %8796 = vmatpush3.bf16.msra.mxu1 %v10511_v23 }
0x2046   :  { %8797 = vmatprep.subr.bf16.mxu1 %v9281_v4 }
0x2049   :  { %8799 = vmatpush3.bf16.msra.mxu1 %v10521_v50 }
0x204a   :  { %8800 = vmatprep.subr.bf16.mxu1 %v9281_v4 }
0x204d   :  { %8802 = vmatpush3.bf16.msra.mxu1 %v10531_v12 }
0x204e   :  { %8803 = vmatprep.subr.bf16.mxu1 %v9281_v4 }
0x2051   :  { %8805 = vmatpush3.bf16.msra.mxu1 %v10541_v63 }
0x2052   :  { %8806 = vmatprep.subr.bf16.mxu1 %v9281_v4 }
0x2055   :  { %8808 = vmatpush3.bf16.msra.mxu1 %v10610_v19 }
0x2056   :  { %8809 = vmatprep.subr.bf16.mxu1 %v9281_v4 }
0x2059   :  { %8811 = vmatpush3.bf16.msra.mxu1 %v10620_v27 }
0x205a   :  { %8812 = vmatprep.subr.bf16.mxu1 %v9281_v4 }
0x205d   :  { %8814 = vmatpush3.bf16.msra.mxu1 %v10629_v32 }
0x205e   :  { %8839 = vmatprep.subr.bf16.mxu1 %v9281_v4 }
0x2113   :  { %v3307_v30 = vpop.f32.mrb[36].mxu1 }
0x2114   :  { %v3308_v40 = vadd.f32 %v10746_v38, %v3307_v30  ;;  %v7224_v44 = vpop.f32.mrb[37].mxu1 }
0x2116   :  { %v3312_v48 = vmul.f32 %v3311_v33, %v3308_v40  ;;  %v3460_v52 = vmul.f32 2.0, %v3308_v40 }
0x2118   :  { %v3313_v3 = vadd.f32 %v3312_v48, %v10550_v15  ;;  %v3461_v14 = vadd.f32 %v3460_v52, %v3459_v25 }
0x211a   :  { %7258 = vmatmul.mubr.f32.vlgmr.msra.gmra.mrb[38].mxu0 %v3313_v3 }
0x211b   :  { %8817 = vmatpush3.bf16.msra.mxu0 %v10422_v55  ;;  %7327 = vmatprep.mubr.msk.f32.mxu0 %vm9282_vm0, %v9283_v7 }
0x211c   :  { %8818 = vmatprep.subr.bf16.mxu0 %v9281_v4 }
0x211f   :  { %8820 = vmatpush3.bf16.msra.mxu0 %v10428_v62 }
0x2120   :  { %8821 = vmatprep.subr.bf16.mxu0 %v9281_v4 }
0x2123   :  { %8823 = vmatpush3.bf16.msra.mxu0 %v10438_v13 }
0x2124   :  { %8824 = vmatprep.subr.bf16.mxu0 %v9281_v4 }
0x2127   :  { %8826 = vmatpush3.bf16.msra.mxu0 %v10448_v24 }
0x2128   :  { %8827 = vmatprep.subr.bf16.mxu0 %v9281_v4 }
0x212b   :  { %8829 = vmatpush3.bf16.msra.mxu0 %v10458_v9 }
0x212c   :  { %8830 = vmatprep.subr.bf16.mxu0 %v9281_v4 }
0x212f   :  { %8832 = vmatpush3.bf16.msra.mxu0 %v10468_v28 }
0x2130   :  { %8833 = vmatprep.subr.bf16.mxu0 %v9281_v4 }
0x2133   :  { %8835 = vmatpush3.bf16.msra.mxu0 %v10482_v43 }
0x2134   :  { %8836 = vmatprep.subr.bf16.mxu0 %v9281_v4 }
0x2137   :  { %8838 = vmatpush3.bf16.msra.mxu0 %v10492_v51 }
0x2138   :  { %8863 = vmatprep.subr.bf16.mxu0 %v9281_v4 }
0x21ed   :  { %v3380_v21 = vpop.f32.mrb[38].mxu0 }
0x21ee   :  { %v3381_v8 = vadd.f32 %v10721_v58, %v3380_v21  ;;  %v7259_v59 = vpop.f32.mrb[39].mxu0  ;;  %v4218_v21 = vld [vmem:[%s11320_s2 + $0x10] sm:$0xff] }
0x21ef   :  { %v4219_v59 = vld [vmem:[%s11320_s2 + $0x18] sm:$0xff] }
0x21f0   :  { %9243 = vtanh.f32 %v3381_v8 }
0x21fa   :  { %v9244_v0 = vpop.eup %9243 }
0x21fb   :  { %7293 = vmatmul.mubr.f32.vlgmr.msra.gmra.mrb[38].mxu1 %v9244_v0  ;;  %v10971_v0 = vpack.c.bf16 %v4219_v59, %v4218_v21 }
0x21fc   :  { %8841 = vmatpush3.bf16.msra.mxu1 %v10505_v22  ;;  %7362 = vmatprep.mubr.msk.f32.mxu1 %vm9282_vm0, %v9283_v7 }
0x21fd   :  { %8842 = vmatprep.subr.bf16.mxu1 %v9281_v4 }
0x2200   :  { %8844 = vmatpush3.bf16.msra.mxu1 %v10511_v23 }
0x2201   :  { %8845 = vmatprep.subr.bf16.mxu1 %v9281_v4 }
0x2204   :  { %8847 = vmatpush3.bf16.msra.mxu1 %v10521_v50 }
0x2205   :  { %8848 = vmatprep.subr.bf16.mxu1 %v9281_v4 }
0x2208   :  { %8850 = vmatpush3.bf16.msra.mxu1 %v10531_v12 }
0x2209   :  { %8851 = vmatprep.subr.bf16.mxu1 %v9281_v4 }
0x220c   :  { %8853 = vmatpush3.bf16.msra.mxu1 %v10541_v63 }
0x220d   :  { %8854 = vmatprep.subr.bf16.mxu1 %v9281_v4 }
0x2210   :  { %8856 = vmatpush3.bf16.msra.mxu1 %v10610_v19 }
0x2211   :  { %8857 = vmatprep.subr.bf16.mxu1 %v9281_v4 }
0x2214   :  { %8859 = vmatpush3.bf16.msra.mxu1 %v10620_v27 }
0x2215   :  { %8860 = vmatprep.subr.bf16.mxu1 %v9281_v4 }
0x2218   :  { %8862 = vmatpush3.bf16.msra.mxu1 %v10629_v32 }
0x2219   :  { %8887 = vmatprep.subr.bf16.mxu1 %v9281_v4 }
0x22ce   :  { %v3451_v6 = vpop.f32.mrb[38].mxu1 }
0x22cf   :  { %v3452_v20 = vadd.f32 %v10746_v38, %v3451_v6  ;;  %v7294_v26 = vpop.f32.mrb[39].mxu1  ;;  %v4220_v6 = vld [vmem:[%s11320_s2 + $0x20] sm:$0xff] }
0x22d1   :  { %v3462_v31 = vadd.f32 %v3461_v14, %v3452_v20  ;;  %v4221_v20 = vld [vmem:[%s11320_s2 + $0x28] sm:$0xff] }
0x22d2   :  { %v10981_v26 = vpack.c.bf16 %v4221_v20, %v4220_v6  ;;  %v4313_v6 = vld [vmem:[%s11322_s4 + $0x50] sm:$0xff]  ;;  %v4314_v20 = vld [vmem:[%s11322_s4 + $0x58] sm:$0xff] }
0x22d3   :  { %v3464_v34 = vmul.f32 %v3463_v29, %v3462_v31  ;;  %v4222_v29 = vld [vmem:[%s11320_s2 + $0x30] sm:$0xff]  ;;  %v4223_v31 = vld [vmem:[%s11320_s2 + $0x38] sm:$0xff] }
0x22d5   :  { %v10791_v36 = vadd.f32 %v3464_v34, %v10550_v15  ;;  %v10991_v34 = vpack.c.bf16 %v4223_v31, %v4222_v29  ;;  %v11153_v29 = vpack.c.bf16 %v4314_v20, %v4313_v6  ;;  %v4315_v31 = vld [vmem:[%s11322_s4 + $0x60] sm:$0xff] }
0x22d7   :  { %v3467_v16 = vcombine.high %v10791_v36, %v10791_v36  ;;  %v3474_v39 = vrot.slane %v10791_v36, %v9363_v18  ;;  %7328 = vmatmul.mubr.f32.vlgmr.msra.gmra.mrb[40].mxu0 %v10791_v36 }
0x22d8   :  { %8865 = vmatpush3.bf16.msra.mxu0 %v10422_v55  ;;  %7397 = vmatprep.mubr.msk.f32.mxu0 %vm9282_vm0, %v9283_v7 }
0x22d9   :  { %v3481_v41 = vrot.slane %v3467_v16, %v9363_v18  ;;  %v3482_v45 = vcombine.high %v3474_v39, %v3474_v39  ;;  %v3490_v49 = vrot.slane %v3474_v39, %v9363_v18  ;;  %4929 = vst.sshfl [vmem:[%s11324_s6 + $0x5] sm:$0x1 pattern:$0x73625140] %v3474_v39  ;;  %8866 = vmatprep.subr.bf16.mxu0 %v9281_v4  ;;  %v4224_v16 = vld [vmem:[%s11320_s2 + $0x40] sm:$0xff]  ;;  %v4225_v39 = vld [vmem:[%s11320_s2 + $0x48] sm:$0xff] }
0x22db   :  { %v3483_v15 = vcombine.high %v3481_v41, %v3481_v41  ;;  %v3497_v54 = vrot.slane %v3481_v41, %v9363_v18  ;;  %v3504_v5 = vrot.slane %v3482_v45, %v9363_v18  ;;  %v3512_v11 = vcombine.high %v3490_v49, %v3490_v49  ;;  %4930 = vst.sshfl [vmem:[%s11324_s6 + $0xd] sm:$0x1 pattern:$0x73625140] %v3482_v45  ;;  %v4226_v45 = vld [vmem:[%s11320_s2 + $0x50] sm:$0xff]  ;;  %v4227_v49 = vld [vmem:[%s11320_s2 + $0x58] sm:$0xff] }
0x22dc   :  { %4931 = vst.sshfl [vmem:[%s11324_s6 + $0x25] sm:$0x1 pattern:$0x73625140] %v3481_v41  ;;  %8868 = vmatpush3.bf16.msra.mxu0 %v10428_v62  ;;  %v11001_v41 = vpack.c.bf16 %v4225_v39, %v4224_v16  ;;  %v4316_v16 = vld [vmem:[%s11322_s4 + $0x68] sm:$0xff] }
0x22dd   :  { %v3511_v35 = vrot.slane %v3483_v15, %v9363_v18  ;;  %v3513_v42 = vcombine.high %v3497_v54, %v3497_v54  ;;  %v3514_v47 = vcombine.high %v3504_v5, %v3504_v5  ;;  %3526 = vst [vmem:[%s11324_s6 + $0x15] sm:$0x1] %v3512_v11  ;;  %4932 = vst.sshfl [vmem:[%s11324_s6 + $0x2d] sm:$0x1 pattern:$0x73625140] %v3483_v15  ;;  %8869 = vmatprep.subr.bf16.mxu0 %v9281_v4 }
0x22de   :  { %v11011_v15 = vpack.c.bf16 %v4227_v49, %v4226_v45  ;;  %v11163_v39 = vpack.c.bf16 %v4316_v16, %v4315_v31  ;;  %v4317_v45 = vld [vmem:[%s11322_s4 + $0x70] sm:$0xff]  ;;  %v4318_v49 = vld [vmem:[%s11322_s4 + $0x78] sm:$0xff] }
0x22df   :  { %v3515_v53 = vcombine.high %v3511_v35, %v3511_v35  ;;  %3527 = vst [vmem:[%s11324_s6 + $0x1d] sm:$0x1] %v3514_v47  ;;  %3530 = vst [vmem:[%s11324_s6 + $0x35] sm:$0x1] %v3513_v42  ;;  %v4228_v42 = vld [vmem:[%s11320_s2 + $0x60] sm:$0xff]  ;;  %v4229_v47 = vld [vmem:[%s11320_s2 + $0x68] sm:$0xff] }
0x22e0   :  { %8871 = vmatpush3.bf16.msra.mxu0 %v10438_v13 }
0x22e1   :  { %3531 = vst [vmem:[%s11324_s6 + $0x3d] sm:$0x1] %v3515_v53  ;;  %8872 = vmatprep.subr.bf16.mxu0 %v9281_v4  ;;  %v11025_v53 = vpack.c.bf16 %v4229_v47, %v4228_v42 }
0x22e4   :  { %8874 = vmatpush3.bf16.msra.mxu0 %v10448_v24 }
0x22e5   :  { %8875 = vmatprep.subr.bf16.mxu0 %v9281_v4 }
0x22e8   :  { %8877 = vmatpush3.bf16.msra.mxu0 %v10458_v9 }
0x22e9   :  { %8878 = vmatprep.subr.bf16.mxu0 %v9281_v4 }
0x22ec   :  { %8880 = vmatpush3.bf16.msra.mxu0 %v10468_v28 }
0x22ed   :  { %8881 = vmatprep.subr.bf16.mxu0 %v9281_v4 }
0x22f0   :  { %8883 = vmatpush3.bf16.msra.mxu0 %v10482_v43 }
0x22f1   :  { %8884 = vmatprep.subr.bf16.mxu0 %v9281_v4 }
0x22f4   :  { %8886 = vmatpush3.bf16.msra.mxu0 %v10492_v51 }
0x22f5   :  { %8911 = vmatprep.subr.bf16.mxu0 %v9281_v4 }
0x23aa   :  { %v3615_v37 = vpop.f32.mrb[40].mxu0 }
0x23ab   :  { %v3616_v56 = vadd.f32 %v10721_v58, %v3615_v37  ;;  %v7329_v57 = vpop.f32.mrb[41].mxu0  ;;  %v4230_v37 = vld [vmem:[%s11320_s2 + $0x70] sm:$0xff] }
0x23ad   :  { %9245 = vtanh.f32 %v3616_v56  ;;  %v4231_v56 = vld [vmem:[%s11320_s2 + $0x78] sm:$0xff] }
0x23ae   :  { %v11035_v57 = vpack.c.bf16 %v4231_v56, %v4230_v37 }
0x23b7   :  { %v9246_v60 = vpop.eup %9245 }
0x23b8   :  { %7363 = vmatmul.mubr.f32.vlgmr.msra.gmra.mrb[40].mxu1 %v9246_v60  ;;  %v4303_v60 = vld [vmem:[%s11322_s4] sm:$0xff] }
0x23b9   :  { %8889 = vmatpush3.bf16.msra.mxu1 %v10505_v22  ;;  %7432 = vmatprep.mubr.msk.f32.mxu1 %vm9282_vm0, %v9283_v7 }
0x23ba   :  { %8890 = vmatprep.subr.bf16.mxu1 %v9281_v4 }
0x23bd   :  { %8892 = vmatpush3.bf16.msra.mxu1 %v10511_v23 }
0x23be   :  { %8893 = vmatprep.subr.bf16.mxu1 %v9281_v4 }
0x23c1   :  { %8895 = vmatpush3.bf16.msra.mxu1 %v10521_v50 }
0x23c2   :  { %8896 = vmatprep.subr.bf16.mxu1 %v9281_v4 }
0x23c5   :  { %8898 = vmatpush3.bf16.msra.mxu1 %v10531_v12 }
0x23c6   :  { %8899 = vmatprep.subr.bf16.mxu1 %v9281_v4 }
0x23c9   :  { %8901 = vmatpush3.bf16.msra.mxu1 %v10541_v63 }
0x23ca   :  { %8902 = vmatprep.subr.bf16.mxu1 %v9281_v4 }
0x23cd   :  { %8904 = vmatpush3.bf16.msra.mxu1 %v10610_v19 }
0x23ce   :  { %8905 = vmatprep.subr.bf16.mxu1 %v9281_v4 }
0x23d1   :  { %8907 = vmatpush3.bf16.msra.mxu1 %v10620_v27 }
0x23d2   :  { %8908 = vmatprep.subr.bf16.mxu1 %v9281_v4 }
0x23d5   :  { %8910 = vmatpush3.bf16.msra.mxu1 %v10629_v32 }
0x23d6   :  { %8935 = vmatprep.subr.bf16.mxu1 %v9281_v4 }
0x248b   :  { %v3702_v2 = vpop.f32.mrb[40].mxu1 }
0x248c   :  { %v10868_v61 = vadd.f32 %v10746_v38, %v3702_v2  ;;  %v7364_v1 = vpop.f32.mrb[41].mxu1  ;;  %v4304_v2 = vld [vmem:[%s11322_s4 + $0x8] sm:$0xff] }
0x248d   :  { %v4306_v1 = vld [vmem:[%s11322_s4 + $0x18] sm:$0xff] }
0x248e   :  { %v3708_v10 = vmul.f32 %v3707_v46, %v10868_v61 }
0x2490   :  { %v3709_v17 = vadd.f32 %v3708_v10, %v10791_v36 }
0x2492   :  { %7398 = vmatmul.mubr.f32.vlgmr.msra.gmra.mrb[42].mxu0 %v3709_v17  ;;  %v4307_v17 = vld [vmem:[%s11322_s4 + $0x20] sm:$0xff] }
0x2493   :  { %8913 = vmatpush3.bf16.msra.mxu0 %v10422_v55  ;;  %7467 = vmatprep.mubr.msk.f32.mxu0 %vm9282_vm0, %v9283_v7 }
0x2494   :  { %8914 = vmatprep.subr.bf16.mxu0 %v9281_v4 }
0x2497   :  { %8916 = vmatpush3.bf16.msra.mxu0 %v10428_v62 }
0x2498   :  { %8917 = vmatprep.subr.bf16.mxu0 %v9281_v4 }
0x249b   :  { %8919 = vmatpush3.bf16.msra.mxu0 %v10438_v13 }
0x249c   :  { %8920 = vmatprep.subr.bf16.mxu0 %v9281_v4 }
0x249f   :  { %8922 = vmatpush3.bf16.msra.mxu0 %v10448_v24 }
0x24a0   :  { %8923 = vmatprep.subr.bf16.mxu0 %v9281_v4 }
0x24a3   :  { %8925 = vmatpush3.bf16.msra.mxu0 %v10458_v9 }
0x24a4   :  { %8926 = vmatprep.subr.bf16.mxu0 %v9281_v4 }
0x24a7   :  { %8928 = vmatpush3.bf16.msra.mxu0 %v10468_v28 }
0x24a8   :  { %8929 = vmatprep.subr.bf16.mxu0 %v9281_v4 }
0x24ab   :  { %8931 = vmatpush3.bf16.msra.mxu0 %v10482_v43 }
0x24ac   :  { %8932 = vmatprep.subr.bf16.mxu0 %v9281_v4 }
0x24af   :  { %8934 = vmatpush3.bf16.msra.mxu0 %v10492_v51 }
0x24b0   :  { %8959 = vmatprep.subr.bf16.mxu0 %v9281_v4 }
0x2565   :  { %v3776_v30 = vpop.f32.mrb[42].mxu0 }
0x2566   :  { %v3777_v33 = vadd.f32 %v10721_v58, %v3776_v30  ;;  %v7399_v40 = vpop.f32.mrb[43].mxu0  ;;  %v4308_v30 = vld [vmem:[%s11322_s4 + $0x28] sm:$0xff] }
0x2567   :  { %v4309_v40 = vld [vmem:[%s11322_s4 + $0x30] sm:$0xff] }
0x2568   :  { %9247 = vtanh.f32 %v3777_v33  ;;  %v11064_v33 = vpack.c.bf16 %v4308_v30, %v4307_v17 }
0x2572   :  { %v9248_v44 = vpop.eup %9247 }
0x2573   :  { %7433 = vmatmul.mubr.f32.vlgmr.msra.gmra.mrb[42].mxu1 %v9248_v44  ;;  %v4310_v44 = vld [vmem:[%s11322_s4 + $0x38] sm:$0xff] }
0x2574   :  { %8937 = vmatpush3.bf16.msra.mxu1 %v10505_v22  ;;  %7502 = vmatprep.mubr.msk.f32.mxu1 %vm9282_vm0, %v9283_v7 }
0x2575   :  { %8938 = vmatprep.subr.bf16.mxu1 %v9281_v4 }
0x2578   :  { %8940 = vmatpush3.bf16.msra.mxu1 %v10511_v23 }
0x2579   :  { %8941 = vmatprep.subr.bf16.mxu1 %v9281_v4 }
0x257c   :  { %8943 = vmatpush3.bf16.msra.mxu1 %v10521_v50 }
0x257d   :  { %8944 = vmatprep.subr.bf16.mxu1 %v9281_v4 }
0x2580   :  { %8946 = vmatpush3.bf16.msra.mxu1 %v10531_v12 }
0x2581   :  { %8947 = vmatprep.subr.bf16.mxu1 %v9281_v4 }
0x2584   :  { %8949 = vmatpush3.bf16.msra.mxu1 %v10541_v63 }
0x2585   :  { %8950 = vmatprep.subr.bf16.mxu1 %v9281_v4 }
0x2588   :  { %8952 = vmatpush3.bf16.msra.mxu1 %v10610_v19 }
0x2589   :  { %8953 = vmatprep.subr.bf16.mxu1 %v9281_v4 }
0x258c   :  { %8955 = vmatpush3.bf16.msra.mxu1 %v10620_v27 }
0x258d   :  { %8956 = vmatprep.subr.bf16.mxu1 %v9281_v4 }
0x2590   :  { %8958 = vmatpush3.bf16.msra.mxu1 %v10629_v32 }
0x2591   :  { %8983 = vmatprep.subr.bf16.mxu1 %v9281_v4 }
0x2646   :  { %v3847_v25 = vpop.f32.mrb[42].mxu1 }
0x2647   :  { %v3848_v48 = vadd.f32 %v10746_v38, %v3847_v25  ;;  %v7434_v52 = vpop.f32.mrb[43].mxu1  ;;  %v11074_v25 = vpack.c.bf16 %v4310_v44, %v4309_v40 }
0x2648   :  { %v4312_v52 = vld [vmem:[%s11322_s4 + $0x48] sm:$0xff] }
0x2649   :  { %v3851_v3 = vmul.f32 %v3848_v48, %v3707_v46  ;;  %v4305_v46 = vld [vmem:[%s11322_s4 + $0x10] sm:$0xff] }
0x264a   :  { %v11054_v10 = vpack.c.bf16 %v4306_v1, %v4305_v46 }
0x264b   :  { %v3852_v14 = vadd.f32 %v3851_v3, %v10791_v36 }
0x264d   :  { %7468 = vmatmul.mubr.f32.vlgmr.msra.gmra.mrb[44].mxu0 %v3852_v14 }
0x264e   :  { %8961 = vmatpush3.bf16.msra.mxu0 %v10422_v55  ;;  %7537 = vmatprep.mubr.msk.f32.mxu0 %vm9282_vm0, %v9283_v7 }
0x264f   :  { %8962 = vmatprep.subr.bf16.mxu0 %v9281_v4 }
0x2652   :  { %8964 = vmatpush3.bf16.msra.mxu0 %v10428_v62 }
0x2653   :  { %8965 = vmatprep.subr.bf16.mxu0 %v9281_v4 }
0x2656   :  { %8967 = vmatpush3.bf16.msra.mxu0 %v10438_v13 }
0x2657   :  { %8968 = vmatprep.subr.bf16.mxu0 %v9281_v4 }
0x265a   :  { %8970 = vmatpush3.bf16.msra.mxu0 %v10448_v24 }
0x265b   :  { %8971 = vmatprep.subr.bf16.mxu0 %v9281_v4 }
0x265e   :  { %8973 = vmatpush3.bf16.msra.mxu0 %v10458_v9  ;;  %v4141_v9 = vmul.f32 2.0, %v3848_v48  ;;  %v4311_v48 = vld [vmem:[%s11322_s4 + $0x40] sm:$0xff]  ;;  %s11196_s4 = sld [smem:[#allocation2 + $0x6]] }
0x265f   :  { %8974 = vmatprep.subr.bf16.mxu0 %v9281_v4  ;;  %v11084_v3 = vpack.c.bf16 %v4312_v52, %v4311_v48 }
0x2662   :  { %8976 = vmatpush3.bf16.msra.mxu0 %v10468_v28 }
0x2663   :  { %8977 = vmatprep.subr.bf16.mxu0 %v9281_v4 }
0x2664   :  { %s4823_s11 = smul.f32 0.16666667, %s11196_s4 }
0x2666   :  { %8979 = vmatpush3.bf16.msra.mxu0 %v10482_v43  ;;  %v3994_v43 = vstv %s10864_s8  ;;  %s4389_s8 = smul.f32 0.5, %s11196_s4 }
0x2667   :  { %8980 = vmatprep.subr.bf16.mxu0 %v9281_v4 }
0x2668   :  { %v4390_v37 = vstv %s4389_s8 }
0x266a   :  { %8982 = vmatpush3.bf16.msra.mxu0 %v10492_v51 }
0x266b   :  { %9007 = vmatprep.subr.bf16.mxu0 %v9281_v4 }
0x2720   :  { %v3919_v55 = vpop.f32.mrb[44].mxu0 }
0x2721   :  { %v3920_v62 = vadd.f32 %v10721_v58, %v3919_v55  ;;  %v7469_v13 = vpop.f32.mrb[45].mxu0 }
0x2722   :  { %v4146_v13 = vstv %s4140_s9 }
0x2723   :  { %9249 = vtanh.f32 %v3920_v62 }
0x272d   :  { %v9250_v24 = vpop.eup %9249 }
0x272e   :  { %7503 = vmatmul.mubr.f32.vlgmr.msra.gmra.mrb[44].mxu1 %v9250_v24 }
0x272f   :  { %8985 = vmatpush3.bf16.msra.mxu1 %v10505_v22  ;;  %7572 = vmatprep.mubr.msk.f32.mxu1 %vm9282_vm0, %v9283_v7 }
0x2730   :  { %8986 = vmatprep.subr.bf16.mxu1 %v9281_v4 }
0x2733   :  { %8988 = vmatpush3.bf16.msra.mxu1 %v10511_v23  ;;  %v4142_v23 = vadd.f32 %v4141_v9, %v10868_v61  ;;  %v11048_v61 = vpack.c.bf16 %v4304_v2, %v4303_v60 }
0x2734   :  { %8989 = vmatprep.subr.bf16.mxu1 %v9281_v4 }
0x2737   :  { %8991 = vmatpush3.bf16.msra.mxu1 %v10521_v50 }
0x2738   :  { %8992 = vmatprep.subr.bf16.mxu1 %v9281_v4 }
0x273b   :  { %8994 = vmatpush3.bf16.msra.mxu1 %v10531_v12 }
0x273c   :  { %8995 = vmatprep.subr.bf16.mxu1 %v9281_v4 }
0x273f   :  { %8997 = vmatpush3.bf16.msra.mxu1 %v10541_v63 }
0x2740   :  { %8998 = vmatprep.subr.bf16.mxu1 %v9281_v4 }
0x2743   :  { %9000 = vmatpush3.bf16.msra.mxu1 %v10610_v19 }
0x2744   :  { %9001 = vmatprep.subr.bf16.mxu1 %v9281_v4 }
0x2747   :  { %9003 = vmatpush3.bf16.msra.mxu1 %v10620_v27  ;;  %v4216_v27 = vld [vmem:[%s11320_s2] sm:$0xff] }
0x2748   :  { %9004 = vmatprep.subr.bf16.mxu1 %v9281_v4 }
0x274b   :  { %9006 = vmatpush3.bf16.msra.mxu1 %v10629_v32  ;;  %v4217_v32 = vld [vmem:[%s11320_s2 + $0x8] sm:$0xff] }
0x274c   :  { %9031 = vmatprep.subr.bf16.mxu1 %v9281_v4  ;;  %v10965_v8 = vpack.c.bf16 %v4217_v32, %v4216_v27 }
0x2801   :  { %v3990_v28 = vpop.f32.mrb[44].mxu1 }
0x2802   :  { %v3991_v51 = vadd.f32 %v10746_v38, %v3990_v28  ;;  %v7504_v22 = vpop.f32.mrb[45].mxu1 }
0x2804   :  { %v3995_v50 = vmul.f32 %v3994_v43, %v3991_v51  ;;  %v4143_v12 = vmul.f32 2.0, %v3991_v51 }
0x2806   :  { %v3996_v63 = vadd.f32 %v3995_v50, %v10791_v36  ;;  %v10952_v19 = vadd.f32 %v4143_v12, %v4142_v23 }
0x2808   :  { %7538 = vmatmul.mubr.f32.vlgmr.msra.gmra.mrb[46].mxu0 %v3996_v63 }
0x2809   :  { %7607 = vmatprep.mubr.msk.f32.mxu0 %vm9282_vm0, %v9283_v7  ;;  %9009 = vmatpush3.bf16.msra.mxu0 %v10965_v8 }
0x280a   :  { %9010 = vmatprep.subr.bf16.mxu0 %v9281_v4 }
0x280d   :  { %9012 = vmatpush3.bf16.msra.mxu0 %v10971_v0 }
0x280e   :  { %9013 = vmatprep.subr.bf16.mxu0 %v9281_v4 }
0x2811   :  { %9015 = vmatpush3.bf16.msra.mxu0 %v10981_v26 }
0x2812   :  { %9016 = vmatprep.subr.bf16.mxu0 %v9281_v4 }
0x2815   :  { %9018 = vmatpush3.bf16.msra.mxu0 %v10991_v34 }
0x2816   :  { %9019 = vmatprep.subr.bf16.mxu0 %v9281_v4 }
0x2819   :  { %9021 = vmatpush3.bf16.msra.mxu0 %v11001_v41 }
0x281a   :  { %9022 = vmatprep.subr.bf16.mxu0 %v9281_v4 }
0x281d   :  { %9024 = vmatpush3.bf16.msra.mxu0 %v11011_v15 }
0x281e   :  { %9025 = vmatprep.subr.bf16.mxu0 %v9281_v4 }
0x2821   :  { %9027 = vmatpush3.bf16.msra.mxu0 %v11025_v53 }
0x2822   :  { %9028 = vmatprep.subr.bf16.mxu0 %v9281_v4 }
0x2825   :  { %9030 = vmatpush3.bf16.msra.mxu0 %v11035_v57 }
0x2826   :  { %9055 = vmatprep.subr.bf16.mxu0 %v9281_v4 }
0x28db   :  { %v4063_v54 = vpop.f32.mrb[46].mxu0 }
0x28dc   :  { %v4064_v5 = vadd.f32 %v10721_v58, %v4063_v54  ;;  %v7539_v11 = vpop.f32.mrb[47].mxu0  ;;  %v11172_v54 = vpack.c.bf16 %v4318_v49, %v4317_v45 }
0x28de   :  { %9251 = vtanh.f32 %v4064_v5 }
0x28e8   :  { %v9252_v35 = vpop.eup %9251 }
0x28e9   :  { %7573 = vmatmul.mubr.f32.vlgmr.msra.gmra.mrb[46].mxu1 %v9252_v35 }
0x28ea   :  { %7642 = vmatprep.mubr.msk.f32.mxu1 %vm9282_vm0, %v9283_v7  ;;  %9033 = vmatpush3.bf16.msra.mxu1 %v11048_v61 }
0x28eb   :  { %9034 = vmatprep.subr.bf16.mxu1 %v9281_v4 }
0x28ee   :  { %9036 = vmatpush3.bf16.msra.mxu1 %v11054_v10 }
0x28ef   :  { %9037 = vmatprep.subr.bf16.mxu1 %v9281_v4 }
0x28f2   :  { %9039 = vmatpush3.bf16.msra.mxu1 %v11064_v33 }
0x28f3   :  { %9040 = vmatprep.subr.bf16.mxu1 %v9281_v4 }
0x28f6   :  { %9042 = vmatpush3.bf16.msra.mxu1 %v11074_v25 }
0x28f7   :  { %9043 = vmatprep.subr.bf16.mxu1 %v9281_v4 }
0x28fa   :  { %9045 = vmatpush3.bf16.msra.mxu1 %v11084_v3 }
0x28fb   :  { %9046 = vmatprep.subr.bf16.mxu1 %v9281_v4 }
0x28fe   :  { %9048 = vmatpush3.bf16.msra.mxu1 %v11153_v29 }
0x28ff   :  { %9049 = vmatprep.subr.bf16.mxu1 %v9281_v4 }
0x2902   :  { %9051 = vmatpush3.bf16.msra.mxu1 %v11163_v39 }
0x2903   :  { %9052 = vmatprep.subr.bf16.mxu1 %v9281_v4 }
0x2906   :  { %9054 = vmatpush3.bf16.msra.mxu1 %v11172_v54 }
0x2907   :  { %9079 = vmatprep.subr.bf16.mxu1 %v9281_v4 }
0x29bc   :  { %v4134_v14 = vpop.f32.mrb[46].mxu1 }
0x29bd   :  { %v4135_v55 = vadd.f32 %v10746_v38, %v4134_v14  ;;  %v7574_v62 = vpop.f32.mrb[47].mxu1 }
0x29bf   :  { %v4145_v24 = vadd.f32 %v10952_v19, %v4135_v55 }
0x29c1   :  { %v4147_v9 = vmul.f32 %v4146_v13, %v4145_v24 }
0x29c3   :  { %v11093_v28 = vadd.f32 %v4147_v9, %v10791_v36 }
0x29c5   :  { %v4150_v43 = vcombine.high %v11093_v28, %v11093_v28  ;;  %v4157_v51 = vrot.slane %v11093_v28, %v9363_v18  ;;  %7608 = vmatmul.mubr.f32.vlgmr.msra.gmra.mrb[48].mxu0 %v11093_v28 }
0x29c6   :  { %9057 = vmatpush3.bf16.msra.mxu0 %v10965_v8  ;;  %7677 = vmatprep.mubr.msk.f32.mxu0 %vm9282_vm0, %v9283_v7 }
0x29c7   :  { %v4164_v22 = vrot.slane %v4150_v43, %v9363_v18  ;;  %v4165_v23 = vcombine.high %v4157_v51, %v4157_v51  ;;  %v4173_v50 = vrot.slane %v4157_v51, %v9363_v18  ;;  %4934 = vst.sshfl [vmem:[%s11324_s6 + $0x6] sm:$0x1 pattern:$0x73625140] %v4157_v51  ;;  %9058 = vmatprep.subr.bf16.mxu0 %v9281_v4 }
0x29c9   :  { %v4166_v36 = vcombine.high %v4164_v22, %v4164_v22  ;;  %v4180_v12 = vrot.slane %v4164_v22, %v9363_v18  ;;  %v4187_v63 = vrot.slane %v4165_v23, %v9363_v18  ;;  %v4195_v19 = vcombine.high %v4173_v50, %v4173_v50  ;;  %4935 = vst.sshfl [vmem:[%s11324_s6 + $0xe] sm:$0x1 pattern:$0x73625140] %v4165_v23 }
0x29ca   :  { %4936 = vst.sshfl [vmem:[%s11324_s6 + $0x26] sm:$0x1 pattern:$0x73625140] %v4164_v22  ;;  %9060 = vmatpush3.bf16.msra.mxu0 %v10971_v0  ;;  %v4829_v22 = vstv %s4823_s11 }
0x29cb   :  { %v4194_v27 = vrot.slane %v4166_v36, %v9363_v18  ;;  %v4196_v32 = vcombine.high %v4180_v12, %v4180_v12  ;;  %v4197_v21 = vcombine.high %v4187_v63, %v4187_v63  ;;  %4209 = vst [vmem:[%s11324_s6 + $0x16] sm:$0x1] %v4195_v19  ;;  %4937 = vst.sshfl [vmem:[%s11324_s6 + $0x2e] sm:$0x1 pattern:$0x73625140] %v4166_v36  ;;  %9061 = vmatprep.subr.bf16.mxu0 %v9281_v4 }
0x29cd   :  { %v4198_v59 = vcombine.high %v4194_v27, %v4194_v27  ;;  %4210 = vst [vmem:[%s11324_s6 + $0x1e] sm:$0x1] %v4197_v21  ;;  %4213 = vst [vmem:[%s11324_s6 + $0x36] sm:$0x1] %v4196_v32 }
0x29ce   :  { %9063 = vmatpush3.bf16.msra.mxu0 %v10981_v26 }
0x29cf   :  { %4214 = vst [vmem:[%s11324_s6 + $0x3e] sm:$0x1] %v4198_v59  ;;  %9064 = vmatprep.subr.bf16.mxu0 %v9281_v4 }
0x29d2   :  { %9066 = vmatpush3.bf16.msra.mxu0 %v10991_v34 }
0x29d3   :  { %9067 = vmatprep.subr.bf16.mxu0 %v9281_v4 }
0x29d6   :  { %9069 = vmatpush3.bf16.msra.mxu0 %v11001_v41 }
0x29d7   :  { %9070 = vmatprep.subr.bf16.mxu0 %v9281_v4 }
0x29da   :  { %9072 = vmatpush3.bf16.msra.mxu0 %v11011_v15 }
0x29db   :  { %9073 = vmatprep.subr.bf16.mxu0 %v9281_v4 }
0x29de   :  { %9075 = vmatpush3.bf16.msra.mxu0 %v11025_v53 }
0x29df   :  { %9076 = vmatprep.subr.bf16.mxu0 %v9281_v4 }
0x29e2   :  { %9078 = vmatpush3.bf16.msra.mxu0 %v11035_v57 }
0x29e3   :  { %9103 = vmatprep.subr.bf16.mxu0 %v9281_v4 }
0x2a98   :  { %v4298_v5 = vpop.f32.mrb[48].mxu0 }
0x2a99   :  { %v4299_v11 = vadd.f32 %v10721_v58, %v4298_v5  ;;  %v7609_v35 = vpop.f32.mrb[49].mxu0 }
0x2a9b   :  { %9253 = vtanh.f32 %v4299_v11 }
0x2aa5   :  { %v9254_v42 = vpop.eup %9253 }
0x2aa6   :  { %7643 = vmatmul.mubr.f32.vlgmr.msra.gmra.mrb[48].mxu1 %v9254_v42 }
0x2aa7   :  { %9081 = vmatpush3.bf16.msra.mxu1 %v11048_v61  ;;  %7712 = vmatprep.mubr.msk.f32.mxu1 %vm9282_vm0, %v9283_v7 }
0x2aa8   :  { %9082 = vmatprep.subr.bf16.mxu1 %v9281_v4 }
0x2aab   :  { %9084 = vmatpush3.bf16.msra.mxu1 %v11054_v10 }
0x2aac   :  { %9085 = vmatprep.subr.bf16.mxu1 %v9281_v4 }
0x2aaf   :  { %9087 = vmatpush3.bf16.msra.mxu1 %v11064_v33 }
0x2ab0   :  { %9088 = vmatprep.subr.bf16.mxu1 %v9281_v4 }
0x2ab3   :  { %9090 = vmatpush3.bf16.msra.mxu1 %v11074_v25 }
0x2ab4   :  { %9091 = vmatprep.subr.bf16.mxu1 %v9281_v4 }
0x2ab7   :  { %9093 = vmatpush3.bf16.msra.mxu1 %v11084_v3 }
0x2ab8   :  { %9094 = vmatprep.subr.bf16.mxu1 %v9281_v4 }
0x2abb   :  { %9096 = vmatpush3.bf16.msra.mxu1 %v11153_v29 }
0x2abc   :  { %9097 = vmatprep.subr.bf16.mxu1 %v9281_v4 }
0x2abf   :  { %9099 = vmatpush3.bf16.msra.mxu1 %v11163_v39 }
0x2ac0   :  { %9100 = vmatprep.subr.bf16.mxu1 %v9281_v4 }
0x2ac3   :  { %9102 = vmatpush3.bf16.msra.mxu1 %v11172_v54 }
0x2ac4   :  { %9127 = vmatprep.subr.bf16.mxu1 %v9281_v4 }
0x2b79   :  { %v4385_v47 = vpop.f32.mrb[48].mxu1 }
0x2b7a   :  { %v11200_v56 = vadd.f32 %v10746_v38, %v4385_v47  ;;  %v7644_v60 = vpop.f32.mrb[49].mxu1 }
0x2b7c   :  { %v4391_v2 = vmul.f32 %v4390_v37, %v11200_v56 }
0x2b7e   :  { %v4392_v46 = vadd.f32 %v4391_v2, %v11093_v28 }
0x2b80   :  { %7678 = vmatmul.mubr.f32.vlgmr.msra.gmra.mrb[50].mxu0 %v4392_v46 }
0x2b81   :  { %9105 = vmatpush3.bf16.msra.mxu0 %v10965_v8  ;;  %7747 = vmatprep.mubr.msk.f32.mxu0 %vm9282_vm0, %v9283_v7 }
0x2b82   :  { %9106 = vmatprep.subr.bf16.mxu0 %v9281_v4 }
0x2b85   :  { %9108 = vmatpush3.bf16.msra.mxu0 %v10971_v0 }
0x2b86   :  { %9109 = vmatprep.subr.bf16.mxu0 %v9281_v4 }
0x2b89   :  { %9111 = vmatpush3.bf16.msra.mxu0 %v10981_v26 }
0x2b8a   :  { %9112 = vmatprep.subr.bf16.mxu0 %v9281_v4 }
0x2b8d   :  { %9114 = vmatpush3.bf16.msra.mxu0 %v10991_v34 }
0x2b8e   :  { %9115 = vmatprep.subr.bf16.mxu0 %v9281_v4 }
0x2b91   :  { %9117 = vmatpush3.bf16.msra.mxu0 %v11001_v41 }
0x2b92   :  { %9118 = vmatprep.subr.bf16.mxu0 %v9281_v4 }
0x2b95   :  { %9120 = vmatpush3.bf16.msra.mxu0 %v11011_v15 }
0x2b96   :  { %9121 = vmatprep.subr.bf16.mxu0 %v9281_v4 }
0x2b99   :  { %9123 = vmatpush3.bf16.msra.mxu0 %v11025_v53 }
0x2b9a   :  { %9124 = vmatprep.subr.bf16.mxu0 %v9281_v4 }
0x2b9d   :  { %9126 = vmatpush3.bf16.msra.mxu0 %v11035_v57 }
0x2b9e   :  { %9151 = vmatprep.subr.bf16.mxu0 %v9281_v4 }
0x2c53   :  { %v4459_v1 = vpop.f32.mrb[50].mxu0 }
0x2c54   :  { %v4460_v17 = vadd.f32 %v10721_v58, %v4459_v1  ;;  %v7679_v30 = vpop.f32.mrb[51].mxu0 }
0x2c56   :  { %9255 = vtanh.f32 %v4460_v17 }
0x2c60   :  { %v9256_v40 = vpop.eup %9255 }
0x2c61   :  { %7713 = vmatmul.mubr.f32.vlgmr.msra.gmra.mrb[50].mxu1 %v9256_v40 }
0x2c62   :  { %9129 = vmatpush3.bf16.msra.mxu1 %v11048_v61  ;;  %7782 = vmatprep.mubr.msk.f32.mxu1 %vm9282_vm0, %v9283_v7 }
0x2c63   :  { %9130 = vmatprep.subr.bf16.mxu1 %v9281_v4 }
0x2c66   :  { %9132 = vmatpush3.bf16.msra.mxu1 %v11054_v10 }
0x2c67   :  { %9133 = vmatprep.subr.bf16.mxu1 %v9281_v4 }
0x2c6a   :  { %9135 = vmatpush3.bf16.msra.mxu1 %v11064_v33 }
0x2c6b   :  { %9136 = vmatprep.subr.bf16.mxu1 %v9281_v4 }
0x2c6e   :  { %9138 = vmatpush3.bf16.msra.mxu1 %v11074_v25 }
0x2c6f   :  { %9139 = vmatprep.subr.bf16.mxu1 %v9281_v4 }
0x2c72   :  { %9141 = vmatpush3.bf16.msra.mxu1 %v11084_v3 }
0x2c73   :  { %9142 = vmatprep.subr.bf16.mxu1 %v9281_v4 }
0x2c76   :  { %9144 = vmatpush3.bf16.msra.mxu1 %v11153_v29 }
0x2c77   :  { %9145 = vmatprep.subr.bf16.mxu1 %v9281_v4 }
0x2c7a   :  { %9147 = vmatpush3.bf16.msra.mxu1 %v11163_v39 }
0x2c7b   :  { %9148 = vmatprep.subr.bf16.mxu1 %v9281_v4 }
0x2c7e   :  { %9150 = vmatpush3.bf16.msra.mxu1 %v11172_v54 }
0x2c7f   :  { %9175 = vmatprep.subr.bf16.mxu1 %v9281_v4 }
0x2d34   :  { %v4530_v44 = vpop.f32.mrb[50].mxu1 }
0x2d35   :  { %v4531_v48 = vadd.f32 %v10746_v38, %v4530_v44  ;;  %v7714_v52 = vpop.f32.mrb[51].mxu1 }
0x2d37   :  { %v4534_v14 = vmul.f32 %v4531_v48, %v4390_v37 }
0x2d39   :  { %v4535_v55 = vadd.f32 %v4534_v14, %v11093_v28 }
0x2d3b   :  { %7748 = vmatmul.mubr.f32.vlgmr.msra.gmra.mrb[52].mxu0 %v4535_v55 }
0x2d3c   :  { %9153 = vmatpush3.bf16.msra.mxu0 %v10965_v8  ;;  %7817 = vmatprep.mubr.msk.f32.mxu0 %vm9282_vm0, %v9283_v7 }
0x2d3d   :  { %9154 = vmatprep.subr.bf16.mxu0 %v9281_v4 }
0x2d40   :  { %9156 = vmatpush3.bf16.msra.mxu0 %v10971_v0 }
0x2d41   :  { %9157 = vmatprep.subr.bf16.mxu0 %v9281_v4 }
0x2d44   :  { %9159 = vmatpush3.bf16.msra.mxu0 %v10981_v26 }
0x2d45   :  { %9160 = vmatprep.subr.bf16.mxu0 %v9281_v4 }
0x2d48   :  { %9162 = vmatpush3.bf16.msra.mxu0 %v10991_v34 }
0x2d49   :  { %9163 = vmatprep.subr.bf16.mxu0 %v9281_v4 }
0x2d4c   :  { %9165 = vmatpush3.bf16.msra.mxu0 %v11001_v41  ;;  %v4677_v41 = vstv %s11196_s4 }
0x2d4d   :  { %9166 = vmatprep.subr.bf16.mxu0 %v9281_v4 }
0x2d50   :  { %9168 = vmatpush3.bf16.msra.mxu0 %v11011_v15 }
0x2d51   :  { %9169 = vmatprep.subr.bf16.mxu0 %v9281_v4 }
0x2d54   :  { %9171 = vmatpush3.bf16.msra.mxu0 %v11025_v53 }
0x2d55   :  { %9172 = vmatprep.subr.bf16.mxu0 %v9281_v4 }
0x2d58   :  { %9174 = vmatpush3.bf16.msra.mxu0 %v11035_v57 }
0x2e0e   :  { %v4602_v8 = vpop.f32.mrb[52].mxu0 }
0x2e0f   :  { %v4603_v0 = vadd.f32 %v10721_v58, %v4602_v8  ;;  %v7749_v26 = vpop.f32.mrb[53].mxu0 }
0x2e11   :  { %9257 = vtanh.f32 %v4603_v0 }
0x2e1b   :  { %v9258_v34 = vpop.eup %9257 }
0x2e1c   :  { %7783 = vmatmul.mubr.f32.vlgmr.msra.gmra.mrb[52].mxu1 %v9258_v34 }
0x2e1d   :  { %9177 = vmatpush3.bf16.msra.mxu1 %v11048_v61  ;;  %7852 = vmatprep.mubr.msk.f32.mxu1 %vm9282_vm0, %v9283_v7  ;;  %v4824_v7 = vmul.f32 2.0, %v4531_v48 }
0x2e1e   :  { %9178 = vmatprep.subr.bf16.mxu1 %v9281_v4 }
0x2e1f   :  { %v4825_v57 = vadd.f32 %v4824_v7, %v11200_v56 }
0x2e21   :  { %9180 = vmatpush3.bf16.msra.mxu1 %v11054_v10 }
0x2e22   :  { %9181 = vmatprep.subr.bf16.mxu1 %v9281_v4 }
0x2e25   :  { %9183 = vmatpush3.bf16.msra.mxu1 %v11064_v33 }
0x2e26   :  { %9184 = vmatprep.subr.bf16.mxu1 %v9281_v4 }
0x2e29   :  { %9186 = vmatpush3.bf16.msra.mxu1 %v11074_v25 }
0x2e2a   :  { %9187 = vmatprep.subr.bf16.mxu1 %v9281_v4 }
0x2e2d   :  { %9189 = vmatpush3.bf16.msra.mxu1 %v11084_v3 }
0x2e2e   :  { %9190 = vmatprep.subr.bf16.mxu1 %v9281_v4 }
0x2e31   :  { %9192 = vmatpush3.bf16.msra.mxu1 %v11153_v29 }
0x2e32   :  { %9193 = vmatprep.subr.bf16.mxu1 %v9281_v4 }
0x2e35   :  { %9195 = vmatpush3.bf16.msra.mxu1 %v11163_v39 }
0x2e36   :  { %9196 = vmatprep.subr.bf16.mxu1 %v9281_v4  ;;  %v9265_v4 = vld [vmem:[%s11321_s3] ss:$0 sm:$0xff] }
0x2e39   :  { %9198 = vmatpush3.bf16.msra.mxu1 %v11172_v54 }
0x2eef   :  { %v4673_v58 = vpop.f32.mrb[52].mxu1 }
0x2ef0   :  { %v4674_v15 = vadd.f32 %v10746_v38, %v4673_v58  ;;  %v7784_v53 = vpop.f32.mrb[53].mxu1 }
0x2ef2   :  { %v4678_v61 = vmul.f32 %v4677_v41, %v4674_v15  ;;  %v4826_v10 = vmul.f32 2.0, %v4674_v15 }
0x2ef4   :  { %v4679_v33 = vadd.f32 %v4678_v61, %v11093_v28  ;;  %v4827_v25 = vadd.f32 %v4826_v10, %v4825_v57 }
0x2ef6   :  { %7818 = vmatmul.mubr.f32.vlgmr.msra.gmra.mrb[54].mxu0 %v4679_v33 }
0x2fc9   :  { %v4746_v3 = vpop.f32.mrb[54].mxu0 }
0x2fca   :  { %v4747_v62 = vadd.f32 %v9265_v4, %v4746_v3  ;;  %v7819_v13 = vpop.f32.mrb[55].mxu0 }
0x2fcc   :  { %9259 = vtanh.f32 %v4747_v62 }
0x2fd6   :  { %v9260_v24 = vpop.eup %9259 }
0x2fd7   :  { %7853 = vmatmul.mubr.f32.vlgmr.msra.gmra.mrb[54].mxu1 %v9260_v24 }
0x30aa   :  { %v4817_v9 = vpop.f32.mrb[54].mxu1 }
0x30ab   :  { %v4818_v43 = vadd.f32 %v10746_v38, %v4817_v9  ;;  %v7854_v51 = vpop.f32.mrb[55].mxu1 }
0x30ad   :  { %v4828_v23 = vadd.f32 %v4827_v25, %v4818_v43 }
0x30af   :  { %v4830_v50 = vmul.f32 %v4829_v22, %v4828_v23 }
0x30b1   :  { %v4831_v36 = vadd.f32 %v4830_v50, %v11093_v28 }
0x30b3   :  { %v4833_v12 = vcombine.high %v4831_v36, %v4831_v36  ;;  %v4840_v63 = vrot.slane %v4831_v36, %v9363_v18 }
0x30b5   :  { %v4847_v19 = vrot.slane %v4833_v12, %v9363_v18  ;;  %v4848_v27 = vcombine.high %v4840_v63, %v4840_v63  ;;  %v4856_v32 = vrot.slane %v4840_v63, %v9363_v18  ;;  %4939 = vst.sshfl [vmem:[%s11324_s6 + $0x7] sm:$0x1 pattern:$0x73625140] %v4840_v63 }
0x30b7   :  { %v4849_v21 = vcombine.high %v4847_v19, %v4847_v19  ;;  %v4863_v38 = vrot.slane %v4847_v19, %v9363_v18  ;;  %v4870_v59 = vrot.slane %v4848_v27, %v9363_v18  ;;  %v4878_v6 = vcombine.high %v4856_v32, %v4856_v32  ;;  %4940 = vst.sshfl [vmem:[%s11324_s6 + $0xf] sm:$0x1 pattern:$0x73625140] %v4848_v27 }
0x30b8   :  { %4941 = vst.sshfl [vmem:[%s11324_s6 + $0x27] sm:$0x1 pattern:$0x73625140] %v4847_v19 }
0x30b9   :  { %v4877_v28 = vrot.slane %v4849_v21, %v9363_v18  ;;  %v4879_v20 = vcombine.high %v4863_v38, %v4863_v38  ;;  %v4880_v29 = vcombine.high %v4870_v59, %v4870_v59  ;;  %4892 = vst [vmem:[%s11324_s6 + $0x17] sm:$0x1] %v4878_v6  ;;  %4942 = vst.sshfl [vmem:[%s11324_s6 + $0x2f] sm:$0x1 pattern:$0x73625140] %v4849_v21 }
0x30bb   :  { %v4881_v31 = vcombine.high %v4877_v28, %v4877_v28  ;;  %4893 = vst [vmem:[%s11324_s6 + $0x1f] sm:$0x1] %v4880_v29  ;;  %4896 = vst [vmem:[%s11324_s6 + $0x37] sm:$0x1] %v4879_v20 }
0x30bd   :  { %4897 = vst [vmem:[%s11324_s6 + $0x3f] sm:$0x1] %v4881_v31 }
0x30be   :  { %4902 = vsyncpa [#allocation3], 1 }

</bundles_post_ra>
